<compile_context>
chip_gen: v5e
topology: v5e:2x2
jax: 0.10.0
libtpu: 0.0.40
codegen_flags: <defaults>
</compile_context>

<pallas_src>
import math
from functools import partial

import jax
import jax.numpy as jnp
from jax.experimental import pallas as pl
from jax.experimental.pallas import tpu as pltpu

# ----- TabNet hyper-parameters (taken verbatim from the module) -----
N_D = 28
N_A = 80
N_STEPS = 1            # single decision step
GAMMA = 1.3            # only used for prior update (no-op when n_steps == 1)
N_INDEPENDENT = 2
N_SHARED = 1
VIRTUAL_BATCH_SIZE = 32
HIDDEN = N_D + N_A     # 108 (true hidden width)
HPAD = 128             # lane-dense padded hidden width
HPAD2 = 2 * HPAD       # 256 (fused GLU fc output width)
EPS_BN = 1e-5
EPS_LOG = 1e-15
SQRT_HALF = 0.7071067811865476
PRELU_SLOPE = 0.25

# Weight-pack slabs, each (HPAD, HPAD2) bf16:
#   0       : shared GLU fc (used by BOTH feature transformers; separate BNs)
#   1, 2    : initial-splitter independent GLU fcs
#   3, 4    : step feature-transformer independent GLU fcs
#   5       : [:, :128] attentive fc (rows n_d..n_d+n_a-1), [:, 128:] final mapping (rows :n_d)
NUM_SLABS = 6
# BN pack rows, (NUM_BN_ROWS, HPAD2) f32:
#   0/1: initial_bn gamma/beta   2/3: attentive bn gamma/beta
#   4+2g / 5+2g: GLU group g fused gamma/beta (g = 0..5)
#   GLU group order: 0..2 = initial splitter (shared, ind0, ind1),
#                    3..5 = step feat transformer (shared, ind0, ind1)
NUM_BN_ROWS = 4 + 2 * 6


def _tabnet_kernel(x_ref, w_ref, bn_ref, out_ref, mloss_ref, *, input_dim):
    f32 = jnp.float32
    bf16 = jnp.bfloat16
    D = input_dim

    x = x_ref[...].astype(f32)          # (B, HPAD); lanes >= D are zero
    B = x.shape[0]
    inv_b = 1.0 / B

    # training-mode BatchNorm1d over the (single) virtual batch, one-pass stats,
    # fused into a single per-column scale/shift.
    def bn_train(h, w, b):
        s1 = jnp.sum(h, axis=0, keepdims=True)
        s2 = jnp.sum(h * h, axis=0, keepdims=True)
        mu = s1 * inv_b
        var = jnp.maximum(s2 * inv_b - mu * mu, 0.0)   # biased variance
        scale = jax.lax.rsqrt(var + EPS_BN) * w
        shift = b - mu * scale
        return h * scale + shift

    # GLU layer with the fused (in,256) weight: one MXU dot, one 256-lane BN,
    # slice at the lane-aligned column 128, gate.  Padded columns have zero
    # weight and zero BN gamma, so the GLU output is exactly zero there.
    # (Per-column BN on the fused 256-wide activation == BN on the 216-wide one.)
    def glu(h, slab, g):
        z = jnp.dot(h.astype(bf16), w_ref[slab], preferred_element_type=f32)  # (B, 256)
        r = 4 + 2 * g
        z = bn_train(z, bn_ref[r:r + 1, :], bn_ref[r + 1:r + 2, :])
        return z[:, :HPAD] * jax.nn.sigmoid(z[:, HPAD:])

    # FeatTransformer: shared block (1 GLU, first=True) + 2 independent GLUs
    def feat_transform(h, ind0, ind1, g0):
        h = glu(h, 0, g0)                                   # shared fc, own BN
        h = (h + glu(h, ind0, g0 + 1)) * SQRT_HALF
        h = (h + glu(h, ind1, g0 + 2)) * SQRT_HALF
        return h

    # exact entmax-1.5 along the feature axis, sort-free (rank re-indexed).
    # Runs at the true input_dim width (zero-padded logits would wrongly take
    # probability mass); at d ~ 16 this is negligible VPU work.
    def entmax15(z):
        d = z.shape[1]
        zh = (z - jnp.max(z, axis=-1, keepdims=True)) * 0.5
        zh2 = zh * zh
        zj = zh[:, :, None]
        zk = zh[:, None, :]
        row = jax.lax.broadcasted_iota(jnp.int32, (d, d), 0)
        col = jax.lax.broadcasted_iota(jnp.int32, (d, d), 1)
        tie = (col < row)[None, :, :]
        # before[b, j, k] == 1 iff element k precedes element j in the stable
        # descending sort (strict total order -> ranks are distinct)
        before = ((zk > zj) | ((zk == zj) & tie)).astype(f32)
        rank = jnp.sum(before, axis=-1)                          # (B, d)
        cs = jnp.sum(before * zh[:, None, :], axis=-1) + zh      # prefix sum at own pos
        cs2 = jnp.sum(before * zh2[:, None, :], axis=-1) + zh2   # prefix sum of squares
        rho = rank + 1.0
        mean = cs / rho
        mean_sq = cs2 / rho
        ss = rho * (mean_sq - mean * mean)
        delta = jnp.maximum((1.0 - ss) / rho, 0.0)
        tau = mean - jnp.sqrt(delta)
        support = jnp.sum((tau <= zh).astype(f32), axis=-1, keepdims=True)   # (B, 1)
        tau_star = jnp.sum((rho == support).astype(f32) * tau,
                           axis=-1, keepdims=True)
        y = jnp.maximum(zh - tau_star, 0.0)
        return y * y

    # ================= forward =================
    # initial_bn: gamma is 1 on lanes < D and 0 on padded lanes -> xn padded
    # lanes are exactly zero.
    xn = bn_train(x, bn_ref[0:1, :HPAD], bn_ref[1:2, :HPAD])

    h0 = feat_transform(xn, 1, 2, 0)                        # initial splitter

    # attentive transformer; att fc rows < n_d and >= 108 are zero, so we
    # contract over all 128 lane-dense columns of h0 (== h0[:, n_d:] @ att_w).
    w_misc = w_ref[5]                                       # (128, 256) bf16
    a = jnp.dot(h0.astype(bf16), w_misc[:, :HPAD], preferred_element_type=f32)
    a = bn_train(a, bn_ref[2:3, :HPAD], bn_ref[3:4, :HPAD])
    # prior == 1 for step 0, so `a * prior` is a no-op (gamma unused at 1 step)
    M = entmax15(a[:, :D])                                  # (B, D)

    # sparsity loss: mean over batch of sum_j M*log(M+eps), divided by n_steps
    mloss_ref[0, 0] = jnp.sum(M * jnp.log(M + EPS_LOG)) * (inv_b / N_STEPS)

    mx = M * xn[:, :D]
    if HPAD > D:
        mx = jnp.concatenate([mx, jnp.zeros((B, HPAD - D), f32)], axis=-1)
    step_out = feat_transform(mx, 3, 4, 3)

    # PReLU(0.25) over all 128 columns; columns >= n_d contribute nothing since
    # the corresponding rows of the padded final weight are zero.
    act = jnp.where(step_out > 0, step_out, PRELU_SLOPE * step_out)
    # lane-dense (B, 128) output; real logits live in columns [:out_dim]
    out_ref[...] = jnp.dot(act.astype(bf16), w_misc[:, HPAD:],
                           preferred_element_type=f32)


# ---------------- parameter initialization (deterministic, in-script) ----------------
def _xavier_normal_t(key, fan_out, fan_in, gain):
    # mimics torch.nn.init.xavier_normal_ on a (out, in) weight, returned transposed (in, out)
    std = gain * math.sqrt(2.0 / (fan_in + fan_out))
    w = std * jax.random.normal(key, (fan_out, fan_in), dtype=jnp.float32)
    return w.T


def _glu_gain(fi, fo):
    return math.sqrt((fi + fo) / math.sqrt(fi))


def _non_glu_gain(fi, fo):
    return math.sqrt((fi + fo) / math.sqrt(4 * fi))


def _pack_glu_fc(w):
    # w: (in_dim, 2*HIDDEN) -> zero-padded (HPAD, HPAD2) slab, halves at lanes 0 / 128
    in_dim = w.shape[0]
    slab = jnp.zeros((HPAD, HPAD2), jnp.float32)
    slab = slab.at[:in_dim, :HIDDEN].set(w[:, :HIDDEN])
    slab = slab.at[:in_dim, HPAD:HPAD + HIDDEN].set(w[:, HIDDEN:])
    return slab


def init_params(key, input_dim, output_dim):
    assert input_dim <= HPAD, "packed layout assumes input_dim <= 128"
    assert output_dim <= HPAD, "packed layout assumes output_dim <= 128"
    ks = jax.random.split(key, 7)
    hidden2 = 2 * HIDDEN

    w_sh = _xavier_normal_t(ks[0], hidden2, input_dim, _glu_gain(input_dim, hidden2))
    is_sp0 = _xavier_normal_t(ks[1], hidden2, HIDDEN, _glu_gain(HIDDEN, hidden2))
    is_sp1 = _xavier_normal_t(ks[2], hidden2, HIDDEN, _glu_gain(HIDDEN, hidden2))
    ft_sp0 = _xavier_normal_t(ks[3], hidden2, HIDDEN, _glu_gain(HIDDEN, hidden2))
    ft_sp1 = _xavier_normal_t(ks[4], hidden2, HIDDEN, _glu_gain(HIDDEN, hidden2))
    att_w = _xavier_normal_t(ks[5], input_dim, N_A, _non_glu_gain(N_A, input_dim))      # (n_a, D)
    final_w = _xavier_normal_t(ks[6], output_dim, N_D, _non_glu_gain(N_D, output_dim))  # (n_d, out)

    # slab 5: attentive fc in lanes [0, 128) (rows n_d..n_d+n_a-1 valid, rest 0)
    #         final mapping in lanes [128, 256) (rows < n_d valid, rest 0)
    misc = jnp.zeros((HPAD, HPAD2), jnp.float32)
    misc = misc.at[N_D:N_D + N_A, :input_dim].set(att_w)
    misc = misc.at[:N_D, HPAD:HPAD + output_dim].set(final_w)

    w_pack = jnp.stack(
        [_pack_glu_fc(w_sh),
         _pack_glu_fc(is_sp0), _pack_glu_fc(is_sp1),
         _pack_glu_fc(ft_sp0), _pack_glu_fc(ft_sp1),
         misc],
        axis=0).astype(jnp.bfloat16)                      # (6, 128, 256) ~ 0.4 MiB

    # BN gamma/beta (fresh module: weight=1, bias=0).  Padded lanes MUST stay 0
    # so the dead columns remain exactly zero through every GLU.
    bn_pack = jnp.zeros((NUM_BN_ROWS, HPAD2), jnp.float32)
    bn_pack = bn_pack.at[0, :input_dim].set(1.0)          # initial_bn gamma
    bn_pack = bn_pack.at[2, :input_dim].set(1.0)          # attentive bn gamma
    glu_gamma = jnp.zeros((HPAD2,), jnp.float32)
    glu_gamma = glu_gamma.at[:HIDDEN].set(1.0).at[HPAD:HPAD + HIDDEN].set(1.0)
    for g in range(6):
        bn_pack = bn_pack.at[4 + 2 * g].set(glu_gamma)

    return w_pack, bn_pack, output_dim


def tabnet_forward(x, params):
    w_pack, bn_pack, out_dim = params
    B, D = x.shape
    # TODO(synk): for B > virtual_batch_size, GBN uses per-32-row chunk stats
    #             while initial_bn uses full-batch stats; a naive parallel
    #             virtual-batch grid alone is not faithful, so multi-chunk
    #             batches are not modelled here.
    assert B <= VIRTUAL_BATCH_SIZE, "GBN single-chunk assumption (batch <= virtual_batch_size)"

    # lane-pad x to 128; padded lanes stay exactly zero through initial_bn
    x_pad = jnp.zeros((B, HPAD), x.dtype).at[:, :D].set(x)

    vmem = pl.BlockSpec(memory_space=pltpu.MemorySpace.VMEM)
    smem = pl.BlockSpec(memory_space=pltpu.MemorySpace.SMEM)

    out_pad, mloss = pl.pallas_call(
        partial(_tabnet_kernel, input_dim=D),
        out_shape=(
            jax.ShapeDtypeStruct((B, HPAD), jnp.float32),   # lane-dense logits pad
            jax.ShapeDtypeStruct((1, 1), jnp.float32),      # scalar sparsity loss
        ),
        in_specs=[vmem, vmem, vmem],
        out_specs=(vmem, smem),
    )(x_pad, w_pack, bn_pack)
    return out_pad[:, :out_dim], mloss[0, 0]


if __name__ == "__main__":
    B, D, OUT_DIM = 8, 16, 4
    key = jax.random.PRNGKey(0)
    k_x, k_p = jax.random.split(key)
    x = jax.random.normal(k_x, (B, D), dtype=jnp.float32)
    params = init_params(k_p, D, OUT_DIM)

    logits, m_loss = tabnet_forward(x, params)
    jax.block_until_ready((logits, m_loss))
    assert logits.shape == (B, OUT_DIM)
    assert m_loss.shape == ()
    print("KERNEL_OK")
</pallas_src>

<mosaic_0001>
module attributes {stable_mosaic.version = 11 : i64} {
  func.func @_tabnet_kernel(%arg0: memref<8x128xf32, #tpu.memory_space<vmem>>, %arg1: memref<6x128x256xbf16, #tpu.memory_space<vmem>>, %arg2: memref<16x256xf32, #tpu.memory_space<vmem>>, %arg3: memref<8x128xf32, #tpu.memory_space<vmem>>, %arg4: memref<1x1xf32, #tpu.memory_space<smem>>) attributes {dimension_semantics = [], scalar_prefetch = 0 : i64, scratch_operands = 0 : i64, tpu.core_type = #tpu.core_type<tc>} {
    %c0 = arith.constant 0 : index
    %c0_0 = arith.constant 0 : index
    %0 = vector.load %arg0[%c0, %c0_0] : memref<8x128xf32, #tpu.memory_space<vmem>>, vector<8x128xf32>
    %c0_1 = arith.constant 0 : index
    %c0_2 = arith.constant 0 : index
    %1 = vector.load %arg2[%c0_1, %c0_2] : memref<16x256xf32, #tpu.memory_space<vmem>>, vector<1x128xf32>
    %c1 = arith.constant 1 : index
    %c0_3 = arith.constant 0 : index
    %2 = vector.load %arg2[%c1, %c0_3] : memref<16x256xf32, #tpu.memory_space<vmem>>, vector<1x128xf32>
    %cst = arith.constant dense<0.000000e+00> : vector<128xf32>
    %3 = vector.multi_reduction <add>, %0, %cst [0] : vector<8x128xf32> to vector<128xf32>
    %4 = vector.shape_cast %3 : vector<128xf32> to vector<1x128xf32>
    %5 = arith.mulf %0, %0 : vector<8x128xf32>
    %cst_4 = arith.constant dense<0.000000e+00> : vector<128xf32>
    %6 = vector.multi_reduction <add>, %5, %cst_4 [0] : vector<8x128xf32> to vector<128xf32>
    %7 = vector.shape_cast %6 : vector<128xf32> to vector<1x128xf32>
    %cst_5 = arith.constant 1.250000e-01 : f32
    %8 = vector.broadcast %cst_5 : f32 to vector<1x128xf32>
    %9 = arith.mulf %4, %8 : vector<1x128xf32>
    %cst_6 = arith.constant 1.250000e-01 : f32
    %10 = vector.broadcast %cst_6 : f32 to vector<1x128xf32>
    %11 = arith.mulf %7, %10 : vector<1x128xf32>
    %12 = arith.mulf %9, %9 : vector<1x128xf32>
    %13 = arith.subf %11, %12 : vector<1x128xf32>
    %cst_7 = arith.constant 0.000000e+00 : f32
    %14 = vector.broadcast %cst_7 : f32 to vector<1x128xf32>
    %15 = arith.maximumf %13, %14 : vector<1x128xf32>
    %cst_8 = arith.constant 9.99999974E-6 : f32
    %16 = vector.broadcast %cst_8 : f32 to vector<1x128xf32>
    %17 = arith.addf %15, %16 : vector<1x128xf32>
    %18 = math.rsqrt %17 : vector<1x128xf32>
    %19 = arith.mulf %18, %1 : vector<1x128xf32>
    %20 = arith.mulf %9, %19 : vector<1x128xf32>
    %21 = arith.subf %2, %20 : vector<1x128xf32>
    %22 = vector.broadcast %19 : vector<1x128xf32> to vector<8x128xf32>
    %23 = arith.mulf %0, %22 : vector<8x128xf32>
    %24 = vector.broadcast %21 : vector<1x128xf32> to vector<8x128xf32>
    %25 = arith.addf %23, %24 : vector<8x128xf32>
    %26 = arith.truncf %25 : vector<8x128xf32> to vector<8x128xbf16>
    %c0_9 = arith.constant 0 : index
    %c0_10 = arith.constant 0 : index
    %c0_11 = arith.constant 0 : index
    %27 = vector.load %arg1[%c0_9, %c0_10, %c0_11] : memref<6x128x256xbf16, #tpu.memory_space<vmem>>, vector<1x128x256xbf16>
    %28 = vector.shape_cast %27 : vector<1x128x256xbf16> to vector<128x256xbf16>
    %cst_12 = arith.constant dense<0.000000e+00> : vector<8x256xf32>
    %29 = tpu.matmul %26, %28, %cst_12 {dimension_numbers = #tpu.dot_dimension_numbers<[1], [0], [0], [1], [0, 0, 1, 1], [], []>} : vector<8x128xbf16>, vector<128x256xbf16>, vector<8x256xf32> -> vector<8x256xf32>
    %c4 = arith.constant 4 : index
    %c0_13 = arith.constant 0 : index
    %30 = vector.load %arg2[%c4, %c0_13] : memref<16x256xf32, #tpu.memory_space<vmem>>, vector<1x256xf32>
    %c5 = arith.constant 5 : index
    %c0_14 = arith.constant 0 : index
    %31 = vector.load %arg2[%c5, %c0_14] : memref<16x256xf32, #tpu.memory_space<vmem>>, vector<1x256xf32>
    %cst_15 = arith.constant dense<0.000000e+00> : vector<256xf32>
    %32 = vector.multi_reduction <add>, %29, %cst_15 [0] : vector<8x256xf32> to vector<256xf32>
    %33 = vector.shape_cast %32 : vector<256xf32> to vector<1x256xf32>
    %34 = arith.mulf %29, %29 : vector<8x256xf32>
    %cst_16 = arith.constant dense<0.000000e+00> : vector<256xf32>
    %35 = vector.multi_reduction <add>, %34, %cst_16 [0] : vector<8x256xf32> to vector<256xf32>
    %36 = vector.shape_cast %35 : vector<256xf32> to vector<1x256xf32>
    %cst_17 = arith.constant 1.250000e-01 : f32
    %37 = vector.broadcast %cst_17 : f32 to vector<1x256xf32>
    %38 = arith.mulf %33, %37 : vector<1x256xf32>
    %cst_18 = arith.constant 1.250000e-01 : f32
    %39 = vector.broadcast %cst_18 : f32 to vector<1x256xf32>
    %40 = arith.mulf %36, %39 : vector<1x256xf32>
    %41 = arith.mulf %38, %38 : vector<1x256xf32>
    %42 = arith.subf %40, %41 : vector<1x256xf32>
    %cst_19 = arith.constant 0.000000e+00 : f32
    %43 = vector.broadcast %cst_19 : f32 to vector<1x256xf32>
    %44 = arith.maximumf %42, %43 : vector<1x256xf32>
    %cst_20 = arith.constant 9.99999974E-6 : f32
    %45 = vector.broadcast %cst_20 : f32 to vector<1x256xf32>
    %46 = arith.addf %44, %45 : vector<1x256xf32>
    %47 = math.rsqrt %46 : vector<1x256xf32>
    %48 = arith.mulf %47, %30 : vector<1x256xf32>
    %49 = arith.mulf %38, %48 : vector<1x256xf32>
    %50 = arith.subf %31, %49 : vector<1x256xf32>
    %51 = vector.broadcast %48 : vector<1x256xf32> to vector<8x256xf32>
    %52 = arith.mulf %29, %51 : vector<8x256xf32>
    %53 = vector.broadcast %50 : vector<1x256xf32> to vector<8x256xf32>
    %54 = arith.addf %52, %53 : vector<8x256xf32>
    %55 = vector.extract_strided_slice %54 {offsets = [0, 0], sizes = [8, 128], strides = [1, 1]} : vector<8x256xf32> to vector<8x128xf32>
    %56 = vector.extract_strided_slice %54 {offsets = [0, 128], sizes = [8, 128], strides = [1, 1]} : vector<8x256xf32> to vector<8x128xf32>
    %57 = arith.negf %56 : vector<8x128xf32>
    %58 = math.exp %57 : vector<8x128xf32>
    %cst_21 = arith.constant 1.000000e+00 : f32
    %59 = vector.broadcast %cst_21 : f32 to vector<8x128xf32>
    %60 = arith.addf %59, %58 : vector<8x128xf32>
    %61 = arith.divf %59, %60 : vector<8x128xf32>
    %62 = arith.mulf %55, %61 : vector<8x128xf32>
    %63 = arith.truncf %62 : vector<8x128xf32> to vector<8x128xbf16>
    %c1_22 = arith.constant 1 : index
    %c0_23 = arith.constant 0 : index
    %c0_24 = arith.constant 0 : index
    %64 = vector.load %arg1[%c1_22, %c0_23, %c0_24] : memref<6x128x256xbf16, #tpu.memory_space<vmem>>, vector<1x128x256xbf16>
    %65 = vector.shape_cast %64 : vector<1x128x256xbf16> to vector<128x256xbf16>
    %cst_25 = arith.constant dense<0.000000e+00> : vector<8x256xf32>
    %66 = tpu.matmul %63, %65, %cst_25 {dimension_numbers = #tpu.dot_dimension_numbers<[1], [0], [0], [1], [0, 0, 1, 1], [], []>} : vector<8x128xbf16>, vector<128x256xbf16>, vector<8x256xf32> -> vector<8x256xf32>
    %c6 = arith.constant 6 : index
    %c0_26 = arith.constant 0 : index
    %67 = vector.load %arg2[%c6, %c0_26] : memref<16x256xf32, #tpu.memory_space<vmem>>, vector<1x256xf32>
    %c7 = arith.constant 7 : index
    %c0_27 = arith.constant 0 : index
    %68 = vector.load %arg2[%c7, %c0_27] : memref<16x256xf32, #tpu.memory_space<vmem>>, vector<1x256xf32>
    %cst_28 = arith.constant dense<0.000000e+00> : vector<256xf32>
    %69 = vector.multi_reduction <add>, %66, %cst_28 [0] : vector<8x256xf32> to vector<256xf32>
    %70 = vector.shape_cast %69 : vector<256xf32> to vector<1x256xf32>
    %71 = arith.mulf %66, %66 : vector<8x256xf32>
    %cst_29 = arith.constant dense<0.000000e+00> : vector<256xf32>
    %72 = vector.multi_reduction <add>, %71, %cst_29 [0] : vector<8x256xf32> to vector<256xf32>
    %73 = vector.shape_cast %72 : vector<256xf32> to vector<1x256xf32>
    %cst_30 = arith.constant 1.250000e-01 : f32
    %74 = vector.broadcast %cst_30 : f32 to vector<1x256xf32>
    %75 = arith.mulf %70, %74 : vector<1x256xf32>
    %cst_31 = arith.constant 1.250000e-01 : f32
    %76 = vector.broadcast %cst_31 : f32 to vector<1x256xf32>
    %77 = arith.mulf %73, %76 : vector<1x256xf32>
    %78 = arith.mulf %75, %75 : vector<1x256xf32>
    %79 = arith.subf %77, %78 : vector<1x256xf32>
    %cst_32 = arith.constant 0.000000e+00 : f32
    %80 = vector.broadcast %cst_32 : f32 to vector<1x256xf32>
    %81 = arith.maximumf %79, %80 : vector<1x256xf32>
    %cst_33 = arith.constant 9.99999974E-6 : f32
    %82 = vector.broadcast %cst_33 : f32 to vector<1x256xf32>
    %83 = arith.addf %81, %82 : vector<1x256xf32>
    %84 = math.rsqrt %83 : vector<1x256xf32>
    %85 = arith.mulf %84, %67 : vector<1x256xf32>
    %86 = arith.mulf %75, %85 : vector<1x256xf32>
    %87 = arith.subf %68, %86 : vector<1x256xf32>
    %88 = vector.broadcast %85 : vector<1x256xf32> to vector<8x256xf32>
    %89 = arith.mulf %66, %88 : vector<8x256xf32>
    %90 = vector.broadcast %87 : vector<1x256xf32> to vector<8x256xf32>
    %91 = arith.addf %89, %90 : vector<8x256xf32>
    %92 = vector.extract_strided_slice %91 {offsets = [0, 0], sizes = [8, 128], strides = [1, 1]} : vector<8x256xf32> to vector<8x128xf32>
    %93 = vector.extract_strided_slice %91 {offsets = [0, 128], sizes = [8, 128], strides = [1, 1]} : vector<8x256xf32> to vector<8x128xf32>
    %94 = arith.negf %93 : vector<8x128xf32>
    %95 = math.exp %94 : vector<8x128xf32>
    %cst_34 = arith.constant 1.000000e+00 : f32
    %96 = vector.broadcast %cst_34 : f32 to vector<8x128xf32>
    %97 = arith.addf %96, %95 : vector<8x128xf32>
    %98 = arith.divf %96, %97 : vector<8x128xf32>
    %99 = arith.mulf %92, %98 : vector<8x128xf32>
    %100 = arith.addf %62, %99 : vector<8x128xf32>
    %cst_35 = arith.constant 0.707106769 : f32
    %101 = vector.broadcast %cst_35 : f32 to vector<8x128xf32>
    %102 = arith.mulf %100, %101 : vector<8x128xf32>
    %103 = arith.truncf %102 : vector<8x128xf32> to vector<8x128xbf16>
    %c2 = arith.constant 2 : index
    %c0_36 = arith.constant 0 : index
    %c0_37 = arith.constant 0 : index
    %104 = vector.load %arg1[%c2, %c0_36, %c0_37] : memref<6x128x256xbf16, #tpu.memory_space<vmem>>, vector<1x128x256xbf16>
    %105 = vector.shape_cast %104 : vector<1x128x256xbf16> to vector<128x256xbf16>
    %cst_38 = arith.constant dense<0.000000e+00> : vector<8x256xf32>
    %106 = tpu.matmul %103, %105, %cst_38 {dimension_numbers = #tpu.dot_dimension_numbers<[1], [0], [0], [1], [0, 0, 1, 1], [], []>} : vector<8x128xbf16>, vector<128x256xbf16>, vector<8x256xf32> -> vector<8x256xf32>
    %c8 = arith.constant 8 : index
    %c0_39 = arith.constant 0 : index
    %107 = vector.load %arg2[%c8, %c0_39] : memref<16x256xf32, #tpu.memory_space<vmem>>, vector<1x256xf32>
    %c9 = arith.constant 9 : index
    %c0_40 = arith.constant 0 : index
    %108 = vector.load %arg2[%c9, %c0_40] : memref<16x256xf32, #tpu.memory_space<vmem>>, vector<1x256xf32>
    %cst_41 = arith.constant dense<0.000000e+00> : vector<256xf32>
    %109 = vector.multi_reduction <add>, %106, %cst_41 [0] : vector<8x256xf32> to vector<256xf32>
    %110 = vector.shape_cast %109 : vector<256xf32> to vector<1x256xf32>
    %111 = arith.mulf %106, %106 : vector<8x256xf32>
    %cst_42 = arith.constant dense<0.000000e+00> : vector<256xf32>
    %112 = vector.multi_reduction <add>, %111, %cst_42 [0] : vector<8x256xf32> to vector<256xf32>
    %113 = vector.shape_cast %112 : vector<256xf32> to vector<1x256xf32>
    %cst_43 = arith.constant 1.250000e-01 : f32
    %114 = vector.broadcast %cst_43 : f32 to vector<1x256xf32>
    %115 = arith.mulf %110, %114 : vector<1x256xf32>
    %cst_44 = arith.constant 1.250000e-01 : f32
    %116 = vector.broadcast %cst_44 : f32 to vector<1x256xf32>
    %117 = arith.mulf %113, %116 : vector<1x256xf32>
    %118 = arith.mulf %115, %115 : vector<1x256xf32>
    %119 = arith.subf %117, %118 : vector<1x256xf32>
    %cst_45 = arith.constant 0.000000e+00 : f32
    %120 = vector.broadcast %cst_45 : f32 to vector<1x256xf32>
    %121 = arith.maximumf %119, %120 : vector<1x256xf32>
    %cst_46 = arith.constant 9.99999974E-6 : f32
    %122 = vector.broadcast %cst_46 : f32 to vector<1x256xf32>
    %123 = arith.addf %121, %122 : vector<1x256xf32>
    %124 = math.rsqrt %123 : vector<1x256xf32>
    %125 = arith.mulf %124, %107 : vector<1x256xf32>
    %126 = arith.mulf %115, %125 : vector<1x256xf32>
    %127 = arith.subf %108, %126 : vector<1x256xf32>
    %128 = vector.broadcast %125 : vector<1x256xf32> to vector<8x256xf32>
    %129 = arith.mulf %106, %128 : vector<8x256xf32>
    %130 = vector.broadcast %127 : vector<1x256xf32> to vector<8x256xf32>
    %131 = arith.addf %129, %130 : vector<8x256xf32>
    %132 = vector.extract_strided_slice %131 {offsets = [0, 0], sizes = [8, 128], strides = [1, 1]} : vector<8x256xf32> to vector<8x128xf32>
    %133 = vector.extract_strided_slice %131 {offsets = [0, 128], sizes = [8, 128], strides = [1, 1]} : vector<8x256xf32> to vector<8x128xf32>
    %134 = arith.negf %133 : vector<8x128xf32>
    %135 = math.exp %134 : vector<8x128xf32>
    %cst_47 = arith.constant 1.000000e+00 : f32
    %136 = vector.broadcast %cst_47 : f32 to vector<8x128xf32>
    %137 = arith.addf %136, %135 : vector<8x128xf32>
    %138 = arith.divf %136, %137 : vector<8x128xf32>
    %139 = arith.mulf %132, %138 : vector<8x128xf32>
    %140 = arith.addf %102, %139 : vector<8x128xf32>
    %cst_48 = arith.constant 0.707106769 : f32
    %141 = vector.broadcast %cst_48 : f32 to vector<8x128xf32>
    %142 = arith.mulf %140, %141 : vector<8x128xf32>
    %c5_49 = arith.constant 5 : index
    %c0_50 = arith.constant 0 : index
    %c0_51 = arith.constant 0 : index
    %143 = vector.load %arg1[%c5_49, %c0_50, %c0_51] : memref<6x128x256xbf16, #tpu.memory_space<vmem>>, vector<1x128x256xbf16>
    %144 = vector.shape_cast %143 : vector<1x128x256xbf16> to vector<128x256xbf16>
    %145 = arith.truncf %142 : vector<8x128xf32> to vector<8x128xbf16>
    %146 = vector.extract_strided_slice %144 {offsets = [0, 0], sizes = [128, 128], strides = [1, 1]} : vector<128x256xbf16> to vector<128x128xbf16>
    %cst_52 = arith.constant dense<0.000000e+00> : vector<8x128xf32>
    %147 = tpu.matmul %145, %146, %cst_52 {dimension_numbers = #tpu.dot_dimension_numbers<[1], [0], [0], [1], [0, 0, 1, 1], [], []>} : vector<8x128xbf16>, vector<128x128xbf16>, vector<8x128xf32> -> vector<8x128xf32>
    %c2_53 = arith.constant 2 : index
    %c0_54 = arith.constant 0 : index
    %148 = vector.load %arg2[%c2_53, %c0_54] : memref<16x256xf32, #tpu.memory_space<vmem>>, vector<1x128xf32>
    %c3 = arith.constant 3 : index
    %c0_55 = arith.constant 0 : index
    %149 = vector.load %arg2[%c3, %c0_55] : memref<16x256xf32, #tpu.memory_space<vmem>>, vector<1x128xf32>
    %cst_56 = arith.constant dense<0.000000e+00> : vector<128xf32>
    %150 = vector.multi_reduction <add>, %147, %cst_56 [0] : vector<8x128xf32> to vector<128xf32>
    %151 = vector.shape_cast %150 : vector<128xf32> to vector<1x128xf32>
    %152 = arith.mulf %147, %147 : vector<8x128xf32>
    %cst_57 = arith.constant dense<0.000000e+00> : vector<128xf32>
    %153 = vector.multi_reduction <add>, %152, %cst_57 [0] : vector<8x128xf32> to vector<128xf32>
    %154 = vector.shape_cast %153 : vector<128xf32> to vector<1x128xf32>
    %cst_58 = arith.constant 1.250000e-01 : f32
    %155 = vector.broadcast %cst_58 : f32 to vector<1x128xf32>
    %156 = arith.mulf %151, %155 : vector<1x128xf32>
    %cst_59 = arith.constant 1.250000e-01 : f32
    %157 = vector.broadcast %cst_59 : f32 to vector<1x128xf32>
    %158 = arith.mulf %154, %157 : vector<1x128xf32>
    %159 = arith.mulf %156, %156 : vector<1x128xf32>
    %160 = arith.subf %158, %159 : vector<1x128xf32>
    %cst_60 = arith.constant 0.000000e+00 : f32
    %161 = vector.broadcast %cst_60 : f32 to vector<1x128xf32>
    %162 = arith.maximumf %160, %161 : vector<1x128xf32>
    %cst_61 = arith.constant 9.99999974E-6 : f32
    %163 = vector.broadcast %cst_61 : f32 to vector<1x128xf32>
    %164 = arith.addf %162, %163 : vector<1x128xf32>
    %165 = math.rsqrt %164 : vector<1x128xf32>
    %166 = arith.mulf %165, %148 : vector<1x128xf32>
    %167 = arith.mulf %156, %166 : vector<1x128xf32>
    %168 = arith.subf %149, %167 : vector<1x128xf32>
    %169 = vector.broadcast %166 : vector<1x128xf32> to vector<8x128xf32>
    %170 = arith.mulf %147, %169 : vector<8x128xf32>
    %171 = vector.broadcast %168 : vector<1x128xf32> to vector<8x128xf32>
    %172 = arith.addf %170, %171 : vector<8x128xf32>
    %173 = vector.extract_strided_slice %172 {offsets = [0, 0], sizes = [8, 16], strides = [1, 1]} : vector<8x128xf32> to vector<8x16xf32>
    %cst_62 = arith.constant dense<0xFF800000> : vector<8xf32>
    %174 = vector.multi_reduction <maximumf>, %173, %cst_62 [1] : vector<8x16xf32> to vector<8xf32>
    %175 = vector.shape_cast %174 : vector<8xf32> to vector<8x1xf32>
    %176 = vector.broadcast %175 : vector<8x1xf32> to vector<8x16xf32>
    %177 = arith.subf %173, %176 : vector<8x16xf32>
    %cst_63 = arith.constant 5.000000e-01 : f32
    %178 = vector.broadcast %cst_63 : f32 to vector<8x16xf32>
    %179 = arith.mulf %177, %178 : vector<8x16xf32>
    %180 = arith.mulf %179, %179 : vector<8x16xf32>
    %181 = vector.shape_cast %179 : vector<8x16xf32> to vector<8x16x1xf32>
    %182 = vector.shape_cast %179 : vector<8x16xf32> to vector<8x1x16xf32>
    %183 = tpu.iota {dimensions = array<i32: 0>} : vector<16x16xi32>
    %184 = tpu.iota {dimensions = array<i32: 1>} : vector<16x16xi32>
    %185 = arith.cmpi slt, %184, %183 : vector<16x16xi32>
    %186 = vector.shape_cast %185 : vector<16x16xi1> to vector<1x16x16xi1>
    %187 = vector.broadcast %182 : vector<8x1x16xf32> to vector<8x16x16xf32>
    %188 = vector.broadcast %181 : vector<8x16x1xf32> to vector<8x16x16xf32>
    %189 = arith.cmpf ogt, %187, %188 : vector<8x16x16xf32>
    %190 = vector.broadcast %182 : vector<8x1x16xf32> to vector<8x16x16xf32>
    %191 = vector.broadcast %181 : vector<8x16x1xf32> to vector<8x16x16xf32>
    %192 = arith.cmpf oeq, %190, %191 : vector<8x16x16xf32>
    %193 = vector.broadcast %186 : vector<1x16x16xi1> to vector<8x16x16xi1>
    %194 = arith.andi %192, %193 : vector<8x16x16xi1>
    %195 = arith.ori %189, %194 : vector<8x16x16xi1>
    %196 = arith.extui %195 : vector<8x16x16xi1> to vector<8x16x16xi32>
    %197 = arith.sitofp %196 : vector<8x16x16xi32> to vector<8x16x16xf32>
    %cst_64 = arith.constant dense<0.000000e+00> : vector<8x16xf32>
    %198 = vector.multi_reduction <add>, %197, %cst_64 [2] : vector<8x16x16xf32> to vector<8x16xf32>
    %199 = vector.shape_cast %179 : vector<8x16xf32> to vector<8x1x16xf32>
    %200 = vector.broadcast %199 : vector<8x1x16xf32> to vector<8x16x16xf32>
    %201 = arith.mulf %197, %200 : vector<8x16x16xf32>
    %cst_65 = arith.constant dense<0.000000e+00> : vector<8x16xf32>
    %202 = vector.multi_reduction <add>, %201, %cst_65 [2] : vector<8x16x16xf32> to vector<8x16xf32>
    %203 = arith.addf %202, %179 : vector<8x16xf32>
    %204 = vector.shape_cast %180 : vector<8x16xf32> to vector<8x1x16xf32>
    %205 = vector.broadcast %204 : vector<8x1x16xf32> to vector<8x16x16xf32>
    %206 = arith.mulf %197, %205 : vector<8x16x16xf32>
    %cst_66 = arith.constant dense<0.000000e+00> : vector<8x16xf32>
    %207 = vector.multi_reduction <add>, %206, %cst_66 [2] : vector<8x16x16xf32> to vector<8x16xf32>
    %208 = arith.addf %207, %180 : vector<8x16xf32>
    %cst_67 = arith.constant 1.000000e+00 : f32
    %209 = vector.broadcast %cst_67 : f32 to vector<8x16xf32>
    %210 = arith.addf %198, %209 : vector<8x16xf32>
    %211 = arith.divf %203, %210 : vector<8x16xf32>
    %212 = arith.divf %208, %210 : vector<8x16xf32>
    %213 = arith.mulf %211, %211 : vector<8x16xf32>
    %214 = arith.subf %212, %213 : vector<8x16xf32>
    %215 = arith.mulf %210, %214 : vector<8x16xf32>
    %cst_68 = arith.constant 1.000000e+00 : f32
    %216 = vector.broadcast %cst_68 : f32 to vector<8x16xf32>
    %217 = arith.subf %216, %215 : vector<8x16xf32>
    %218 = arith.divf %217, %210 : vector<8x16xf32>
    %cst_69 = arith.constant 0.000000e+00 : f32
    %219 = vector.broadcast %cst_69 : f32 to vector<8x16xf32>
    %220 = arith.maximumf %218, %219 : vector<8x16xf32>
    %221 = math.sqrt %220 : vector<8x16xf32>
    %222 = arith.subf %211, %221 : vector<8x16xf32>
    %223 = arith.cmpf ole, %222, %179 : vector<8x16xf32>
    %224 = arith.extui %223 : vector<8x16xi1> to vector<8x16xi32>
    %225 = arith.sitofp %224 : vector<8x16xi32> to vector<8x16xf32>
    %cst_70 = arith.constant dense<0.000000e+00> : vector<8xf32>
    %226 = vector.multi_reduction <add>, %225, %cst_70 [1] : vector<8x16xf32> to vector<8xf32>
    %227 = vector.shape_cast %226 : vector<8xf32> to vector<8x1xf32>
    %228 = vector.broadcast %227 : vector<8x1xf32> to vector<8x16xf32>
    %229 = arith.cmpf oeq, %210, %228 : vector<8x16xf32>
    %230 = arith.extui %229 : vector<8x16xi1> to vector<8x16xi32>
    %231 = arith.sitofp %230 : vector<8x16xi32> to vector<8x16xf32>
    %232 = arith.mulf %231, %222 : vector<8x16xf32>
    %cst_71 = arith.constant dense<0.000000e+00> : vector<8xf32>
    %233 = vector.multi_reduction <add>, %232, %cst_71 [1] : vector<8x16xf32> to vector<8xf32>
    %234 = vector.shape_cast %233 : vector<8xf32> to vector<8x1xf32>
    %235 = vector.broadcast %234 : vector<8x1xf32> to vector<8x16xf32>
    %236 = arith.subf %179, %235 : vector<8x16xf32>
    %cst_72 = arith.constant 0.000000e+00 : f32
    %237 = vector.broadcast %cst_72 : f32 to vector<8x16xf32>
    %238 = arith.maximumf %236, %237 : vector<8x16xf32>
    %239 = arith.mulf %238, %238 : vector<8x16xf32>
    %cst_73 = arith.constant 1.000000e-15 : f32
    %240 = vector.broadcast %cst_73 : f32 to vector<8x16xf32>
    %241 = arith.addf %239, %240 : vector<8x16xf32>
    %242 = math.log %241 : vector<8x16xf32>
    %243 = arith.mulf %239, %242 : vector<8x16xf32>
    %244 = vector.shape_cast %243 : vector<8x16xf32> to vector<1x8x16xf32>
    %cst_74 = arith.constant dense<0.000000e+00> : vector<1xf32>
    %245 = vector.multi_reduction <add>, %244, %cst_74 [1, 2] : vector<1x8x16xf32> to vector<1xf32>
    %246 = vector.shape_cast %245 : vector<1xf32> to vector<1x1x1xf32>
    %247 = vector.extract %246[0, 0, 0] : f32 from vector<1x1x1xf32>
    %cst_75 = arith.constant 1.250000e-01 : f32
    %248 = arith.mulf %247, %cst_75 : f32
    %c0_76 = arith.constant 0 : index
    %c0_77 = arith.constant 0 : index
    %249 = memref.load %arg4[%c0_76, %c0_77] : memref<1x1xf32, #tpu.memory_space<smem>>
    memref.store %248, %arg4[%c0_76, %c0_77] : memref<1x1xf32, #tpu.memory_space<smem>>
    %250 = vector.extract_strided_slice %25 {offsets = [0, 0], sizes = [8, 16], strides = [1, 1]} : vector<8x128xf32> to vector<8x16xf32>
    %251 = arith.mulf %239, %250 : vector<8x16xf32>
    %cst_78 = arith.constant 0.000000e+00 : f32
    %252 = vector.broadcast %cst_78 : f32 to vector<8x112xf32>
    %253 = tpu.concatenate %251, %252 in 1 : vector<8x16xf32>, vector<8x112xf32> -> vector<8x128xf32>
    %254 = arith.truncf %253 : vector<8x128xf32> to vector<8x128xbf16>
    %c0_79 = arith.constant 0 : index
    %c0_80 = arith.constant 0 : index
    %c0_81 = arith.constant 0 : index
    %255 = vector.load %arg1[%c0_79, %c0_80, %c0_81] : memref<6x128x256xbf16, #tpu.memory_space<vmem>>, vector<1x128x256xbf16>
    %256 = vector.shape_cast %255 : vector<1x128x256xbf16> to vector<128x256xbf16>
    %cst_82 = arith.constant dense<0.000000e+00> : vector<8x256xf32>
    %257 = tpu.matmul %254, %256, %cst_82 {dimension_numbers = #tpu.dot_dimension_numbers<[1], [0], [0], [1], [0, 0, 1, 1], [], []>} : vector<8x128xbf16>, vector<128x256xbf16>, vector<8x256xf32> -> vector<8x256xf32>
    %c10 = arith.constant 10 : index
    %c0_83 = arith.constant 0 : index
    %258 = vector.load %arg2[%c10, %c0_83] : memref<16x256xf32, #tpu.memory_space<vmem>>, vector<1x256xf32>
    %c11 = arith.constant 11 : index
    %c0_84 = arith.constant 0 : index
    %259 = vector.load %arg2[%c11, %c0_84] : memref<16x256xf32, #tpu.memory_space<vmem>>, vector<1x256xf32>
    %cst_85 = arith.constant dense<0.000000e+00> : vector<256xf32>
    %260 = vector.multi_reduction <add>, %257, %cst_85 [0] : vector<8x256xf32> to vector<256xf32>
    %261 = vector.shape_cast %260 : vector<256xf32> to vector<1x256xf32>
    %262 = arith.mulf %257, %257 : vector<8x256xf32>
    %cst_86 = arith.constant dense<0.000000e+00> : vector<256xf32>
    %263 = vector.multi_reduction <add>, %262, %cst_86 [0] : vector<8x256xf32> to vector<256xf32>
    %264 = vector.shape_cast %263 : vector<256xf32> to vector<1x256xf32>
    %cst_87 = arith.constant 1.250000e-01 : f32
    %265 = vector.broadcast %cst_87 : f32 to vector<1x256xf32>
    %266 = arith.mulf %261, %265 : vector<1x256xf32>
    %cst_88 = arith.constant 1.250000e-01 : f32
    %267 = vector.broadcast %cst_88 : f32 to vector<1x256xf32>
    %268 = arith.mulf %264, %267 : vector<1x256xf32>
    %269 = arith.mulf %266, %266 : vector<1x256xf32>
    %270 = arith.subf %268, %269 : vector<1x256xf32>
    %cst_89 = arith.constant 0.000000e+00 : f32
    %271 = vector.broadcast %cst_89 : f32 to vector<1x256xf32>
    %272 = arith.maximumf %270, %271 : vector<1x256xf32>
    %cst_90 = arith.constant 9.99999974E-6 : f32
    %273 = vector.broadcast %cst_90 : f32 to vector<1x256xf32>
    %274 = arith.addf %272, %273 : vector<1x256xf32>
    %275 = math.rsqrt %274 : vector<1x256xf32>
    %276 = arith.mulf %275, %258 : vector<1x256xf32>
    %277 = arith.mulf %266, %276 : vector<1x256xf32>
    %278 = arith.subf %259, %277 : vector<1x256xf32>
    %279 = vector.broadcast %276 : vector<1x256xf32> to vector<8x256xf32>
    %280 = arith.mulf %257, %279 : vector<8x256xf32>
    %281 = vector.broadcast %278 : vector<1x256xf32> to vector<8x256xf32>
    %282 = arith.addf %280, %281 : vector<8x256xf32>
    %283 = vector.extract_strided_slice %282 {offsets = [0, 0], sizes = [8, 128], strides = [1, 1]} : vector<8x256xf32> to vector<8x128xf32>
    %284 = vector.extract_strided_slice %282 {offsets = [0, 128], sizes = [8, 128], strides = [1, 1]} : vector<8x256xf32> to vector<8x128xf32>
    %285 = arith.negf %284 : vector<8x128xf32>
    %286 = math.exp %285 : vector<8x128xf32>
    %cst_91 = arith.constant 1.000000e+00 : f32
    %287 = vector.broadcast %cst_91 : f32 to vector<8x128xf32>
    %288 = arith.addf %287, %286 : vector<8x128xf32>
    %289 = arith.divf %287, %288 : vector<8x128xf32>
    %290 = arith.mulf %283, %289 : vector<8x128xf32>
    %291 = arith.truncf %290 : vector<8x128xf32> to vector<8x128xbf16>
    %c3_92 = arith.constant 3 : index
    %c0_93 = arith.constant 0 : index
    %c0_94 = arith.constant 0 : index
    %292 = vector.load %arg1[%c3_92, %c0_93, %c0_94] : memref<6x128x256xbf16, #tpu.memory_space<vmem>>, vector<1x128x256xbf16>
    %293 = vector.shape_cast %292 : vector<1x128x256xbf16> to vector<128x256xbf16>
    %cst_95 = arith.constant dense<0.000000e+00> : vector<8x256xf32>
    %294 = tpu.matmul %291, %293, %cst_95 {dimension_numbers = #tpu.dot_dimension_numbers<[1], [0], [0], [1], [0, 0, 1, 1], [], []>} : vector<8x128xbf16>, vector<128x256xbf16>, vector<8x256xf32> -> vector<8x256xf32>
    %c12 = arith.constant 12 : index
    %c0_96 = arith.constant 0 : index
    %295 = vector.load %arg2[%c12, %c0_96] : memref<16x256xf32, #tpu.memory_space<vmem>>, vector<1x256xf32>
    %c13 = arith.constant 13 : index
    %c0_97 = arith.constant 0 : index
    %296 = vector.load %arg2[%c13, %c0_97] : memref<16x256xf32, #tpu.memory_space<vmem>>, vector<1x256xf32>
    %cst_98 = arith.constant dense<0.000000e+00> : vector<256xf32>
    %297 = vector.multi_reduction <add>, %294, %cst_98 [0] : vector<8x256xf32> to vector<256xf32>
    %298 = vector.shape_cast %297 : vector<256xf32> to vector<1x256xf32>
    %299 = arith.mulf %294, %294 : vector<8x256xf32>
    %cst_99 = arith.constant dense<0.000000e+00> : vector<256xf32>
    %300 = vector.multi_reduction <add>, %299, %cst_99 [0] : vector<8x256xf32> to vector<256xf32>
    %301 = vector.shape_cast %300 : vector<256xf32> to vector<1x256xf32>
    %cst_100 = arith.constant 1.250000e-01 : f32
    %302 = vector.broadcast %cst_100 : f32 to vector<1x256xf32>
    %303 = arith.mulf %298, %302 : vector<1x256xf32>
    %cst_101 = arith.constant 1.250000e-01 : f32
    %304 = vector.broadcast %cst_101 : f32 to vector<1x256xf32>
    %305 = arith.mulf %301, %304 : vector<1x256xf32>
    %306 = arith.mulf %303, %303 : vector<1x256xf32>
    %307 = arith.subf %305, %306 : vector<1x256xf32>
    %cst_102 = arith.constant 0.000000e+00 : f32
    %308 = vector.broadcast %cst_102 : f32 to vector<1x256xf32>
    %309 = arith.maximumf %307, %308 : vector<1x256xf32>
    %cst_103 = arith.constant 9.99999974E-6 : f32
    %310 = vector.broadcast %cst_103 : f32 to vector<1x256xf32>
    %311 = arith.addf %309, %310 : vector<1x256xf32>
    %312 = math.rsqrt %311 : vector<1x256xf32>
    %313 = arith.mulf %312, %295 : vector<1x256xf32>
    %314 = arith.mulf %303, %313 : vector<1x256xf32>
    %315 = arith.subf %296, %314 : vector<1x256xf32>
    %316 = vector.broadcast %313 : vector<1x256xf32> to vector<8x256xf32>
    %317 = arith.mulf %294, %316 : vector<8x256xf32>
    %318 = vector.broadcast %315 : vector<1x256xf32> to vector<8x256xf32>
    %319 = arith.addf %317, %318 : vector<8x256xf32>
    %320 = vector.extract_strided_slice %319 {offsets = [0, 0], sizes = [8, 128], strides = [1, 1]} : vector<8x256xf32> to vector<8x128xf32>
    %321 = vector.extract_strided_slice %319 {offsets = [0, 128], sizes = [8, 128], strides = [1, 1]} : vector<8x256xf32> to vector<8x128xf32>
    %322 = arith.negf %321 : vector<8x128xf32>
    %323 = math.exp %322 : vector<8x128xf32>
    %cst_104 = arith.constant 1.000000e+00 : f32
    %324 = vector.broadcast %cst_104 : f32 to vector<8x128xf32>
    %325 = arith.addf %324, %323 : vector<8x128xf32>
    %326 = arith.divf %324, %325 : vector<8x128xf32>
    %327 = arith.mulf %320, %326 : vector<8x128xf32>
    %328 = arith.addf %290, %327 : vector<8x128xf32>
    %cst_105 = arith.constant 0.707106769 : f32
    %329 = vector.broadcast %cst_105 : f32 to vector<8x128xf32>
    %330 = arith.mulf %328, %329 : vector<8x128xf32>
    %331 = arith.truncf %330 : vector<8x128xf32> to vector<8x128xbf16>
    %c4_106 = arith.constant 4 : index
    %c0_107 = arith.constant 0 : index
    %c0_108 = arith.constant 0 : index
    %332 = vector.load %arg1[%c4_106, %c0_107, %c0_108] : memref<6x128x256xbf16, #tpu.memory_space<vmem>>, vector<1x128x256xbf16>
    %333 = vector.shape_cast %332 : vector<1x128x256xbf16> to vector<128x256xbf16>
    %cst_109 = arith.constant dense<0.000000e+00> : vector<8x256xf32>
    %334 = tpu.matmul %331, %333, %cst_109 {dimension_numbers = #tpu.dot_dimension_numbers<[1], [0], [0], [1], [0, 0, 1, 1], [], []>} : vector<8x128xbf16>, vector<128x256xbf16>, vector<8x256xf32> -> vector<8x256xf32>
    %c14 = arith.constant 14 : index
    %c0_110 = arith.constant 0 : index
    %335 = vector.load %arg2[%c14, %c0_110] : memref<16x256xf32, #tpu.memory_space<vmem>>, vector<1x256xf32>
    %c15 = arith.constant 15 : index
    %c0_111 = arith.constant 0 : index
    %336 = vector.load %arg2[%c15, %c0_111] : memref<16x256xf32, #tpu.memory_space<vmem>>, vector<1x256xf32>
    %cst_112 = arith.constant dense<0.000000e+00> : vector<256xf32>
    %337 = vector.multi_reduction <add>, %334, %cst_112 [0] : vector<8x256xf32> to vector<256xf32>
    %338 = vector.shape_cast %337 : vector<256xf32> to vector<1x256xf32>
    %339 = arith.mulf %334, %334 : vector<8x256xf32>
    %cst_113 = arith.constant dense<0.000000e+00> : vector<256xf32>
    %340 = vector.multi_reduction <add>, %339, %cst_113 [0] : vector<8x256xf32> to vector<256xf32>
    %341 = vector.shape_cast %340 : vector<256xf32> to vector<1x256xf32>
    %cst_114 = arith.constant 1.250000e-01 : f32
    %342 = vector.broadcast %cst_114 : f32 to vector<1x256xf32>
    %343 = arith.mulf %338, %342 : vector<1x256xf32>
    %cst_115 = arith.constant 1.250000e-01 : f32
    %344 = vector.broadcast %cst_115 : f32 to vector<1x256xf32>
    %345 = arith.mulf %341, %344 : vector<1x256xf32>
    %346 = arith.mulf %343, %343 : vector<1x256xf32>
    %347 = arith.subf %345, %346 : vector<1x256xf32>
    %cst_116 = arith.constant 0.000000e+00 : f32
    %348 = vector.broadcast %cst_116 : f32 to vector<1x256xf32>
    %349 = arith.maximumf %347, %348 : vector<1x256xf32>
    %cst_117 = arith.constant 9.99999974E-6 : f32
    %350 = vector.broadcast %cst_117 : f32 to vector<1x256xf32>
    %351 = arith.addf %349, %350 : vector<1x256xf32>
    %352 = math.rsqrt %351 : vector<1x256xf32>
    %353 = arith.mulf %352, %335 : vector<1x256xf32>
    %354 = arith.mulf %343, %353 : vector<1x256xf32>
    %355 = arith.subf %336, %354 : vector<1x256xf32>
    %356 = vector.broadcast %353 : vector<1x256xf32> to vector<8x256xf32>
    %357 = arith.mulf %334, %356 : vector<8x256xf32>
    %358 = vector.broadcast %355 : vector<1x256xf32> to vector<8x256xf32>
    %359 = arith.addf %357, %358 : vector<8x256xf32>
    %360 = vector.extract_strided_slice %359 {offsets = [0, 0], sizes = [8, 128], strides = [1, 1]} : vector<8x256xf32> to vector<8x128xf32>
    %361 = vector.extract_strided_slice %359 {offsets = [0, 128], sizes = [8, 128], strides = [1, 1]} : vector<8x256xf32> to vector<8x128xf32>
    %362 = arith.negf %361 : vector<8x128xf32>
    %363 = math.exp %362 : vector<8x128xf32>
    %cst_118 = arith.constant 1.000000e+00 : f32
    %364 = vector.broadcast %cst_118 : f32 to vector<8x128xf32>
    %365 = arith.addf %364, %363 : vector<8x128xf32>
    %366 = arith.divf %364, %365 : vector<8x128xf32>
    %367 = arith.mulf %360, %366 : vector<8x128xf32>
    %368 = arith.addf %330, %367 : vector<8x128xf32>
    %cst_119 = arith.constant 0.707106769 : f32
    %369 = vector.broadcast %cst_119 : f32 to vector<8x128xf32>
    %370 = arith.mulf %368, %369 : vector<8x128xf32>
    %cst_120 = arith.constant 0.000000e+00 : f32
    %371 = vector.broadcast %cst_120 : f32 to vector<8x128xf32>
    %372 = arith.cmpf ogt, %370, %371 : vector<8x128xf32>
    %cst_121 = arith.constant 2.500000e-01 : f32
    %373 = vector.broadcast %cst_121 : f32 to vector<8x128xf32>
    %374 = arith.mulf %373, %370 : vector<8x128xf32>
    %375 = arith.select %372, %370, %374 : vector<8x128xi1>, vector<8x128xf32>
    %376 = arith.truncf %375 : vector<8x128xf32> to vector<8x128xbf16>
    %377 = vector.extract_strided_slice %144 {offsets = [0, 128], sizes = [128, 128], strides = [1, 1]} : vector<128x256xbf16> to vector<128x128xbf16>
    %cst_122 = arith.constant dense<0.000000e+00> : vector<8x128xf32>
    %378 = tpu.matmul %376, %377, %cst_122 {dimension_numbers = #tpu.dot_dimension_numbers<[1], [0], [0], [1], [0, 0, 1, 1], [], []>} : vector<8x128xbf16>, vector<128x128xbf16>, vector<8x128xf32> -> vector<8x128xf32>
    %c0_123 = arith.constant 0 : index
    %c0_124 = arith.constant 0 : index
    %379 = vector.load %arg3[%c0_123, %c0_124] : memref<8x128xf32, #tpu.memory_space<vmem>>, vector<8x128xf32>
    tpu.vector_store %arg3[%c0_123, %c0_124], %378 {strides = array<i32>} : memref<8x128xf32, #tpu.memory_space<vmem>>, vector<8x128xf32>,
    return
  }
}

</mosaic_0001>

<bundles_post_ra>
// kernel: tpu_custom_call.1
= control target key start
LH: loop header
LB: loop body
LE: loop exit
PB: predicated region body
PF: predicated region fallthrough
CT: control target
= control target key end

     0   :  { %10 = vsyncpa [#allocation3], 0  ;;  %s6094_s0 = inlined_call_operand.hbm [shape: f32[8,128], index: 0, kind: input, shape index: {}]   ;;  %s6095_s1 = inlined_call_operand.hbm [shape: bf16[6,128,256], index: 1, kind: input, shape index: {}]   ;;  %s6096_s2 = inlined_call_operand.hbm [shape: f32[16,256], index: 2, kind: input, shape index: {}]   ;;  %s6097_s3 = inlined_call_operand.hbm [shape: f32[8,128], index: 3, kind: output, shape index: {0}]   ;;  %s6098_s4 = inlined_call_operand.hbm [shape: f32[1,1], index: 4, kind: output, shape index: {1}]  }
   0x1   :  { %11 = vsyncpa [#allocation7], 0 }
   0x2   :  { %12 = vsyncpa [#allocation4], 0  ;;  %s29_s17 = sshll.u32 %s6095_s1, 4  ;;  %s30_s17 = int_to_ptr.hbm [resolvable:$true] %s29_s17 }
   0x3   :  { %13 = vsyncpa [#allocation5], 0  ;;  %s4274_s18 = smov [#allocation6]   ;;  %s19_s22 = sshll.u32 %s6094_s0, 4  ;;  %s20_s22 = int_to_ptr.hbm [resolvable:$true] %s19_s22 }
   0x4   :  { %s31_s19 = sshll.u32 %s4274_s18, 4  ;;  %s4275_s23 = smov 128   ;;  %s32_s19 = int_to_ptr.vmem [resolvable:$true] %s31_s19 }
   0x5   :  { %s4276_s24 = smov 8   ;;  %s4277_s25 = smov [#allocation2]  }
   0x6   :  { %37 = dma.hbm_to_vmem [thread:$0]  %s30_s17, 12288, %s32_s19, [#allocation7], %s4275_s23, %s4275_s23, %s4276_s24  }
   0x7   :  { %s21_s26 = sshll.u32 %s4277_s25, 4  ;;  %s42_s29 = sshll.u32 %s6096_s2, 4  ;;  %s22_s26 = int_to_ptr.vmem [resolvable:$true] %s21_s26  ;;  %s43_s29 = int_to_ptr.hbm [resolvable:$true] %s42_s29 }
   0x8   :  { %24 = dma.hbm_to_vmem [thread:$0]  %s20_s22, 128, %s22_s26, [#allocation3]  }
   0x9   :  { %s4278_s1 = smov [#allocation8]   ;;  %s4279_s5 = smov 256  }
   0xa   :  { %s44_s30 = sshll.u32 %s4278_s1, 4  ;;  %s4280_s6 = smov 16   ;;  %s45_s30 = int_to_ptr.vmem [resolvable:$true] %s44_s30 }
   0xb   :  { %50 = dma.hbm_to_vmem [thread:$0]  %s43_s29, 512, %s45_s30, [#allocation7], %s4279_s5, %s4279_s5, %s4280_s6  }
   0xc   :  { %4266 = dma.done.wait [#allocation3], 128  }
   0xd   :  { %4267 = vsyncadd [#allocation3], 4294967168 }
   0xe   :  { %4268 = dma.done.wait [#allocation7], 12800  }
   0xf   :  { %4269 = vsyncadd [#allocation7], 4294954496  ;;  %v3401_v0 = vld [vmem:[#allocation6 + $0x70] sm:$0xf]  ;;  %v3866_v1 = vld [vmem:[#allocation6 + $0x74] sm:$0xf0] }
  0x10   :  { %v3865_v2 = vld [vmem:[#allocation6 + $0x74] sm:$0xf]  ;;  %v3402_v3 = vor.u32 %v3866_v1, %v3401_v0  ;;  %v3403_v4 = vld [vmem:[#allocation6 + $0x78] sm:$0xf0]  ;;  %v3393_v5 = vld [vmem:[#allocation6 + $0x60] sm:$0xf] }
  0x11   :  { %v3864_v6 = vld [vmem:[#allocation6 + $0x64] sm:$0xf0]  ;;  %v3406_v7 = vor.u32 %v3865_v2, %v3403_v4  ;;  %v3863_v8 = vld [vmem:[#allocation6 + $0x64] sm:$0xf]  ;;  %v3395_v9 = vld [vmem:[#allocation6 + $0x68] sm:$0xf0] }
  0x12   :  { %197 = vmatpush.bf16.msra.mxu0 %v3402_v3  ;;  %v3394_v10 = vor.u32 %v3864_v6, %v3393_v5  ;;  %v3398_v11 = vor.u32 %v3863_v8, %v3395_v9  ;;  %v3385_v12 = vld [vmem:[#allocation6 + $0x50] sm:$0xf]  ;;  %v3862_v13 = vld [vmem:[#allocation6 + $0x54] sm:$0xf0]  ;;  %v3861_v14 = vld [vmem:[#allocation6 + $0x54] sm:$0xf] }
  0x13   :  { %210 = vmatpush.bf16.msra.mxu1 %v3406_v7  ;;  %v3387_v15 = vld [vmem:[#allocation6 + $0x58] sm:$0xf0]  ;;  %v3386_v16 = vor.u32 %v3862_v13, %v3385_v12  ;;  %v3377_v18 = vld [vmem:[#allocation6 + $0x40] sm:$0xf]  ;;  %v3860_v19 = vld [vmem:[#allocation6 + $0x44] sm:$0xf0] }
  0x14   :  { %v3390_v17 = vor.u32 %v3861_v14, %v3387_v15  ;;  %v3859_v20 = vld [vmem:[#allocation6 + $0x44] sm:$0xf]  ;;  %v3379_v21 = vld [vmem:[#allocation6 + $0x48] sm:$0xf0]  ;;  %v4319_v22 = vld [vmem:[#allocation2] sm:$0xff]  ;;  %v3378_v23 = vor.u32 %v3860_v19, %v3377_v18  ;;  %vm297_vm9 = vcmask 1040384  }
  0x15   :  { %v66_v24 = vrot.slane %v4319_v22, 4  ;;  %v72_v25 = vmul.f32 %v4319_v22, %v4319_v22  ;;  %v3382_v26 = vor.u32 %v3859_v20, %v3379_v21  ;;  %v3369_v27 = vld [vmem:[#allocation6 + $0x30] sm:$0xf]  ;;  %v3858_v28 = vld [vmem:[#allocation6 + $0x34] sm:$0xf0]  ;;  %s3326_s9 = sshll.u32 %s6098_s4, 4  ;;  %s3327_s9 = int_to_ptr.hbm [resolvable:$true] %s3326_s9 }
  0x16   :  { %198 = vmatpush.bf16.msra.mxu0 %v3394_v10  ;;  %v3857_v29 = vld [vmem:[#allocation6 + $0x34] sm:$0xf]  ;;  %v3371_v30 = vld [vmem:[#allocation6 + $0x38] sm:$0xf0]  ;;  %v3370_v33 = vor.u32 %v3858_v28, %v3369_v27  ;;  %v3361_v37 = vld [vmem:[#allocation6 + $0x20] sm:$0xf] }
  0x17   :  { %211 = vmatpush.bf16.msra.mxu1 %v3398_v11  ;;  %v67_v31 = vadd.f32 %v66_v24, %v4319_v22  ;;  %v73_v32 = vrot.slane %v72_v25, 4  ;;  %v3374_v36 = vor.u32 %v3857_v29, %v3371_v30  ;;  %v3856_v38 = vld [vmem:[#allocation6 + $0x24] sm:$0xf0]  ;;  %v3855_v39 = vld [vmem:[#allocation6 + $0x24] sm:$0xf]  ;;  %s4283_s10 = smov [#allocation10]  }
  0x18   :  { %v3363_v40 = vld [vmem:[#allocation6 + $0x28] sm:$0xf0]  ;;  %v3362_v43 = vor.u32 %v3856_v38, %v3361_v37  ;;  %v3353_v47 = vld [vmem:[#allocation6 + $0x10] sm:$0xf]  ;;  %v3854_v48 = vld [vmem:[#allocation6 + $0x14] sm:$0xf0] }
  0x19   :  { %v68_v34 = vrot.slane %v67_v31, 2  ;;  %v74_v35 = vadd.f32 %v73_v32, %v72_v25  ;;  %v3366_v46 = vor.u32 %v3855_v39, %v3363_v40  ;;  %v3853_v49 = vld [vmem:[#allocation6 + $0x14] sm:$0xf]  ;;  %v3355_v50 = vld [vmem:[#allocation6 + $0x18] sm:$0xf0]  ;;  %v3354_v53 = vor.u32 %v3854_v48, %v3353_v47  ;;  %s4284_s11 = smov [#allocation9]  }
  0x1a   :  { %199 = vmatpush.bf16.msra.mxu0 %v3386_v16  ;;  %v3358_v56 = vor.u32 %v3853_v49, %v3355_v50  ;;  %v3345_v57 = vld [vmem:[#allocation6] sm:$0xf]  ;;  %v3852_v58 = vld [vmem:[#allocation6 + $0x4] sm:$0xf0]  ;;  %v3851_v59 = vld [vmem:[#allocation6 + $0x4] sm:$0xf] }
  0x1b   :  { %212 = vmatpush.bf16.msra.mxu1 %v3390_v17  ;;  %v69_v41 = vadd.f32 %v68_v34, %v67_v31  ;;  %v75_v42 = vrot.slane %v74_v35, 2  ;;  %v3347_v60 = vld [vmem:[#allocation6 + $0x8] sm:$0xf0]  ;;  %v3346_v63 = vor.u32 %v3852_v58, %v3345_v57  ;;  %v64_v9 = vld [vmem:[#allocation8] ss:$0 sm:$0xff]  ;;  %s3315_s12 = sshll.u32 %s4284_s11, 4  ;;  %s3316_s12 = int_to_ptr.vmem [resolvable:$true] %s3315_s12 }
  0x1c   :  { %v3350_v1 = vor.u32 %v3851_v59, %v3347_v60  ;;  %v65_v13 = vld [vmem:[#allocation8 + $0x1] ss:$0 sm:$0xff]  ;;  %v3466_v60 = vld [vmem:[#allocation6 + $0xf0] sm:$0xf]  ;;  %s3317_s15 = sshll.u32 %s6097_s3, 4  ;;  %s3318_s15 = int_to_ptr.hbm [resolvable:$true] %s3317_s15 }
  0x1d   :  { %v70_v44 = vrot.slane %v69_v41, 1  ;;  %v76_v45 = vadd.f32 %v75_v42, %v74_v35 }
  0x1e   :  { %200 = vmatpush.bf16.msra.mxu0 %v3378_v23 }
  0x1f   :  { %213 = vmatpush.bf16.msra.mxu1 %v3382_v26  ;;  %v71_v51 = vadd.f32 %v70_v44, %v69_v41  ;;  %v77_v52 = vrot.slane %v76_v45, 1 }
  0x21   :  { %v78_v54 = vadd.f32 %v77_v52, %v76_v45  ;;  %v79_v55 = vmul.f32 0.125, %v71_v51 }
  0x22   :  { %201 = vmatpush.bf16.msra.mxu0 %v3370_v33 }
  0x23   :  { %214 = vmatpush.bf16.msra.mxu1 %v3374_v36  ;;  %v80_v61 = vmul.f32 0.125, %v78_v54  ;;  %v81_v62 = vmul.f32 %v79_v55, %v79_v55 }
  0x25   :  { %v82_v0 = vsub.f32 %v80_v61, %v81_v62  ;;  %v3882_v61 = vld [vmem:[#allocation6 + $0xf4] sm:$0xf0] }
  0x26   :  { %202 = vmatpush.bf16.msra.mxu0 %v3362_v43 }
  0x27   :  { %215 = vmatpush.bf16.msra.mxu1 %v3366_v46  ;;  %v83_v2 = vmax.f32 %v82_v0, 0.0  ;;  %v3881_v0 = vld [vmem:[#allocation6 + $0xf4] sm:$0xf] }
  0x29   :  { %v84_v3 = vadd.f32 1e-05, %v83_v2 }
  0x2a   :  { %203 = vmatpush.bf16.msra.mxu0 %v3354_v53 }
  0x2b   :  { %216 = vmatpush.bf16.msra.mxu1 %v3358_v56  ;;  %4040 = vrsqrt.f32 %v84_v3  ;;  %vm91_vm0 = vweird.f32 %v84_v3 }
  0x2e   :  { %204 = vmatpush.bf16.msra.mxu0 %v3346_v63  ;;  %v3467_v63 = vor.u32 %v3882_v61, %v3466_v60  ;;  %v3420_v60 = vld [vmem:[#allocation6 + $0x98] sm:$0xf0]  ;;  %v226_v61 = vld [vmem:[#allocation8 + $0x5] ss:$8 sm:$0x3] }
  0x2f   :  { %217 = vmatpush.bf16.msra.mxu1 %v3350_v1  ;;  %v3468_v1 = vld [vmem:[#allocation6 + $0xf8] sm:$0xf0] }
  0x30   :  { %v3471_v2 = vor.u32 %v3881_v0, %v3468_v1  ;;  %430 = vmatpush.bf16.msra.mxu2 %v3467_v63  ;;  %v3410_v1 = vld [vmem:[#allocation6 + $0x80] sm:$0xf] }
  0x31   :  { %v4041_v4 = vpop.eup %4040 }
  0x32   :  { %v86_v5 = vmul.f32 %v4041_v4, %v84_v3  ;;  %vm92_vm1 = vweird.f32 %v4041_v4  ;;  %443 = vmatpush.bf16.msra.mxu3 %v3471_v2  ;;  %v3458_v3 = vld [vmem:[#allocation6 + $0xe0] sm:$0xf]  ;;  %v3868_v2 = vld [vmem:[#allocation6 + $0x84] sm:$0xf0] }
  0x33   :  { %vm93_vm2 = vmor %vm91_vm0, %vm92_vm1 }
  0x34   :  { %v87_v6 = vmul.f32 %v4041_v4, %v86_v5  ;;  %v3879_v5 = vld [vmem:[#allocation6 + $0xe4] sm:$0xf] }
  0x36   :  { %v88_v7 = vmul.f32 0.5, %v87_v6 }
  0x38   :  { %v89_v8 = vsub.f32 1.5, %v88_v7  ;;  %v3460_v7 = vld [vmem:[#allocation6 + $0xe8] sm:$0xf0] }
  0x3a   :  { %v90_v10 = vmul.f32 %v4041_v4, %v89_v8  ;;  %v3463_v8 = vor.u32 %v3879_v5, %v3460_v7  ;;  %v3867_v5 = vld [vmem:[#allocation6 + $0x84] sm:$0xf] }
  0x3c   :  { %v94_v11 = vsel %vm93_vm2, %v4041_v4, %v90_v10  ;;  %v3880_v4 = vld [vmem:[#allocation6 + $0xe4] sm:$0xf0]  ;;  %444 = vmatpush.bf16.msra.mxu3 %v3463_v8  ;;  %v3450_v10 = vld [vmem:[#allocation6 + $0xd0] sm:$0xf] }
  0x3d   :  { %v95_v12 = vmul.f32 %v94_v11, %v64_v9  ;;  %v3459_v6 = vor.u32 %v3880_v4, %v3458_v3  ;;  %v3878_v11 = vld [vmem:[#allocation6 + $0xd4] sm:$0xf0] }
  0x3f   :  { %v96_v14 = vmul.f32 %v95_v12, %v79_v55  ;;  %v98_v15 = vmul.f32 %v95_v12, %v4319_v22  ;;  %431 = vmatpush.bf16.msra.mxu2 %v3459_v6  ;;  %v3877_v12 = vld [vmem:[#allocation6 + $0xd4] sm:$0xf]  ;;  %v3412_v6 = vld [vmem:[#allocation6 + $0x88] sm:$0xf0] }
  0x41   :  { %v97_v16 = vsub.f32 %v65_v13, %v96_v14 }
  0x43   :  { %v4326_v17 = vadd.f32 %v98_v15, %v97_v16  ;;  %v3451_v15 = vor.u32 %v3878_v11, %v3450_v10  ;;  %v3452_v16 = vld [vmem:[#allocation6 + $0xd8] sm:$0xf0] }
  0x45   :  { %6133 = vst [vmem:[#allocation15_spill] sm:$0xff] %v4326_v17  ;;  %v100_v18 = vpack.c.bf16 %v4326_v17, %v4326_v17  ;;  %432 = vmatpush.bf16.msra.mxu2 %v3451_v15 }
  0x47   :  { %205 = vmatmul.bf16.vlgmr.msra.gmra.mxu0 %v100_v18  ;;  %218 = vmatmul.bf16.vlgmr.msra.gmra.mxu1 %v100_v18 }
  0xc4   :  { %v4330_v19 = vpop.f32.mrf.mxu0  ;;  %v4332_v20 = vpop.f32.mrf.mxu1 }
  0xc5   :  { %v227_v21 = vrot.slane %v4330_v19, 4  ;;  %v239_v23 = vmul.f32 %v4330_v19, %v4330_v19  ;;  %v233_v24 = vrot.slane %v4332_v20, 4  ;;  %v240_v22 = vmul.f32 %v4332_v20, %v4332_v20 }
  0xc7   :  { %v228_v25 = vadd.f32 %v227_v21, %v4330_v19  ;;  %v241_v26 = vrot.slane %v239_v23, 4  ;;  %v234_v27 = vadd.f32 %v233_v24, %v4332_v20  ;;  %v247_v28 = vrot.slane %v240_v22, 4  ;;  %v224_v24 = vld [vmem:[#allocation8 + $0x4] ss:$8 sm:$0x3] }
  0xc8   :  { %v3455_v21 = vor.u32 %v3877_v12, %v3452_v16 }
  0xc9   :  { %v229_v29 = vrot.slane %v228_v25, 2  ;;  %v242_v30 = vadd.f32 %v241_v26, %v239_v23  ;;  %v235_v31 = vrot.slane %v234_v27, 2  ;;  %v248_v32 = vadd.f32 %v247_v28, %v240_v22  ;;  %v3876_v26 = vld [vmem:[#allocation6 + $0xc4] sm:$0xf0] }
  0xca   :  { %445 = vmatpush.bf16.msra.mxu3 %v3455_v21 }
  0xcb   :  { %v230_v33 = vadd.f32 %v229_v29, %v228_v25  ;;  %v243_v34 = vrot.slane %v242_v30, 2  ;;  %v236_v35 = vadd.f32 %v235_v31, %v234_v27  ;;  %v249_v36 = vrot.slane %v248_v32, 2  ;;  %v3442_v25 = vld [vmem:[#allocation6 + $0xc0] sm:$0xf]  ;;  %v3875_v27 = vld [vmem:[#allocation6 + $0xc4] sm:$0xf] }
  0xcc   :  { %v208_v37 = vpop.f32.mrf.mxu0  ;;  %v221_v38 = vpop.f32.mrf.mxu1  ;;  %v3443_v29 = vor.u32 %v3876_v26, %v3442_v25  ;;  %v3434_v31 = vld [vmem:[#allocation6 + $0xb0] sm:$0xf] }
  0xcd   :  { %v231_v39 = vrot.slane %v230_v33, 1  ;;  %v244_v40 = vadd.f32 %v243_v34, %v242_v30  ;;  %v237_v41 = vrot.slane %v236_v35, 1  ;;  %v250_v42 = vadd.f32 %v249_v36, %v248_v32  ;;  %v3444_v30 = vld [vmem:[#allocation6 + $0xc8] sm:$0xf0]  ;;  %v3874_v34 = vld [vmem:[#allocation6 + $0xb4] sm:$0xf0] }
  0xce   :  { %433 = vmatpush.bf16.msra.mxu2 %v3443_v29  ;;  %v3435_v37 = vor.u32 %v3874_v34, %v3434_v31  ;;  %v3436_v38 = vld [vmem:[#allocation6 + $0xb8] sm:$0xf0] }
  0xcf   :  { %v232_v43 = vadd.f32 %v231_v39, %v230_v33  ;;  %v245_v44 = vrot.slane %v244_v40, 1  ;;  %v238_v45 = vadd.f32 %v237_v41, %v236_v35  ;;  %v251_v46 = vrot.slane %v250_v42, 1  ;;  %v3873_v35 = vld [vmem:[#allocation6 + $0xb4] sm:$0xf]  ;;  %v3426_v41 = vld [vmem:[#allocation6 + $0xa0] sm:$0xf] }
  0xd0   :  { %v3447_v33 = vor.u32 %v3875_v27, %v3444_v30 }
  0xd1   :  { %v246_v47 = vadd.f32 %v245_v44, %v244_v40  ;;  %v4342_v48 = vmul.f32 0.125, %v232_v43  ;;  %v4344_v49 = vmul.f32 0.125, %v238_v45  ;;  %v252_v50 = vadd.f32 %v251_v46, %v250_v42  ;;  %v3872_v42 = vld [vmem:[#allocation6 + $0xa4] sm:$0xf0]  ;;  %v3871_v46 = vld [vmem:[#allocation6 + $0xa4] sm:$0xf] }
  0xd2   :  { %446 = vmatpush.bf16.msra.mxu3 %v3447_v33  ;;  %v3439_v40 = vor.u32 %v3873_v35, %v3436_v38  ;;  %v286_v44 = vperm.slane %v224_v24, 0  ;;  %v287_v45 = vperm.slane %v224_v24, 1  ;;  %434 = vmatpush.bf16.msra.mxu2 %v3435_v37 }
  0xd3   :  { %v255_v51 = vmul.f32 0.125, %v246_v47  ;;  %v257_v52 = vmul.f32 %v4342_v48, %v4342_v48  ;;  %v258_v53 = vmul.f32 %v4344_v49, %v4344_v49  ;;  %v256_v54 = vmul.f32 0.125, %v252_v50  ;;  %v3428_v47 = vld [vmem:[#allocation6 + $0xa8] sm:$0xf0] }
  0xd5   :  { %v259_v55 = vsub.f32 %v255_v51, %v257_v52  ;;  %v260_v56 = vsub.f32 %v256_v54, %v258_v53  ;;  %v3427_v52 = vor.u32 %v3872_v42, %v3426_v41  ;;  %v3431_v54 = vor.u32 %v3871_v46, %v3428_v47 }
  0xd6   :  { %447 = vmatpush.bf16.msra.mxu3 %v3439_v40 }
  0xd7   :  { %v261_v57 = vmax.f32 %v259_v55, 0.0  ;;  %v262_v58 = vmax.f32 %v260_v56, 0.0  ;;  %v3418_v55 = vld [vmem:[#allocation6 + $0x90] sm:$0xf]  ;;  %v3870_v56 = vld [vmem:[#allocation6 + $0x94] sm:$0xf0]  ;;  %435 = vmatpush.bf16.msra.mxu2 %v3427_v52 }
  0xd8   :  { %v3419_v0 = vor.u32 %v3870_v56, %v3418_v55 }
  0xd9   :  { %v4350_v59 = vadd.f32 1e-05, %v261_v57  ;;  %v4352_v62 = vadd.f32 1e-05, %v262_v58 }
  0xda   :  { %448 = vmatpush.bf16.msra.mxu3 %v3431_v54 }
  0xdb   :  { %4042 = vrsqrt.f32 %v4350_v59  ;;  %vm271_vm5 = vweird.f32 %v4350_v59  ;;  %vm281_vm7 = vweird.f32 %v4352_v62  ;;  %436 = vmatpush.bf16.msra.mxu2 %v3419_v0 }
  0xdc   :  { %4044 = vrsqrt.f32 %v4352_v62 }
  0xe1   :  { %v4043_v9 = vpop.eup %4042 }
  0xe2   :  { %v4045_v13 = vpop.eup %4044  ;;  %v266_v14 = vmul.f32 %v4043_v9, %v4350_v59  ;;  %vm272_vm3 = vweird.f32 %v4043_v9  ;;  %v3869_v59 = vld [vmem:[#allocation6 + $0x94] sm:$0xf] }
  0xe3   :  { %v276_v18 = vmul.f32 %v4045_v13, %v4352_v62  ;;  %vm282_vm4 = vweird.f32 %v4045_v13  ;;  %vm273_vm6 = vmor %vm271_vm5, %vm272_vm3  ;;  %v3423_v62 = vor.u32 %v3869_v59, %v3420_v60 }
  0xe4   :  { %v267_v23 = vmul.f32 %v4043_v9, %v266_v14  ;;  %vm283_vm8 = vmor %vm281_vm7, %vm282_vm4 }
  0xe5   :  { %v277_v22 = vmul.f32 %v4045_v13, %v276_v18  ;;  %449 = vmatpush.bf16.msra.mxu3 %v3423_v62 }
  0xe6   :  { %v268_v28 = vmul.f32 0.5, %v267_v23 }
  0xe7   :  { %v278_v32 = vmul.f32 0.5, %v277_v22 }
  0xe8   :  { %v269_v36 = vsub.f32 1.5, %v268_v28 }
  0xe9   :  { %v279_v39 = vsub.f32 1.5, %v278_v32 }
  0xea   :  { %v270_v43 = vmul.f32 %v4043_v9, %v269_v36 }
  0xeb   :  { %v280_v50 = vmul.f32 %v4045_v13, %v279_v39 }
  0xec   :  { %v274_v51 = vsel %vm273_vm6, %v4043_v9, %v270_v43  ;;  %v3411_v9 = vor.u32 %v3868_v2, %v3410_v1 }
  0xed   :  { %v284_v53 = vsel %vm283_vm8, %v4045_v13, %v280_v50  ;;  %v290_v57 = vmul.f32 %v286_v44, %v274_v51 }
  0xee   :  { %v291_v58 = vmul.f32 %v287_v45, %v284_v53  ;;  %437 = vmatpush.bf16.msra.mxu2 %v3411_v9 }
  0xef   :  { %v292_v3 = vmul.f32 %v290_v57, %v4342_v48  ;;  %v301_v21 = vperm.slane %v290_v57, 0 }
  0xf0   :  { %v293_v63 = vmul.f32 %v291_v58, %v4344_v49  ;;  %v302_v7 = vperm.slane %v291_v58, 0  ;;  %v3415_v49 = vor.u32 %v3867_v5, %v3412_v6 }
  0xf2   :  { %v296_v4 = vrot.slane %v293_v63, 7  ;;  %v304_v11 = vmul.f32 %v302_v7, %v4332_v20  ;;  %450 = vmatpush.bf16.msra.mxu3 %v3415_v49  ;;  %v303_v20 = vmul.f32 %v301_v21, %v4330_v19  ;;  %v3523_v21 = vld [vmem:[#allocation6 + $0x160] sm:$0xf] }
  0xf4   :  { %v298_v8 = vsel %vm297_vm9, %v292_v3, %v296_v4 }
  0xf5   :  { %v300_v10 = vsub.f32 %v226_v61, %v298_v8 }
  0xf7   :  { %v307_v12 = vperm.slane %v300_v10, 1  ;;  %v306_v22 = vperm.slane %v300_v10, 0 }
  0xf9   :  { %v311_v13 = vadd.f32 %v307_v12, %v304_v11  ;;  %v310_v29 = vadd.f32 %v306_v22, %v303_v20  ;;  %v3531_v12 = vld [vmem:[#allocation6 + $0x170] sm:$0xf]  ;;  %v3525_v20 = vld [vmem:[#allocation6 + $0x168] sm:$0xf0] }
  0xfb   :  { %v3407_v14 = vmul.f32 -1.442695, %v311_v13  ;;  %v3898_v13 = vld [vmem:[#allocation6 + $0x174] sm:$0xf0] }
  0xfd   :  { %4046 = vpow2.f32 %v3407_v14  ;;  %v3897_v14 = vld [vmem:[#allocation6 + $0x174] sm:$0xf] }
 0x103   :  { %v4047_v48 = vpop.eup %4046 }
 0x104   :  { %v315_v15 = vadd.f32 1.0, %v4047_v48  ;;  %v3532_v48 = vor.u32 %v3898_v13, %v3531_v12  ;;  %v3886_v12 = vld [vmem:[#allocation6 + $0x114] sm:$0xf0] }
 0x106   :  { %4048 = vrcp.f32 %v315_v15  ;;  %v327_v24 = vand.u32 2147483648, %v315_v15  ;;  %v325_v26 = vand.u32 2147483647, %v315_v15  ;;  %vm321_vm11 = vweird.f32 %v315_v15  ;;  %664 = vmatpush.bf16.msrb.mxu0 %v3532_v48  ;;  %v3885_v48 = vld [vmem:[#allocation6 + $0x114] sm:$0xf] }
 0x108   :  { %v328_v28 = vor.u32 1.1754944e-38, %v327_v24  ;;  %vm326_vm13 = vcmp.eq.f32.partialorder %v325_v26, 8.507059e+37  ;;  %v3895_v24 = vld [vmem:[#allocation6 + $0x164] sm:$0xf] }
 0x10c   :  { %v4049_v16 = vpop.eup %4048 }
 0x10d   :  { %v317_v18 = vmul.f32 %v4049_v16, %v315_v15  ;;  %vm322_vm10 = vweird.f32 %v4049_v16  ;;  %v3533_v15 = vld [vmem:[#allocation6 + $0x178] sm:$0xf0] }
 0x10e   :  { %vm323_vm12 = vmor %vm321_vm11, %vm322_vm10 }
 0x10f   :  { %v318_v23 = vsub.f32 1.0, %v317_v18 }
 0x111   :  { %v319_v25 = vmul.f32 %v4049_v16, %v318_v23  ;;  %v3896_v23 = vld [vmem:[#allocation6 + $0x164] sm:$0xf0] }
 0x112   :  { %v3524_v26 = vor.u32 %v3896_v23, %v3523_v21 }
 0x113   :  { %v320_v27 = vadd.f32 %v4049_v16, %v319_v25 }
 0x114   :  { %665 = vmatpush.bf16.msrb.mxu0 %v3524_v26  ;;  %v3477_v26 = vld [vmem:[#allocation6 + $0x108] sm:$0xf0] }
 0x115   :  { %v324_v30 = vsel %vm323_vm12, %v4049_v16, %v320_v27  ;;  %v3536_v16 = vor.u32 %v3897_v14, %v3533_v15  ;;  %v3485_v15 = vld [vmem:[#allocation6 + $0x118] sm:$0xf0] }
 0x116   :  { %v329_v31 = vsel %vm326_vm13, %v328_v28, %v324_v30  ;;  %v3528_v28 = vor.u32 %v3895_v24, %v3525_v20  ;;  %v457_v30 = vld [vmem:[#allocation8 + $0x6] ss:$8 sm:$0x3]  ;;  %v3488_v24 = vor.u32 %v3885_v48, %v3485_v15 }
 0x117   :  { %v4367_v32 = vmul.f32 %v329_v31, %v310_v29  ;;  %677 = vmatpush.bf16.msrb.mxu1 %v3536_v16 }
 0x119   :  { %v332_v33 = vpack.c.bf16 %v4367_v32, %v4367_v32 }
 0x11b   :  { %438 = vmatmul.bf16.vlgmr.msra.gmra.mxu2 %v332_v33  ;;  %451 = vmatmul.bf16.vlgmr.msra.gmra.mxu3 %v332_v33  ;;  %v3515_v33 = vld [vmem:[#allocation6 + $0x150] sm:$0xf] }
 0x11c   :  { %678 = vmatpush.bf16.msrb.mxu1 %v3528_v28 }
 0x19e   :  { %v4371_v34 = vpop.f32.mrf.mxu2  ;;  %v4373_v35 = vpop.f32.mrf.mxu3 }
 0x19f   :  { %v460_v19 = vrot.slane %v4371_v34, 4  ;;  %v472_v36 = vmul.f32 %v4371_v34, %v4371_v34  ;;  %v466_v37 = vrot.slane %v4373_v35, 4  ;;  %v473_v38 = vmul.f32 %v4373_v35, %v4373_v35 }
 0x1a1   :  { %v461_v39 = vadd.f32 %v460_v19, %v4371_v34  ;;  %v474_v40 = vrot.slane %v472_v36, 4  ;;  %v467_v41 = vadd.f32 %v466_v37, %v4373_v35  ;;  %v480_v42 = vrot.slane %v473_v38, 4  ;;  %v3894_v19 = vld [vmem:[#allocation6 + $0x154] sm:$0xf0] }
 0x1a3   :  { %v462_v43 = vrot.slane %v461_v39, 2  ;;  %v475_v44 = vadd.f32 %v474_v40, %v472_v36  ;;  %v468_v45 = vrot.slane %v467_v41, 2  ;;  %v481_v46 = vadd.f32 %v480_v42, %v473_v38  ;;  %v3893_v36 = vld [vmem:[#allocation6 + $0x154] sm:$0xf]  ;;  %v3507_v40 = vld [vmem:[#allocation6 + $0x140] sm:$0xf] }
 0x1a4   :  { %v3516_v38 = vor.u32 %v3894_v19, %v3515_v33 }
 0x1a5   :  { %v463_v47 = vadd.f32 %v462_v43, %v461_v39  ;;  %v476_v50 = vrot.slane %v475_v44, 2  ;;  %v469_v51 = vadd.f32 %v468_v45, %v467_v41  ;;  %v482_v52 = vrot.slane %v481_v46, 2  ;;  %v3517_v39 = vld [vmem:[#allocation6 + $0x158] sm:$0xf0]  ;;  %v3892_v43 = vld [vmem:[#allocation6 + $0x144] sm:$0xf0] }
 0x1a6   :  { %v441_v53 = vpop.f32.mrf.mxu2  ;;  %v454_v54 = vpop.f32.mrf.mxu3  ;;  %v3520_v42 = vor.u32 %v3893_v36, %v3517_v39  ;;  %666 = vmatpush.bf16.msrb.mxu0 %v3516_v38 }
 0x1a7   :  { %v464_v55 = vrot.slane %v463_v47, 1  ;;  %v477_v56 = vadd.f32 %v476_v50, %v475_v44  ;;  %v470_v57 = vrot.slane %v469_v51, 1  ;;  %v483_v58 = vadd.f32 %v482_v52, %v481_v46  ;;  %v3891_v44 = vld [vmem:[#allocation6 + $0x144] sm:$0xf]  ;;  %v3499_v52 = vld [vmem:[#allocation6 + $0x130] sm:$0xf] }
 0x1a8   :  { %v3508_v46 = vor.u32 %v3892_v43, %v3507_v40  ;;  %679 = vmatpush.bf16.msrb.mxu1 %v3520_v42  ;;  %v3890_v53 = vld [vmem:[#allocation6 + $0x134] sm:$0xf0] }
 0x1a9   :  { %v465_v59 = vadd.f32 %v464_v55, %v463_v47  ;;  %v478_v60 = vrot.slane %v477_v56, 1  ;;  %v471_v61 = vadd.f32 %v470_v57, %v469_v51  ;;  %v484_v63 = vrot.slane %v483_v58, 1  ;;  %v3509_v47 = vld [vmem:[#allocation6 + $0x148] sm:$0xf0]  ;;  %v3889_v57 = vld [vmem:[#allocation6 + $0x134] sm:$0xf] }
 0x1aa   :  { %v3512_v51 = vor.u32 %v3891_v44, %v3509_v47  ;;  %v519_v55 = vperm.slane %v457_v30, 0  ;;  %667 = vmatpush.bf16.msrb.mxu0 %v3508_v46 }
 0x1ab   :  { %v479_v0 = vadd.f32 %v478_v60, %v477_v56  ;;  %v4383_v62 = vmul.f32 0.125, %v465_v59  ;;  %v4385_v1 = vmul.f32 0.125, %v471_v61  ;;  %v485_v2 = vadd.f32 %v484_v63, %v483_v58  ;;  %v3501_v58 = vld [vmem:[#allocation6 + $0x138] sm:$0xf0] }
 0x1ac   :  { %v520_v56 = vperm.slane %v457_v30, 1  ;;  %v3500_v61 = vor.u32 %v3890_v53, %v3499_v52  ;;  %680 = vmatpush.bf16.msrb.mxu1 %v3512_v51 }
 0x1ad   :  { %v488_v3 = vmul.f32 0.125, %v479_v0  ;;  %v490_v4 = vmul.f32 %v4383_v62, %v4383_v62  ;;  %v491_v5 = vmul.f32 %v4385_v1, %v4385_v1  ;;  %v489_v6 = vmul.f32 0.125, %v485_v2  ;;  %v3491_v2 = vld [vmem:[#allocation6 + $0x120] sm:$0xf] }
 0x1ae   :  { %v3504_v0 = vor.u32 %v3889_v57, %v3501_v58  ;;  %668 = vmatpush.bf16.msrb.mxu0 %v3500_v61 }
 0x1af   :  { %v492_v7 = vsub.f32 %v488_v3, %v490_v4  ;;  %v493_v8 = vsub.f32 %v489_v6, %v491_v5  ;;  %v3888_v3 = vld [vmem:[#allocation6 + $0x124] sm:$0xf0]  ;;  %v3887_v6 = vld [vmem:[#allocation6 + $0x124] sm:$0xf] }
 0x1b0   :  { %681 = vmatpush.bf16.msrb.mxu1 %v3504_v0 }
 0x1b1   :  { %v494_v9 = vmax.f32 %v492_v7, 0.0  ;;  %v495_v10 = vmax.f32 %v493_v8, 0.0  ;;  %v3493_v7 = vld [vmem:[#allocation6 + $0x128] sm:$0xf0] }
 0x1b2   :  { %v459_v8 = vld [vmem:[#allocation8 + $0x7] ss:$8 sm:$0x3] }
 0x1b3   :  { %v496_v49 = vadd.f32 1e-05, %v494_v9  ;;  %v497_v11 = vadd.f32 1e-05, %v495_v10  ;;  %v3492_v10 = vor.u32 %v3888_v3, %v3491_v2 }
 0x1b5   :  { %4050 = vrsqrt.f32 %v496_v49  ;;  %vm504_vm0 = vweird.f32 %v496_v49  ;;  %vm514_vm2 = vweird.f32 %v497_v11  ;;  %669 = vmatpush.bf16.msrb.mxu0 %v3492_v10 }
 0x1b6   :  { %4052 = vrsqrt.f32 %v497_v11 }
 0x1bb   :  { %v4051_v18 = vpop.eup %4050 }
 0x1bc   :  { %v4053_v22 = vpop.eup %4052  ;;  %v499_v25 = vmul.f32 %v4051_v18, %v496_v49  ;;  %vm505_vm14 = vweird.f32 %v4051_v18  ;;  %v3496_v49 = vor.u32 %v3887_v6, %v3493_v7 }
 0x1bd   :  { %v509_v27 = vmul.f32 %v4053_v22, %v497_v11  ;;  %vm515_vm15 = vweird.f32 %v4053_v22  ;;  %vm506_vm1 = vmor %vm504_vm0, %vm505_vm14  ;;  %v3483_v11 = vld [vmem:[#allocation6 + $0x110] sm:$0xf] }
 0x1be   :  { %v500_v29 = vmul.f32 %v4051_v18, %v499_v25  ;;  %vm516_vm3 = vmor %vm514_vm2, %vm515_vm15  ;;  %v3484_v21 = vor.u32 %v3886_v12, %v3483_v11  ;;  %682 = vmatpush.bf16.msrb.mxu1 %v3496_v49  ;;  %v3883_v25 = vld [vmem:[#allocation6 + $0x104] sm:$0xf] }
 0x1bf   :  { %v510_v31 = vmul.f32 %v4053_v22, %v509_v27 }
 0x1c0   :  { %v501_v37 = vmul.f32 0.5, %v500_v29  ;;  %670 = vmatpush.bf16.msrb.mxu0 %v3484_v21  ;;  %v3480_v29 = vor.u32 %v3883_v25, %v3477_v26 }
 0x1c1   :  { %v511_v41 = vmul.f32 0.5, %v510_v31 }
 0x1c2   :  { %v502_v45 = vsub.f32 1.5, %v501_v37  ;;  %683 = vmatpush.bf16.msrb.mxu1 %v3488_v24 }
 0x1c3   :  { %v512_v50 = vsub.f32 1.5, %v511_v41 }
 0x1c4   :  { %v503_v54 = vmul.f32 %v4051_v18, %v502_v45 }
 0x1c5   :  { %v513_v59 = vmul.f32 %v4053_v22, %v512_v50 }
 0x1c6   :  { %v507_v60 = vsel %vm506_vm1, %v4051_v18, %v503_v54  ;;  %684 = vmatpush.bf16.msrb.mxu1 %v3480_v29 }
 0x1c7   :  { %v517_v63 = vsel %vm516_vm3, %v4053_v22, %v513_v59  ;;  %v523_v4 = vmul.f32 %v519_v55, %v507_v60  ;;  %v3884_v22 = vld [vmem:[#allocation6 + $0x104] sm:$0xf0] }
 0x1c8   :  { %v524_v5 = vmul.f32 %v520_v56, %v517_v63 }
 0x1c9   :  { %v525_v13 = vmul.f32 %v523_v4, %v4383_v62  ;;  %v533_v37 = vperm.slane %v523_v4, 0 }
 0x1ca   :  { %v526_v9 = vmul.f32 %v524_v5, %v4385_v1  ;;  %v534_v16 = vperm.slane %v524_v5, 0  ;;  %v3475_v1 = vld [vmem:[#allocation6 + $0x100] sm:$0xf] }
 0x1cb   :  { %v3476_v62 = vor.u32 %v3884_v22, %v3475_v1  ;;  %v535_v42 = vmul.f32 %v533_v37, %v4371_v34  ;;  %v3912_v37 = vld [vmem:[#allocation6 + $0x2e4] sm:$0xf0] }
 0x1cc   :  { %v529_v14 = vrot.slane %v526_v9, 7  ;;  %v536_v20 = vmul.f32 %v534_v16, %v4373_v35 }
 0x1cd   :  { %671 = vmatpush.bf16.msrb.mxu0 %v3476_v62 }
 0x1ce   :  { %v530_v18 = vsel %vm297_vm9, %v525_v13, %v529_v14 }
 0x1cf   :  { %v532_v23 = vsub.f32 %v459_v8, %v530_v18 }
 0x1d1   :  { %v539_v27 = vperm.slane %v532_v23, 1  ;;  %v538_v40 = vperm.slane %v532_v23, 0 }
 0x1d3   :  { %v543_v28 = vadd.f32 %v539_v27, %v536_v20  ;;  %v542_v45 = vadd.f32 %v538_v40, %v535_v42 }
 0x1d5   :  { %v3472_v30 = vmul.f32 -1.442695, %v543_v28 }
 0x1d7   :  { %4054 = vpow2.f32 %v3472_v30  ;;  %v3568_v30 = vld [vmem:[#allocation6 + $0x2f0] sm:$0xf] }
 0x1dd   :  { %v4055_v31 = vpop.eup %4054 }
 0x1de   :  { %v547_v33 = vadd.f32 1.0, %v4055_v31  ;;  %v3914_v31 = vld [vmem:[#allocation6 + $0x2f4] sm:$0xf0] }
 0x1e0   :  { %4056 = vrcp.f32 %v547_v33  ;;  %v559_v39 = vand.u32 2147483648, %v547_v33  ;;  %v557_v41 = vand.u32 2147483647, %v547_v33  ;;  %vm553_vm5 = vweird.f32 %v547_v33 }
 0x1e2   :  { %v560_v44 = vor.u32 1.1754944e-38, %v559_v39  ;;  %vm558_vm7 = vcmp.eq.f32.partialorder %v557_v41, 8.507059e+37 }
 0x1e6   :  { %v4057_v19 = vpop.eup %4056 }
 0x1e7   :  { %v549_v36 = vmul.f32 %v4057_v19, %v547_v33  ;;  %vm554_vm4 = vweird.f32 %v4057_v19  ;;  %v3569_v33 = vor.u32 %v3914_v31, %v3568_v30 }
 0x1e8   :  { %vm555_vm6 = vmor %vm553_vm5, %vm554_vm4 }
 0x1e9   :  { %v550_v38 = vsub.f32 1.0, %v549_v36  ;;  %866 = vmatpush.bf16.msrb.mxu2 %v3569_v33  ;;  %v3564_v36 = vld [vmem:[#allocation6 + $0x2e0] sm:$0xf] }
 0x1ea   :  { %v3565_v40 = vor.u32 %v3912_v37, %v3564_v36 }
 0x1eb   :  { %v551_v35 = vmul.f32 %v4057_v19, %v550_v38 }
 0x1ed   :  { %v552_v43 = vadd.f32 %v4057_v19, %v551_v35  ;;  %867 = vmatpush.bf16.msrb.mxu2 %v3565_v40 }
 0x1ef   :  { %v556_v46 = vsel %vm555_vm6, %v4057_v19, %v552_v43  ;;  %v3560_v43 = vld [vmem:[#allocation6 + $0x2d0] sm:$0xf]  ;;  %vm915_vm6 = vcmask 130048  }
 0x1f0   :  { %v561_v47 = vsel %vm558_vm7, %v560_v44, %v556_v46  ;;  %v3910_v44 = vld [vmem:[#allocation6 + $0x2d4] sm:$0xf0] }
 0x1f1   :  { %v563_v50 = vmul.f32 %v561_v47, %v542_v45  ;;  %v3561_v46 = vor.u32 %v3910_v44, %v3560_v43  ;;  %v3556_v47 = vld [vmem:[#allocation6 + $0x2c0] sm:$0xf] }
 0x1f3   :  { %v564_v51 = vadd.f32 %v563_v50, %v4367_v32  ;;  %v3908_v50 = vld [vmem:[#allocation6 + $0x2c4] sm:$0xf0]  ;;  %868 = vmatpush.bf16.msrb.mxu2 %v3561_v46 }
 0x1f5   :  { %v4399_v52 = vmul.f32 0.70710677, %v564_v51  ;;  %v691_v51 = vld [vmem:[#allocation8 + $0x10] ss:$8 sm:$0x3] }
 0x1f7   :  { %v566_v53 = vpack.c.bf16 %v4399_v52, %v4399_v52 }
 0x1f9   :  { %672 = vmatmul.bf16.vlgmr.msrb.gmra.mxu0 %v566_v53  ;;  %685 = vmatmul.bf16.vlgmr.msrb.gmra.mxu1 %v566_v53 }
 0x276   :  { %v4403_v54 = vpop.f32.mrf.mxu0  ;;  %v4405_v34 = vpop.f32.mrf.mxu1 }
 0x277   :  { %v694_v55 = vrot.slane %v4403_v54, 4  ;;  %v706_v56 = vmul.f32 %v4403_v54, %v4403_v54  ;;  %v700_v57 = vrot.slane %v4405_v34, 4  ;;  %v707_v32 = vmul.f32 %v4405_v34, %v4405_v34 }
 0x279   :  { %v695_v58 = vadd.f32 %v694_v55, %v4403_v54  ;;  %v708_v59 = vrot.slane %v706_v56, 4  ;;  %v701_v60 = vadd.f32 %v700_v57, %v4405_v34  ;;  %v714_v61 = vrot.slane %v707_v32, 4 }
 0x27b   :  { %v696_v63 = vrot.slane %v695_v58, 2  ;;  %v709_v0 = vadd.f32 %v708_v59, %v706_v56  ;;  %v702_v2 = vrot.slane %v701_v60, 2  ;;  %v715_v3 = vadd.f32 %v714_v61, %v707_v32  ;;  %v3552_v32 = vld [vmem:[#allocation6 + $0x2b0] sm:$0xf] }
 0x27c   :  { %v3557_v56 = vor.u32 %v3908_v50, %v3556_v47  ;;  %v754_v61 = vperm.slane %v691_v51, 1 }
 0x27d   :  { %v697_v4 = vadd.f32 %v696_v63, %v695_v58  ;;  %v710_v5 = vrot.slane %v709_v0, 2  ;;  %v703_v6 = vadd.f32 %v702_v2, %v701_v60  ;;  %v716_v7 = vrot.slane %v715_v3, 2  ;;  %v3906_v58 = vld [vmem:[#allocation6 + $0x2b4] sm:$0xf0] }
 0x27e   :  { %v675_v8 = vpop.f32.mrf.mxu0  ;;  %v688_v9 = vpop.f32.mrf.mxu1  ;;  %v753_v60 = vperm.slane %v691_v51, 0  ;;  %869 = vmatpush.bf16.msrb.mxu2 %v3557_v56  ;;  %v3553_v2 = vor.u32 %v3906_v58, %v3552_v32 }
 0x27f   :  { %v698_v10 = vrot.slane %v697_v4, 1  ;;  %v711_v49 = vadd.f32 %v710_v5, %v709_v0  ;;  %v704_v11 = vrot.slane %v703_v6, 1  ;;  %v717_v12 = vadd.f32 %v716_v7, %v715_v3  ;;  %v3904_v5 = vld [vmem:[#allocation6 + $0x2a4] sm:$0xf0] }
 0x281   :  { %v699_v13 = vadd.f32 %v698_v10, %v697_v4  ;;  %v712_v14 = vrot.slane %v711_v49, 1  ;;  %v705_v48 = vadd.f32 %v704_v11, %v703_v6  ;;  %v718_v15 = vrot.slane %v717_v12, 1  ;;  %v3548_v4 = vld [vmem:[#allocation6 + $0x2a0] sm:$0xf]  ;;  %v3544_v10 = vld [vmem:[#allocation6 + $0x290] sm:$0xf] }
 0x282   :  { %870 = vmatpush.bf16.msrb.mxu2 %v3553_v2  ;;  %v3549_v9 = vor.u32 %v3904_v5, %v3548_v4  ;;  %v923_v2 = vlaneseq }
 0x283   :  { %v713_v16 = vadd.f32 %v712_v14, %v711_v49  ;;  %v4415_v18 = vmul.f32 0.125, %v699_v13  ;;  %v721_v21 = vmul.f32 0.125, %v705_v48  ;;  %v719_v23 = vadd.f32 %v718_v15, %v717_v12  ;;  %v3902_v49 = vld [vmem:[#allocation6 + $0x294] sm:$0xf0] }
 0x284   :  { %v693_v12 = vld [vmem:[#allocation8 + $0x11] ss:$8 sm:$0x3]  ;;  %v3545_v15 = vor.u32 %v3902_v49, %v3544_v10  ;;  %v4425_v4 = vshrl.u32 %v923_v2, 7 }
 0x285   :  { %v722_v24 = vmul.f32 0.125, %v713_v16  ;;  %v724_v1 = vmul.f32 %v4415_v18, %v4415_v18  ;;  %v725_v22 = vmul.f32 %v721_v21, %v721_v21  ;;  %v723_v25 = vmul.f32 0.125, %v719_v23  ;;  %v3540_v23 = vld [vmem:[#allocation6 + $0x280] sm:$0xf] }
 0x286   :  { %871 = vmatpush.bf16.msrb.mxu2 %v3549_v9  ;;  %3976 = vset.pattern.permute.xlu0 %v4425_v4 }
 0x287   :  { %v726_v26 = vsub.f32 %v722_v24, %v724_v1  ;;  %v727_v20 = vsub.f32 %v723_v25, %v725_v22  ;;  %v3900_v24 = vld [vmem:[#allocation6 + $0x284] sm:$0xf0] }
 0x289   :  { %v728_v27 = vmax.f32 %v726_v26, 0.0  ;;  %v729_v62 = vmax.f32 %v727_v20, 0.0 }
 0x28a   :  { %872 = vmatpush.bf16.msrb.mxu2 %v3545_v15 }
 0x28b   :  { %v730_v28 = vadd.f32 1e-05, %v728_v27  ;;  %v731_v29 = vadd.f32 1e-05, %v729_v62 }
 0x28d   :  { %4058 = vrsqrt.f32 %v730_v28  ;;  %vm738_vm11 = vweird.f32 %v730_v28  ;;  %vm748_vm13 = vweird.f32 %v731_v29 }
 0x28e   :  { %4060 = vrsqrt.f32 %v731_v29 }
 0x293   :  { %v4059_v19 = vpop.eup %4058 }
 0x294   :  { %v4061_v38 = vpop.eup %4060  ;;  %v733_v39 = vmul.f32 %v4059_v19, %v730_v28  ;;  %vm739_vm8 = vweird.f32 %v4059_v19 }
 0x295   :  { %v743_v35 = vmul.f32 %v4061_v38, %v731_v29  ;;  %vm749_vm10 = vweird.f32 %v4061_v38  ;;  %vm740_vm12 = vmor %vm738_vm11, %vm739_vm8 }
 0x296   :  { %v734_v41 = vmul.f32 %v4059_v19, %v733_v39  ;;  %vm750_vm14 = vmor %vm748_vm13, %vm749_vm10 }
 0x297   :  { %v744_v42 = vmul.f32 %v4061_v38, %v743_v35 }
 0x298   :  { %v735_v45 = vmul.f32 0.5, %v734_v41 }
 0x299   :  { %v745_v53 = vmul.f32 0.5, %v744_v42 }
 0x29a   :  { %v736_v55 = vsub.f32 1.5, %v735_v45 }
 0x29b   :  { %v746_v57 = vsub.f32 1.5, %v745_v53 }
 0x29c   :  { %v737_v59 = vmul.f32 %v4059_v19, %v736_v55 }
 0x29d   :  { %v747_v63 = vmul.f32 %v4061_v38, %v746_v57 }
 0x29e   :  { %v741_v0 = vsel %vm740_vm12, %v4059_v19, %v737_v59 }
 0x29f   :  { %v751_v3 = vsel %vm750_vm14, %v4061_v38, %v747_v63  ;;  %v757_v6 = vmul.f32 %v753_v60, %v741_v0 }
 0x2a0   :  { %v758_v7 = vmul.f32 %v754_v61, %v751_v3 }
 0x2a1   :  { %v759_v11 = vmul.f32 %v757_v6, %v4415_v18  ;;  %v767_v28 = vperm.slane %v757_v6, 0  ;;  %v4429_v6 = vadd.s32 8, %v4425_v4 }
 0x2a2   :  { %v760_v8 = vmul.f32 %v758_v7, %v721_v21  ;;  %v768_v14 = vperm.slane %v758_v7, 0  ;;  %v3541_v21 = vor.u32 %v3900_v24, %v3540_v23 }
 0x2a3   :  { %3979 = vset.pattern.permute.xlu2 %v4429_v6  ;;  %3977 = vset.pattern.permute.xlu1 %v4429_v6 }
 0x2a4   :  { %v763_v13 = vrot.slane %v760_v8, 7  ;;  %v770_v1 = vmul.f32 %v768_v14, %v4405_v34  ;;  %873 = vmatpush.bf16.msrb.mxu2 %v3541_v21  ;;  %v769_v34 = vmul.f32 %v767_v28, %v4403_v54 }
 0x2a6   :  { %v764_v48 = vsel %vm297_vm9, %v759_v11, %v763_v13  ;;  %v879_v11 = vld [vmem:[#allocation8 + $0x2] ss:$0 sm:$0xff] }
 0x2a7   :  { %v766_v16 = vsub.f32 %v693_v12, %v764_v48  ;;  %v880_v48 = vld [vmem:[#allocation8 + $0x3] ss:$0 sm:$0xff] }
 0x2a9   :  { %v773_v22 = vperm.slane %v766_v16, 1  ;;  %v772_v31 = vperm.slane %v766_v16, 0 }
 0x2ab   :  { %v777_v25 = vadd.f32 %v773_v22, %v770_v1  ;;  %v776_v38 = vadd.f32 %v772_v31, %v769_v34 }
 0x2ad   :  { %v3537_v26 = vmul.f32 -1.442695, %v777_v25 }
 0x2af   :  { %4062 = vpow2.f32 %v3537_v26 }
 0x2b5   :  { %v4063_v18 = vpop.eup %4062 }
 0x2b6   :  { %v781_v20 = vadd.f32 1.0, %v4063_v18 }
 0x2b8   :  { %4064 = vrcp.f32 %v781_v20  ;;  %v793_v30 = vand.u32 2147483648, %v781_v20  ;;  %v791_v19 = vand.u32 2147483647, %v781_v20  ;;  %vm787_vm0 = vweird.f32 %v781_v20 }
 0x2ba   :  { %v794_v37 = vor.u32 1.1754944e-38, %v793_v30  ;;  %vm792_vm2 = vcmp.eq.f32.partialorder %v791_v19, 8.507059e+37 }
 0x2be   :  { %v4065_v27 = vpop.eup %4064 }
 0x2bf   :  { %v783_v62 = vmul.f32 %v4065_v27, %v781_v20  ;;  %vm788_vm15 = vweird.f32 %v4065_v27 }
 0x2c0   :  { %vm789_vm1 = vmor %vm787_vm0, %vm788_vm15 }
 0x2c1   :  { %v784_v29 = vsub.f32 1.0, %v783_v62 }
 0x2c3   :  { %v785_v33 = vmul.f32 %v4065_v27, %v784_v29 }
 0x2c5   :  { %v786_v36 = vadd.f32 %v4065_v27, %v785_v33 }
 0x2c7   :  { %v790_v39 = vsel %vm789_vm1, %v4065_v27, %v786_v36 }
 0x2c8   :  { %v795_v40 = vsel %vm792_vm2, %v794_v37, %v790_v39  ;;  %v4496_v37 = vand.u32 127, %v923_v2 }
 0x2c9   :  { %v797_v35 = vmul.f32 %v795_v40, %v776_v38 }
 0x2ca   :  { %6135 = vst [vmem:[#allocation17_spill] sm:$0xff] %v4496_v37  ;;  %vm4503_vm7 = vcmp.lt.s32.totalorder %v4496_v37, %v4429_v6  ;;  %vm4532_vm13 = vcmp.lt.s32.totalorder %v4496_v37, %v4425_v4 }
 0x2cb   :  { %v798_v41 = vadd.f32 %v797_v35, %v4399_v52 }
 0x2cd   :  { %v799_v42 = vmul.f32 0.70710677, %v798_v41 }
 0x2cf   :  { %v817_v43 = vpack.c.bf16 %v799_v42, %v799_v42 }
 0x2d1   :  { %874 = vmatmul.bf16.vlgmr.msrb.gmra.mxu2 %v817_v43  ;;  %v6099_v43 = vmov 0.0  }
 0x354   :  { %v875_v44 = vpop.f32.mrf.mxu2 }
 0x355   :  { %v881_v45 = vrot.slane %v875_v44, 4  ;;  %v887_v46 = vmul.f32 %v875_v44, %v875_v44 }
 0x357   :  { %v882_v47 = vadd.f32 %v881_v45, %v875_v44  ;;  %v888_v50 = vrot.slane %v887_v46, 4 }
 0x359   :  { %v883_v54 = vrot.slane %v882_v47, 2  ;;  %v889_v51 = vadd.f32 %v888_v50, %v887_v46 }
 0x35b   :  { %v884_v53 = vadd.f32 %v883_v54, %v882_v47  ;;  %v890_v55 = vrot.slane %v889_v51, 2 }
 0x35c   :  { %v877_v56 = vpop.f32.mrf.mxu2 }
 0x35d   :  { %v885_v57 = vrot.slane %v884_v53, 1  ;;  %v891_v32 = vadd.f32 %v890_v55, %v889_v51 }
 0x35f   :  { %v892_v58 = vrot.slane %v891_v32, 1  ;;  %v886_v59 = vadd.f32 %v885_v57, %v884_v53 }
 0x361   :  { %v893_v60 = vadd.f32 %v892_v58, %v891_v32  ;;  %v894_v61 = vmul.f32 0.125, %v886_v59 }
 0x363   :  { %v895_v52 = vmul.f32 0.125, %v893_v60  ;;  %v896_v63 = vmul.f32 %v894_v61, %v894_v61 }
 0x365   :  { %v897_v0 = vsub.f32 %v895_v52, %v896_v63 }
 0x367   :  { %v898_v3 = vmax.f32 %v897_v0, 0.0 }
 0x369   :  { %v899_v5 = vadd.f32 1e-05, %v898_v3 }
 0x36b   :  { %4066 = vrsqrt.f32 %v899_v5  ;;  %vm906_vm4 = vweird.f32 %v899_v5 }
 0x371   :  { %v4067_v7 = vpop.eup %4066 }
 0x372   :  { %v901_v8 = vmul.f32 %v4067_v7, %v899_v5  ;;  %vm907_vm3 = vweird.f32 %v4067_v7 }
 0x373   :  { %vm908_vm5 = vmor %vm906_vm4, %vm907_vm3 }
 0x374   :  { %v902_v9 = vmul.f32 %v4067_v7, %v901_v8 }
 0x376   :  { %v903_v10 = vmul.f32 0.5, %v902_v9 }
 0x378   :  { %v904_v49 = vsub.f32 1.5, %v903_v10 }
 0x37a   :  { %v905_v12 = vmul.f32 %v4067_v7, %v904_v49 }
 0x37c   :  { %v909_v13 = vsel %vm908_vm5, %v4067_v7, %v905_v12 }
 0x37d   :  { %v910_v14 = vmul.f32 %v909_v13, %v879_v11 }
 0x37f   :  { %v911_v15 = vmul.f32 %v910_v14, %v894_v61  ;;  %v913_v23 = vmul.f32 %v910_v14, %v875_v44 }
 0x381   :  { %v912_v16 = vsub.f32 %v880_v48, %v911_v15 }
 0x383   :  { %v914_v24 = vadd.f32 %v913_v23, %v912_v16 }
 0x385   :  { %v916_v1 = vsel %vm915_vm6, %v914_v24, -inf }
 0x386   :  { %917 = vmax.xlane.f32.xlu0 %v916_v1 }
 0x3f9   :  { %v918_v22 = vpop.xlane.xlu0 %917 }
 0x3fa   :  { %v919_v21 = vsub.f32 %v914_v24, %v918_v22 }
 0x3fc   :  { %v4434_v25 = vmul.f32 0.5, %v919_v21 }
 0x3fe   :  { %6134 = vst [vmem:[#allocation16_spill] sm:$0xff] %v4434_v25  ;;  %v4437_v26 = vperm.slane %v4434_v25, 1  ;;  %v4440_v18 = vperm.slane %v4434_v25, 0  ;;  %v4449_v20 = vperm.slane %v4434_v25, 2  ;;  %v1000_v27 = vperm.slane %v4434_v25, 6 }
 0x3ff   :  { %v4455_v62 = vperm.slane %v4434_v25, 3  ;;  %v4461_v28 = vperm.slane %v4434_v25, 4  ;;  %v987_v29 = vperm.slane %v4434_v25, 5  ;;  %v4469_v30 = vmul.f32 %v4434_v25, %v4434_v25 }
 0x400   :  { %946 = vperm.xlu2 %3979, %v4437_v26   ;;  %933 = vperm.xlu1 %3977, %v4440_v18   ;;  %v4481_v19 = vperm.slane %v4434_v25, 7  ;;  %v1027_v38 = vrot.slane %v4434_v25, 1  ;;  %v1028_v47 = vrot.slane %v4434_v25, 2  ;;  %v1029_v55 = vrot.slane %v4434_v25, 3 }
 0x401   :  { %927 = vperm.xlu0 %3976, %v4440_v18   ;;  %v4472_v31 = vperm.slane %v4469_v30, 0  ;;  %v1517_v33 = vperm.slane %v4469_v30, 2  ;;  %v1530_v34 = vperm.slane %v4469_v30, 3  ;;  %v1543_v36 = vperm.slane %v4469_v30, 4 }
 0x402   :  { %v4507_v40 = vperm.slane %v1027_v38, 0  ;;  %v1405_v35 = vrot.slane %v4469_v30, 1  ;;  %v4536_v54 = vperm.slane %v1028_v47, 0  ;;  %v1406_v51 = vrot.slane %v4469_v30, 2 }
 0x403   :  { %v4559_v59 = vperm.slane %v1029_v55, 0  ;;  %v1407_v60 = vrot.slane %v4469_v30, 3  ;;  %v1030_v52 = vrot.slane %v4434_v25, 4  ;;  %v1408_v7 = vrot.slane %v4469_v30, 4 }
 0x404   :  { %v4514_v42 = vperm.slane %v1405_v35, 0  ;;  %v4544_v56 = vperm.slane %v1406_v51, 0  ;;  %v1032_v12 = vrot.slane %v4434_v25, 6  ;;  %v1410_v24 = vrot.slane %v4469_v30, 6 }
 0x405   :  { %v4567_v63 = vperm.slane %v1407_v60, 0  ;;  %v4578_v5 = vperm.slane %v1030_v52, 0  ;;  %v4589_v49 = vperm.slane %v1408_v7, 0  ;;  %v1504_v38 = vperm.slane %v4469_v30, 1 }
 0x406   :  { %v4608_v16 = vperm.slane %v1032_v12, 0  ;;  %v1411_v52 = vrot.slane %v4469_v30, 7 }
 0x408   :  { %3980 = vset.pattern.permute.xlu2 %v4425_v4  ;;  %3978 = vset.pattern.permute.xlu1 %v4425_v4 }
 0x409   :  { %3982 = vset.pattern.permute.xlu0 %v4429_v6 }
 0x410   :  { %953 = vperm.xlu2 %3980, %v4449_v20   ;;  %940 = vperm.xlu1 %3978, %v4437_v26  }
 0x411   :  { %1011 = vperm.xlu0 %3982, %v1000_v27  }
 0x418   :  { %966 = vperm.xlu2 %3980, %v4455_v62   ;;  %3981 = vset.pattern.permute.xlu1 %v4429_v6 }
 0x419   :  { %1305 = vperm.xlu0 %3982, %v4449_v20  }
 0x420   :  { %979 = vperm.xlu2 %3980, %v4461_v28   ;;  %959 = vperm.xlu1 %3981, %v4449_v20  }
 0x421   :  { %1344 = vperm.xlu0 %3982, %v987_v29  }
 0x428   :  { %992 = vperm.xlu2 %3980, %v987_v29   ;;  %972 = vperm.xlu1 %3981, %v4455_v62  }
 0x429   :  { %1357 = vperm.xlu0 %3982, %v1000_v27  }
 0x430   :  { %1005 = vperm.xlu2 %3980, %v1000_v27   ;;  %985 = vperm.xlu1 %3981, %v4461_v28  }
 0x431   :  { %1502 = vperm.xlu0 %3982, %v4472_v31  }
 0x438   :  { %3984 = vset.pattern.permute.xlu2 %v4429_v6  ;;  %998 = vperm.xlu1 %3981, %v987_v29  }
 0x439   :  { %1528 = vperm.xlu0 %3982, %v1517_v33  }
 0x440   :  { %1024 = vperm.xlu2 %3984, %v4481_v19   ;;  %3983 = vset.pattern.permute.xlu1 %v4425_v4 }
 0x441   :  { %1541 = vperm.xlu0 %3982, %v1530_v34  }
 0x448   :  { %1279 = vperm.xlu2 %3984, %v4440_v18   ;;  %1018 = vperm.xlu1 %3983, %v4481_v19  }
 0x449   :  { %1554 = vperm.xlu0 %3982, %v1543_v36  }
 0x450   :  { %1318 = vperm.xlu2 %3984, %v4455_v62   ;;  %1273 = vperm.xlu1 %3983, %v4440_v18  }
 0x458   :  { %3988 = vset.pattern.permute.xlu2 %v4425_v4  ;;  %3985 = vset.pattern.permute.xlu1 %v4429_v6 }
 0x45a   :  { %v947_v41 = vpop.permute.xlu2 %946 }
 0x45b   :  { %vm1060_vm8 = vcmp.gt.f32.partialorder %v4507_v40, %v947_v41  ;;  %vm1076_vm10 = vcmp.eq.f32.partialorder %v4507_v40, %v947_v41 }
 0x45c   :  { %vm1096_vm11 = vmand %vm1076_vm10, %vm4503_vm7 }
 0x45d   :  { %vm1112_vm12 = vmor %vm1060_vm8, %vm1096_vm11 }
 0x45e   :  { %v4517_v44 = vsel %vm1112_vm12, 1.0, %v6099_v43 }
 0x45f   :  { %v4521_v45 = vmul.f32 %v4517_v44, %v4507_v40  ;;  %v4525_v46 = vmul.f32 %v4517_v44, %v4514_v42 }
 0x460   :  { %1338 = vperm.xlu2 %3988, %v987_v29   ;;  %1292 = vperm.xlu1 %3985, %v4437_v26  }
 0x468   :  { %1351 = vperm.xlu2 %3988, %v1000_v27   ;;  %3986 = vset.pattern.permute.xlu1 %v4425_v4 }
 0x46a   :  { %v954_v53 = vpop.permute.xlu2 %953 }
 0x46b   :  { %vm1061_vm14 = vcmp.gt.f32.partialorder %v4536_v54, %v954_v53  ;;  %vm1077_vm15 = vcmp.eq.f32.partialorder %v4536_v54, %v954_v53  ;;  %v1033_v53 = vrot.slane %v4434_v25, 7 }
 0x46c   :  { %vm1097_vm0 = vmand %vm1077_vm15, %vm4532_vm13 }
 0x46d   :  { %vm1113_vm1 = vmor %vm1061_vm14, %vm1097_vm0 }
 0x46e   :  { %v4547_v57 = vsel %vm1113_vm1, 1.0, %v6099_v43 }
 0x46f   :  { %v4551_v32 = vmul.f32 %v4547_v57, %v4544_v56  ;;  %v4555_v58 = vmul.f32 %v4547_v57, %v4536_v54 }
 0x470   :  { %3990 = vset.pattern.permute.xlu2 %v4429_v6  ;;  %1312 = vperm.xlu1 %3986, %v4455_v62   ;;  %v1418_v62 = vperm.slane %v1410_v24, 0 }
 0x472   :  { %v967_v61 = vpop.permute.xlu2 %966  ;;  %v4581_v8 = vpop.permute.xlu1 %933 }
 0x473   :  { %vm1063_vm2 = vcmp.gt.f32.partialorder %v4559_v59, %v967_v61  ;;  %vm1079_vm3 = vcmp.eq.f32.partialorder %v4559_v59, %v967_v61  ;;  %v4583_v10 = vpop.permute.xlu0 %927  ;;  %v4662_v61 = vperm.slane %v1033_v53, 0  ;;  %v1556_v53 = vperm.slane %v4469_v30, 5 }
 0x474   :  { %vm1099_vm4 = vmand %vm1079_vm3, %vm4532_vm13 }
 0x475   :  { %vm1115_vm5 = vmor %vm1063_vm2, %vm1099_vm4 }
 0x476   :  { %v3576_v0 = vsel %vm1115_vm5, 1.0, %v6099_v43 }
 0x477   :  { %v4571_v2 = vmul.f32 %v3576_v0, %v4567_v63  ;;  %v4574_v3 = vmul.f32 %v3576_v0, %v4559_v59  ;;  %v1175_v47 = vsel %vm915_vm6, %v3576_v0, 0.0 }
 0x478   :  { %1370 = vperm.xlu2 %3990, %v4481_v19   ;;  %1325 = vperm.xlu1 %3986, %v4461_v28  }
 0x47a   :  { %v980_v9 = vpop.permute.xlu2 %979 }
 0x47b   :  { %vm1065_vm8 = vcmp.gt.f32.partialorder %v4578_v5, %v980_v9  ;;  %vm1081_vm10 = vcmp.eq.f32.partialorder %v4578_v5, %v980_v9 }
 0x47c   :  { %vm1101_vm11 = vmand %vm1081_vm10, %vm4532_vm13 }
 0x47d   :  { %vm1117_vm12 = vmor %vm1065_vm8, %vm1101_vm11 }
 0x47e   :  { %v4592_v11 = vsel %vm1117_vm12, 1.0, %v6099_v43 }
 0x47f   :  { %v4597_v13 = vmul.f32 %v4592_v11, %v4589_v49  ;;  %v4601_v14 = vmul.f32 %v4592_v11, %v4578_v5 }
 0x480   :  { %3991 = vset.pattern.permute.xlu2 %v4425_v4  ;;  %3987 = vset.pattern.permute.xlu1 %v4429_v6 }
 0x482   :  { %v4605_v48 = vpop.permute.xlu2 %992  ;;  %v941_v15 = vpop.permute.xlu1 %940 }
 0x483   :  { %vm1075_vm14 = vcmp.eq.f32.partialorder %v4507_v40, %v941_v15  ;;  %v1012_v23 = vpop.permute.xlu0 %1011  ;;  %vm1059_vm15 = vcmp.gt.f32.partialorder %v4507_v40, %v941_v15 }
 0x484   :  { %vm1086_vm0 = vcmp.eq.f32.partialorder %v4608_v16, %v1012_v23  ;;  %vm1095_vm1 = vmand %vm1075_vm14, %vm4532_vm13  ;;  %vm1070_vm2 = vcmp.gt.f32.partialorder %v4608_v16, %v1012_v23 }
 0x485   :  { %vm1111_vm3 = vmor %vm1059_vm15, %vm1095_vm1 }
 0x486   :  { %vm1106_vm4 = vmand %vm1086_vm0, %vm4503_vm7  ;;  %v4620_v1 = vsel %vm1111_vm3, 1.0, %v6099_v43 }
 0x487   :  { %vm1122_vm5 = vmor %vm1070_vm2, %vm1106_vm4  ;;  %v1163_v22 = vsel %vm915_vm6, %v4620_v1, 0.0  ;;  %v4630_v29 = vmul.f32 %v4620_v1, %v4514_v42 }
 0x488   :  { %1331 = vperm.xlu1 %3987, %v4461_v28   ;;  %1496 = vperm.xlu2 %3991, %v4472_v31   ;;  %v4626_v27 = vsel %vm1122_vm5, 1.0, %v6099_v43 }
 0x489   :  { %1164 = vadd.xlane.f32.xlu0 %v1163_v22  ;;  %v4637_v28 = vmul.f32 %v4626_v27, %v1418_v62 }
 0x48a   :  { %v1006_v21 = vpop.permute.xlu2 %1005 }
 0x48b   :  { %vm1069_vm8 = vcmp.gt.f32.partialorder %v4608_v16, %v1006_v21  ;;  %vm1085_vm10 = vcmp.eq.f32.partialorder %v4608_v16, %v1006_v21 }
 0x48c   :  { %vm1105_vm11 = vmand %vm1085_vm10, %vm4532_vm13 }
 0x48d   :  { %vm1121_vm12 = vmor %vm1069_vm8, %vm1105_vm11 }
 0x48e   :  { %v3582_v35 = vsel %vm1121_vm12, 1.0, %v6099_v43 }
 0x48f   :  { %v4641_v41 = vmul.f32 %v3582_v35, %v1418_v62  ;;  %v4644_v42 = vmul.f32 %v3582_v35, %v4608_v16 }
 0x490   :  { %3989 = vset.pattern.permute.xlu1 %v4425_v4  ;;  %1509 = vperm.xlu2 %3991, %v1504_v38  }
 0x491   :  { %1176 = vadd.xlane.f32.xlu0 %v1175_v47  ;;  %v1409_v47 = vrot.slane %v4469_v30, 5 }
 0x492   :  { %v960_v51 = vpop.permute.xlu1 %959 }
 0x493   :  { %vm1062_vm14 = vcmp.gt.f32.partialorder %v4536_v54, %v960_v51  ;;  %vm1078_vm15 = vcmp.eq.f32.partialorder %v4536_v54, %v960_v51 }
 0x494   :  { %vm1098_vm0 = vmand %vm1078_vm15, %vm4503_vm7 }
 0x495   :  { %vm1114_vm1 = vmor %vm1062_vm14, %vm1098_vm0 }
 0x496   :  { %v4654_v55 = vsel %vm1114_vm1, 1.0, %v6099_v43 }
 0x497   :  { %v4658_v60 = vmul.f32 %v4654_v55, %v4544_v56 }
 0x498   :  { %1364 = vperm.xlu1 %3989, %v4481_v19   ;;  %3992 = vset.pattern.permute.xlu2 %v4429_v6  ;;  %v1419_v19 = vperm.slane %v1411_v52, 0 }
 0x49a   :  { %v1025_v0 = vpop.permute.xlu2 %1024  ;;  %v973_v7 = vpop.permute.xlu1 %972 }
 0x49b   :  { %vm1072_vm2 = vcmp.gt.f32.partialorder %v4662_v61, %v1025_v0  ;;  %vm1088_vm3 = vcmp.eq.f32.partialorder %v4662_v61, %v1025_v0  ;;  %vm1064_vm4 = vcmp.gt.f32.partialorder %v4559_v59, %v973_v7  ;;  %vm1080_vm5 = vcmp.eq.f32.partialorder %v4559_v59, %v973_v7 }
 0x49c   :  { %vm1108_vm8 = vmand %vm1088_vm3, %vm4503_vm7 }
 0x49d   :  { %vm1124_vm10 = vmor %vm1072_vm2, %vm1108_vm8 }
 0x49e   :  { %vm1100_vm11 = vmand %vm1080_vm5, %vm4503_vm7  ;;  %v3585_v56 = vsel %vm1124_vm10, 1.0, %v6099_v43 }
 0x49f   :  { %vm1116_vm12 = vmor %vm1064_vm4, %vm1100_vm11  ;;  %v4675_v9 = vmul.f32 %v3585_v56, %v4662_v61  ;;  %v4677_v12 = vmul.f32 %v3585_v56, %v1419_v19  ;;  %v1202_v0 = vsel %vm915_vm6, %v3585_v56, 0.0 }
 0x4a0   :  { %1522 = vperm.xlu1 %3989, %v1517_v33   ;;  %1515 = vperm.xlu2 %3992, %v1504_v38   ;;  %v4682_v15 = vsel %vm1116_vm12, 1.0, %v6099_v43  ;;  %v1031_v33 = vrot.slane %v4434_v25, 5 }
 0x4a1   :  { %v4686_v23 = vmul.f32 %v4682_v15, %v4559_v59  ;;  %v4690_v24 = vmul.f32 %v4682_v15, %v4567_v63  ;;  %v1178_v39 = vsel %vm915_vm6, %v4682_v15, 0.0 }
 0x4a2   :  { %v986_v22 = vpop.permute.xlu1 %985  ;;  %v4707_v38 = vperm.slane %v1031_v33, 0 }
 0x4a3   :  { %vm1066_vm14 = vcmp.gt.f32.partialorder %v4578_v5, %v986_v22  ;;  %vm1082_vm15 = vcmp.eq.f32.partialorder %v4578_v5, %v986_v22 }
 0x4a4   :  { %vm1102_vm0 = vmand %vm1082_vm15, %vm4503_vm7  ;;  %vm1057_vm15 = vcmp.gt.f32.partialorder %v4440_v18, %v4583_v10 }
 0x4a5   :  { %vm1118_vm1 = vmor %vm1066_vm14, %vm1102_vm0  ;;  %vm1073_vm14 = vcmp.eq.f32.partialorder %v4440_v18, %v4583_v10 }
 0x4a6   :  { %v3579_v21 = vsel %vm1118_vm1, 1.0, %v6099_v43  ;;  %vm1093_vm0 = vmand %vm1073_vm14, %vm4532_vm13 }
 0x4a7   :  { %v1184_v59 = vsel %vm915_vm6, %v3579_v21, 0.0  ;;  %v4700_v62 = vmul.f32 %v3579_v21, %v4578_v5  ;;  %v4703_v63 = vmul.f32 %v3579_v21, %v4589_v49  ;;  %v4715_v5 = vperm.slane %v1409_v47, 0  ;;  %vm1109_vm1 = vmor %vm1057_vm15, %vm1093_vm0 }
 0x4a8   :  { %1535 = vperm.xlu1 %3989, %v1530_v34   ;;  %1185 = vadd.xlane.f32.xlu0 %v1184_v59  ;;  %v1193_v49 = vsel %vm915_vm6, %v3582_v35, 0.0  ;;  %v1207_v35 = vmul.f32 %v4620_v1, %v4507_v40  ;;  %v1210_v40 = vmul.f32 %v4654_v55, %v4536_v54  ;;  %v4751_v1 = vpop.permute.xlu0 %1305  ;;  %v3570_v21 = vsel %vm1109_vm1, 1.0, %v6099_v43 }
 0x4a9   :  { %3993 = vset.pattern.permute.xlu2 %v4425_v4  ;;  %6140 = vst [vmem:[#allocation18_spill] sm:$0xff] %v4751_v1  ;;  %v1456_v54 = vsel %vm915_vm6, %v4551_v32, 0.0  ;;  %v1169_v32 = vsel %vm915_vm6, %v4547_v57, 0.0 }
 0x4aa   :  { %v999_v51 = vpop.permute.xlu1 %998  ;;  %v1227_v56 = vsel %vm915_vm6, %v1207_v35, 0.0  ;;  %v1236_v33 = vsel %vm915_vm6, %v1210_v40, 0.0  ;;  %v1468_v35 = vsel %vm915_vm6, %v4597_v13, 0.0  ;;  %v1196_v13 = vsel %vm915_vm6, %v4626_v27, 0.0 }
 0x4ab   :  { %vm1068_vm2 = vcmp.gt.f32.partialorder %v4707_v38, %v999_v51  ;;  %vm1084_vm3 = vcmp.eq.f32.partialorder %v4707_v38, %v999_v51 }
 0x4ac   :  { %vm1104_vm4 = vmand %vm1084_vm3, %vm4503_vm7  ;;  %vm1067_vm3 = vcmp.gt.f32.partialorder %v4707_v38, %v4605_v48 }
 0x4ad   :  { %vm1120_vm5 = vmor %vm1068_vm2, %vm1104_vm4  ;;  %vm1083_vm2 = vcmp.eq.f32.partialorder %v4707_v38, %v4605_v48 }
 0x4ae   :  { %v4718_v34 = vsel %vm1120_vm5, 1.0, %v6099_v43  ;;  %vm1103_vm4 = vmand %vm1083_vm2, %vm4532_vm13 }
 0x4af   :  { %v4724_v52 = vmul.f32 %v4718_v34, %v4715_v5  ;;  %vm1119_vm5 = vmor %vm1067_vm3, %vm1103_vm4 }
 0x4b0   :  { %1548 = vperm.xlu1 %3989, %v1543_v36   ;;  %1194 = vadd.xlane.f32.xlu0 %v1193_v49  ;;  %v4758_v10 = vpop.permute.xlu0 %1344  ;;  %v3580_v47 = vsel %vm1119_vm5, 1.0, %v6099_v43  ;;  %v1157_v49 = vsel %vm915_vm6, %v3570_v21, 0.0 }
 0x4b1   :  { %1561 = vperm.xlu2 %3993, %v1556_v53   ;;  %6141 = vst [vmem:[#allocation19_spill] sm:$0xff] %v4758_v10  ;;  %v1438_v40 = vmul.f32 %v3580_v47, %v4715_v5  ;;  %v1483_v5 = vsel %vm915_vm6, %v4637_v28, 0.0  ;;  %v1230_v28 = vsel %vm915_vm6, %v4521_v45, 0.0 }
 0x4b3   :  { %v1474_v15 = vsel %vm915_vm6, %v1438_v40, 0.0 }
 0x4b8   :  { %1203 = vadd.xlane.f32.xlu0 %v1202_v0  ;;  %v4768_v51 = vpop.permute.xlu0 %1357 }
 0x4b9   :  { %3994 = vset.pattern.permute.xlu2 %v4429_v6 }
 0x4ba   :  { %v1019_v7 = vpop.permute.xlu1 %1018 }
 0x4bb   :  { %vm1071_vm8 = vcmp.gt.f32.partialorder %v4662_v61, %v1019_v7  ;;  %vm1087_vm10 = vcmp.eq.f32.partialorder %v4662_v61, %v1019_v7  ;;  %v1462_v7 = vsel %vm915_vm6, %v4571_v2, 0.0  ;;  %v1187_v2 = vsel %vm915_vm6, %v3580_v47, 0.0 }
 0x4bc   :  { %vm1107_vm11 = vmand %vm1087_vm10, %vm4532_vm13  ;;  %vm1058_vm13 = vcmp.gt.f32.partialorder %v4440_v18, %v4581_v8 }
 0x4bd   :  { %vm1123_vm12 = vmor %vm1071_vm8, %vm1107_vm11  ;;  %vm1074_vm8 = vcmp.eq.f32.partialorder %v4440_v18, %v4581_v8 }
 0x4be   :  { %v4737_v36 = vsel %vm1123_vm12, 1.0, %v6099_v43  ;;  %vm1094_vm10 = vmand %vm1074_vm8, %vm4503_vm7 }
 0x4bf   :  { %v4743_v22 = vmul.f32 %v4737_v36, %v1419_v19  ;;  %v1428_v19 = vmul.f32 %v3570_v21, %v4472_v31  ;;  %vm1110_vm11 = vmor %vm1058_vm13, %vm1094_vm10 }
 0x4c0   :  { %1228 = vadd.xlane.f32.xlu0 %v1227_v56  ;;  %v4781_v48 = vpop.permute.xlu0 %1502  ;;  %v4784_v0 = vsel %vm1110_vm11, 1.0, %v6099_v43  ;;  %v1166_v56 = vsel %vm915_vm6, %v4517_v44, 0.0 }
 0x4c1   :  { %1567 = vperm.xlu2 %3994, %v1556_v53   ;;  %v1444_v59 = vsel %vm915_vm6, %v1428_v19, 0.0  ;;  %v1215_v53 = vmul.f32 %v3580_v47, %v4707_v38  ;;  %v1160_v8 = vsel %vm915_vm6, %v4784_v0, 0.0  ;;  %v1172_v19 = vsel %vm915_vm6, %v4654_v55, 0.0 }
 0x4c2   :  { %v4807_v44 = vpop.permute.xlu1 %1273  ;;  %v1181_v47 = vsel %vm915_vm6, %v4592_v11, 0.0  ;;  %v1206_v45 = vmul.f32 %v4784_v0, %v4440_v18  ;;  %v1486_v37 = vsel %vm915_vm6, %v4743_v22, 0.0 }
 0x4c3   :  { %v1251_v50 = vsel %vm915_vm6, %v1215_v53, 0.0  ;;  %6143 = vst [vmem:[#allocation21_spill] sm:$0xff] %v4807_v44  ;;  %v4819_v53 = vpop.permute.xlu2 %1279 }
 0x4c4   :  { %v1224_v40 = vsel %vm915_vm6, %v1206_v45, 0.0 }
 0x4c8   :  { %1237 = vadd.xlane.f32.xlu0 %v1236_v33  ;;  %v4792_v57 = vpop.permute.xlu0 %1528 }
 0x4cb   :  { %v4829_v11 = vpop.permute.xlu2 %1318 }
 0x4cc   :  { %6145 = vst [vmem:[#allocation23_spill] sm:$0xff] %v4829_v11 }
 0x4d0   :  { %1445 = vadd.xlane.f32.xlu0 %v1444_v59  ;;  %v4800_v33 = vpop.permute.xlu0 %1541  ;;  %v1205_v59 = vmul.f32 %v3570_v21, %v4440_v18  ;;  %v1190_v21 = vsel %vm915_vm6, %v4718_v34, 0.0  ;;  %v1233_v18 = vsel %vm915_vm6, %v4555_v58, 0.0 }
 0x4d1   :  { %6142 = vst [vmem:[#allocation20_spill] sm:$0xff] %v4800_v33 }
 0x4d2   :  { %v1221_v55 = vsel %vm915_vm6, %v1205_v59, 0.0 }
 0x4d8   :  { %1457 = vadd.xlane.f32.xlu0 %v1456_v54  ;;  %v4812_v54 = vpop.permute.xlu0 %1554 }
 0x4d9   :  { %6144 = vst [vmem:[#allocation22_spill] sm:$0xff] %v4812_v54 }
 0x4da   :  { %1158 = vadd.xlane.f32.xlu1 %v1157_v49  ;;  %v4817_v49 = vpop.permute.xlu1 %1292 }
 0x4e0   :  { %1252 = vadd.xlane.f32.xlu0 %v1251_v50 }
 0x4e2   :  { %1170 = vadd.xlane.f32.xlu1 %v1169_v32  ;;  %v4827_v32 = vpop.permute.xlu1 %1312 }
 0x4e8   :  { %1463 = vadd.xlane.f32.xlu0 %v1462_v7  ;;  %v1199_v7 = vsel %vm915_vm6, %v4737_v36, 0.0 }
 0x4ea   :  { %1161 = vadd.xlane.f32.xlu2 %v1160_v8  ;;  %1179 = vadd.xlane.f32.xlu1 %v1178_v39  ;;  %v1242_v8 = vsel %vm915_vm6, %v4686_v23, 0.0  ;;  %v1569_v39 = vperm.slane %v4469_v30, 6  ;;  %v1450_v23 = vsel %vm915_vm6, %v4630_v29, 0.0 }
 0x4f0   :  { %1469 = vadd.xlane.f32.xlu0 %v1468_v35 }
 0x4f2   :  { %1167 = vadd.xlane.f32.xlu2 %v1166_v56  ;;  %1188 = vadd.xlane.f32.xlu1 %v1187_v2  ;;  %v4842_v56 = vpop.permute.xlu1 %1325  ;;  %v4844_v2 = vpop.permute.xlu2 %1338 }
 0x4f3   :  { %6146 = vst [vmem:[#allocation24_spill] sm:$0xff] %v4844_v2 }
 0x4f8   :  { %1475 = vadd.xlane.f32.xlu0 %v1474_v15 }
 0x4fa   :  { %1173 = vadd.xlane.f32.xlu2 %v1172_v19  ;;  %1197 = vadd.xlane.f32.xlu1 %v1196_v13  ;;  %v4852_v19 = vpop.permute.xlu1 %1331  ;;  %v1245_v13 = vsel %vm915_vm6, %v4601_v14, 0.0  ;;  %v4858_v59 = vpop.permute.xlu2 %1351 }
 0x4fb   :  { %6147 = vst [vmem:[#allocation25_spill] sm:$0xff] %v4852_v19 }
 0x4fc   :  { %v4821_v50 = vpop.xlane.xlu0 %1164  ;;  %6148 = vst [vmem:[#allocation26_spill] sm:$0xff] %v4858_v59 }
 0x500   :  { %1484 = vadd.xlane.f32.xlu0 %v1483_v5 }
 0x502   :  { %1182 = vadd.xlane.f32.xlu2 %v1181_v47  ;;  %1222 = vadd.xlane.f32.xlu1 %v1221_v55  ;;  %v1459_v47 = vsel %vm915_vm6, %v4658_v60, 0.0  ;;  %v4869_v58 = vpop.permute.xlu2 %1370  ;;  %v1429_v55 = vmul.f32 %v4784_v0, %v4472_v31  ;;  %v6101_v60 = vperm.slane %v4469_v30, 7  ;;  %v1453_v31 = vsel %vm915_vm6, %v4525_v46, 0.0 }
 0x503   :  { %6150 = vst [vmem:[#allocation28_spill] sm:$0xff] %v4869_v58 }
 0x504   :  { %v4836_v35 = vpop.xlane.xlu0 %1176 }
 0x50a   :  { %1191 = vadd.xlane.f32.xlu2 %v1190_v21  ;;  %1231 = vadd.xlane.f32.xlu1 %v1230_v28  ;;  %v4863_v29 = vpop.permute.xlu1 %1364 }
 0x50b   :  { %6149 = vst [vmem:[#allocation27_spill] sm:$0xff] %v4863_v29 }
 0x512   :  { %1200 = vadd.xlane.f32.xlu2 %v1199_v7  ;;  %1243 = vadd.xlane.f32.xlu1 %v1242_v8  ;;  %v1523_v21 = vpop.permute.xlu1 %1522  ;;  %v4881_v7 = vpop.permute.xlu2 %1496 }
 0x514   :  { %1580 = vperm.xlu0 %3982, %v1569_v39  }
 0x51a   :  { %1225 = vadd.xlane.f32.xlu2 %v1224_v40  ;;  %1451 = vadd.xlane.f32.xlu1 %v1450_v23  ;;  %v4894_v45 = vpop.permute.xlu2 %1509  ;;  %v1248_v40 = vsel %vm915_vm6, %v4700_v62, 0.0  ;;  %v1480_v23 = vsel %vm915_vm6, %v4641_v41, 0.0  ;;  %v1465_v41 = vsel %vm915_vm6, %v4690_v24, 0.0 }
 0x51b   :  { %v4849_v15 = vpop.xlane.xlu0 %1185 }
 0x51c   :  { %3995 = vset.pattern.permute.xlu0 %v4425_v4  ;;  %v1239_v4 = vsel %vm915_vm6, %v4574_v3, 0.0  ;;  %v1447_v3 = vsel %vm915_vm6, %v1429_v55, 0.0 }
 0x522   :  { %1234 = vadd.xlane.f32.xlu2 %v1233_v18  ;;  %1246 = vadd.xlane.f32.xlu1 %v1245_v13  ;;  %v4902_v46 = vpop.permute.xlu2 %1515  ;;  %v1216_v18 = vmul.f32 %v4718_v34, %v4707_v38  ;;  %v1257_v38 = vsel %vm915_vm6, %v4644_v42, 0.0 }
 0x523   :  { %v4860_v5 = vpop.xlane.xlu0 %1194  ;;  %6152 = vst [vmem:[#allocation30_spill] sm:$0xff] %v4902_v46 }
 0x524   :  { %1286 = vperm.xlu0 %3995, %v4437_v26   ;;  %v1218_v26 = vmul.f32 %v4626_v27, %v4608_v16  ;;  %v1536_v27 = vpop.permute.xlu1 %1535  ;;  %v1254_v13 = vsel %vm915_vm6, %v1216_v18, 0.0  ;;  %v4942_v18 = vadd.f32 1.0, %v4836_v35 }
 0x526   :  { %v1260_v28 = vsel %vm915_vm6, %v1218_v26, 0.0  ;;  %6157 = vst [vmem:[#allocation35_spill] sm:$0xff] %v4942_v18  ;;  %vm1738_vm5 = vweird.f32 %v4942_v18 }
 0x52a   :  { %1240 = vadd.xlane.f32.xlu2 %v1239_v4  ;;  %1460 = vadd.xlane.f32.xlu1 %v1459_v47  ;;  %v4909_v62 = vpop.permute.xlu2 %1561 }
 0x52b   :  { %v4871_v14 = vpop.xlane.xlu0 %1203 }
 0x52c   :  { %6151 = vst [vmem:[#allocation29_spill] sm:$0xff] %v4871_v14  ;;  %1299 = vperm.xlu0 %3995, %v4449_v20   ;;  %v1219_v20 = vmul.f32 %v4737_v36, %v4662_v61  ;;  %v1549_v36 = vpop.permute.xlu1 %1548 }
 0x52e   :  { %v1263_v16 = vsel %vm915_vm6, %v1219_v20, 0.0 }
 0x532   :  { %1448 = vadd.xlane.f32.xlu2 %v1447_v3  ;;  %1261 = vadd.xlane.f32.xlu1 %v1260_v28  ;;  %v4915_v3 = vpop.permute.xlu2 %1567 }
 0x533   :  { %v4883_v8 = vpop.xlane.xlu0 %1228  ;;  %6153 = vst [vmem:[#allocation31_spill] sm:$0xff] %v4915_v3 }
 0x534   :  { %1587 = vperm.xlu0 %3995, %v6101_v60  }
 0x53a   :  { %1454 = vadd.xlane.f32.xlu2 %v1453_v31  ;;  %1264 = vadd.xlane.f32.xlu1 %v1263_v16  ;;  %v1471_v16 = vsel %vm915_vm6, %v4703_v63, 0.0 }
 0x53b   :  { %v4892_v0 = vpop.xlane.xlu0 %1237 }
 0x53c   :  { %v5165_v59 = vadd.f32 %v4751_v1, %v4892_v0 }
 0x542   :  { %1249 = vadd.xlane.f32.xlu2 %v1248_v40  ;;  %1481 = vadd.xlane.f32.xlu1 %v1480_v23  ;;  %v4932_v40 = vadd.f32 1.0, %v4821_v50  ;;  %v1266_v50 = vsel %vm915_vm6, %v4675_v9, 0.0 }
 0x543   :  { %v4900_v61 = vpop.xlane.xlu0 %1445 }
 0x544   :  { %6155 = vst [vmem:[#allocation33_spill] sm:$0xff] %v4932_v40  ;;  %vm1678_vm15 = vweird.f32 %v4932_v40  ;;  %v1684_v10 = vand.u32 2147483648, %v4932_v40 }
 0x54a   :  { %1255 = vadd.xlane.f32.xlu2 %v1254_v13 }
 0x54b   :  { %v1458_v4 = vpop.xlane.xlu0 %1457 }
 0x54c   :  { %v4907_v47 = vadd.f32 %v1523_v21, %v1458_v4 }
 0x54d   :  { %v1159_v55 = vpop.xlane.xlu1 %1158 }
 0x54e   :  { %v4927_v24 = vadd.f32 1.0, %v1159_v55 }
 0x550   :  { %6154 = vst [vmem:[#allocation32_spill] sm:$0xff] %v4927_v24  ;;  %4068 = vrcp.f32 %v4927_v24  ;;  %vm1648_vm2 = vweird.f32 %v4927_v24 }
 0x551   :  { %4070 = vrcp.f32 %v4932_v40 }
 0x552   :  { %1466 = vadd.xlane.f32.xlu2 %v1465_v41  ;;  %v4959_v41 = vadd.f32 1.0, %v4849_v15 }
 0x553   :  { %v4913_v26 = vpop.xlane.xlu0 %1252 }
 0x555   :  { %v1171_v28 = vpop.xlane.xlu1 %1170 }
 0x556   :  { %v4977_v25 = vadd.f32 1.0, %v1171_v28  ;;  %v1398_v28 = vadd.f32 %v4844_v2, %v4913_v26  ;;  %v1654_v26 = vand.u32 2147483648, %v4927_v24 }
 0x558   :  { %6159 = vst [vmem:[#allocation37_spill] sm:$0xff] %v4977_v25  ;;  %v1655_v2 = vor.u32 1.1754944e-38, %v1654_v26 }
 0x55a   :  { %1258 = vadd.xlane.f32.xlu2 %v1257_v38 }
 0x55b   :  { %v1464_v34 = vpop.xlane.xlu0 %1463  ;;  %1574 = vperm.xlu1 %3989, %v1569_v39  }
 0x55c   :  { %v4921_v21 = vadd.f32 %v1536_v27, %v1464_v34  ;;  %v4966_v34 = vadd.f32 1.0, %v4860_v5 }
 0x55d   :  { %v4923_v20 = vpop.xlane.xlu2 %1161  ;;  %v4925_v31 = vpop.xlane.xlu1 %1179 }
 0x562   :  { %1472 = vadd.xlane.f32.xlu2 %v1471_v16 }
 0x563   :  { %v1470_v42 = vpop.xlane.xlu0 %1469  ;;  %3996 = vset.pattern.permute.xlu1 %v4429_v6  ;;  %v4949_v6 = vpop.eup %4068 }
 0x564   :  { %v4936_v39 = vadd.f32 %v1549_v36, %v1470_v42  ;;  %v4952_v36 = vpop.eup %4070  ;;  %v1644_v35 = vmul.f32 %v4949_v6, %v4927_v24  ;;  %v1477_v42 = vsel %vm915_vm6, %v4724_v52, 0.0  ;;  %vm1649_vm1 = vweird.f32 %v4949_v6 }
 0x565   :  { %v4938_v27 = vpop.xlane.xlu2 %1167  ;;  %v1189_v23 = vpop.xlane.xlu1 %1188  ;;  %v1674_v9 = vmul.f32 %v4952_v36, %v4932_v40  ;;  %vm1679_vm3 = vweird.f32 %v4952_v36  ;;  %vm5011_vm4 = vmor %vm1648_vm2, %vm1649_vm1  ;;  %vm1828_vm2 = vweird.f32 %v4966_v34 }
 0x566   :  { %6156 = vst [vmem:[#allocation34_spill] sm:$0xff] %v4936_v39  ;;  %v4944_v63 = vadd.f32 1.0, %v1189_v23  ;;  %v1645_v23 = vsub.f32 1.0, %v1644_v35  ;;  %vm5044_vm10 = vmor %vm1678_vm15, %vm1679_vm3 }
 0x567   :  { %v1675_v60 = vsub.f32 1.0, %v1674_v9 }
 0x568   :  { %6158 = vst [vmem:[#allocation36_spill] sm:$0xff] %v4944_v63  ;;  %4072 = vrcp.f32 %v4944_v63  ;;  %v1804_v43 = vand.u32 2147483648, %v4944_v63  ;;  %v1802_v17 = vand.u32 2147483647, %v4944_v63  ;;  %v1646_v35 = vmul.f32 %v4949_v6, %v1645_v23 }
 0x569   :  { %4074 = vrcp.f32 %v4942_v18  ;;  %vm1798_vm12 = vweird.f32 %v4944_v63  ;;  %v1676_v29 = vmul.f32 %v4952_v36, %v1675_v60 }
 0x56a   :  { %1267 = vadd.xlane.f32.xlu2 %v1266_v50  ;;  %4076 = vrcp.f32 %v4959_v41  ;;  %v1805_v58 = vor.u32 1.1754944e-38, %v1804_v43  ;;  %vm1803_vm0 = vcmp.eq.f32.partialorder %v1802_v17, 8.507059e+37  ;;  %v1647_v43 = vadd.f32 %v4949_v6, %v1646_v35 }
 0x56b   :  { %4078 = vrcp.f32 %v4966_v34  ;;  %v1682_v17 = vand.u32 2147483647, %v4932_v40 }
 0x56c   :  { %4080 = vrcp.f32 %v4977_v25 }
 0x56d   :  { %v1174_v13 = vpop.xlane.xlu2 %1173  ;;  %v4954_v4 = vpop.xlane.xlu1 %1197 }
 0x56e   :  { %v4073_v55 = vpop.eup %4072 }
 0x56f   :  { %v4963_v38 = vpop.eup %4074  ;;  %v1794_v16 = vmul.f32 %v4073_v55, %v4944_v63  ;;  %vm1799_vm7 = vweird.f32 %v4073_v55 }
 0x570   :  { %v1734_v15 = vmul.f32 %v4963_v38, %v4942_v18  ;;  %vm1800_vm14 = vmor %vm1798_vm12, %vm1799_vm7  ;;  %v4990_v23 = vpop.eup %4076  ;;  %vm1739_vm8 = vweird.f32 %v4963_v38  ;;  %vm1683_vm12 = vcmp.eq.f32.partialorder %v1682_v17, 8.507059e+37 }
 0x571   :  { %v1795_v50 = vsub.f32 1.0, %v1794_v16  ;;  %6160 = vst [vmem:[#allocation38_spill] sm:$0xff] %v4990_v23  ;;  %v1779_v35 = vmul.f32 %v4990_v23, %v4959_v41  ;;  %vm5059_vm11 = vmor %vm1738_vm5, %vm1739_vm8  ;;  %vm1708_vm5 = vweird.f32 %v4977_v25 }
 0x572   :  { %1478 = vadd.xlane.f32.xlu2 %v1477_v42  ;;  %v1735_v9 = vsub.f32 1.0, %v1734_v15  ;;  %v4993_v15 = vadd.f32 1.0, %v1174_v13 }
 0x573   :  { %v1796_v5 = vmul.f32 %v4073_v55, %v1795_v50  ;;  %v1476_v50 = vpop.xlane.xlu0 %1475 }
 0x574   :  { %6161 = vst [vmem:[#allocation39_spill] sm:$0xff] %v4993_v15  ;;  %v1621_v14 = vadd.f32 %v4909_v62, %v1476_v50  ;;  %4082 = vrcp.f32 %v4993_v15 }
 0x575   :  { %v4979_v52 = vpop.xlane.xlu2 %1182  ;;  %v1223_v16 = vpop.xlane.xlu1 %1222  ;;  %v1797_v42 = vadd.f32 %v4073_v55, %v1796_v5 }
 0x576   :  { %v4996_v5 = vpop.eup %4078 }
 0x577   :  { %v1801_v3 = vsel %vm1800_vm14, %v4073_v55, %v1797_v42  ;;  %6162 = vst [vmem:[#allocation40_spill] sm:$0xff] %v4996_v5  ;;  %v1736_v55 = vmul.f32 %v4963_v38, %v1735_v9  ;;  %v1651_v42 = vsel %vm5011_vm4, %v4949_v6, %v1647_v43  ;;  %v1388_v9 = vadd.f32 %v4807_v44, %v1223_v16  ;;  %v5031_v54 = vpop.eup %4080 }
 0x578   :  { %v1806_v22 = vsel %vm1803_vm0, %v1805_v58, %v1801_v3  ;;  %v1652_v58 = vand.u32 2147483647, %v4927_v24  ;;  %v1742_v6 = vand.u32 2147483647, %v4942_v18  ;;  %v1744_v16 = vand.u32 2147483648, %v4942_v18 }
 0x579   :  { %v4998_v60 = vmul.f32 %v1806_v22, %v1398_v28  ;;  %v1893_v13 = vmul.f32 %v1806_v22, %v1621_v14  ;;  %v1824_v28 = vmul.f32 %v4996_v5, %v4966_v34  ;;  %v1737_v62 = vadd.f32 %v4963_v38, %v1736_v55 }
 0x57a   :  { %1487 = vadd.xlane.f32.xlu2 %v1486_v37  ;;  %v1677_v37 = vadd.f32 %v4952_v36, %v1676_v29  ;;  %vm1653_vm13 = vcmp.eq.f32.partialorder %v1652_v58, 8.507059e+37  ;;  %v1780_v55 = vsub.f32 1.0, %v1779_v35  ;;  %v1489_v35 = vsel %vm915_vm6, %v4677_v12, 0.0 }
 0x57b   :  { %v1909_v3 = vmul.f32 %v4998_v60, %v4998_v60  ;;  %v5038_v19 = vsel %vm1653_vm13, %v1655_v2, %v1651_v42  ;;  %vm1743_vm7 = vcmp.eq.f32.partialorder %v1742_v6, 8.507059e+37  ;;  %v5092_v6 = vpop.xlane.xlu0 %1484  ;;  %vm1784_vm14 = vweird.f32 %v4990_v23 }
 0x57c   :  { %v5052_v58 = vmul.f32 %v5038_v19, %v1388_v9  ;;  %v1681_v2 = vsel %vm5044_vm10, %v4952_v36, %v1677_v37  ;;  %v1704_v9 = vmul.f32 %v5031_v54, %v4977_v25  ;;  %v1741_v36 = vsel %vm5059_vm11, %v4963_v38, %v1737_v62 }
 0x57d   :  { %v5023_v14 = vpop.xlane.xlu2 %1191  ;;  %v5025_v50 = vpop.xlane.xlu1 %1231  ;;  %v1925_v29 = vsub.f32 %v1893_v13, %v1909_v3  ;;  %v5049_v3 = vadd.f32 1.0, %v4923_v20  ;;  %v1825_v13 = vsub.f32 1.0, %v1824_v28  ;;  %v1685_v20 = vor.u32 1.1754944e-38, %v1684_v10 }
 0x57e   :  { %6167 = vst [vmem:[#allocation41_spill] sm:$0xff] %v5052_v58  ;;  %v5073_v37 = vadd.f32 1.0, %v4925_v31  ;;  %v1745_v28 = vor.u32 1.1754944e-38, %v1744_v16  ;;  %v1781_v12 = vmul.f32 %v4990_v23, %v1780_v55  ;;  %v1611_v10 = vadd.f32 %v4881_v7, %v4900_v61 }
 0x57f   :  { %v1941_v43 = vmul.f32 %v1925_v29, %v4944_v63  ;;  %v5067_v63 = vpop.eup %4082  ;;  %v5075_v26 = vsel %vm1683_vm12, %v1685_v20, %v1681_v2  ;;  %4084 = vrcp.f32 %v5049_v3  ;;  %v1899_v42 = vmul.f32 %v5052_v58, %v5052_v58 }
 0x580   :  { %6170 = vst [vmem:[#allocation42_spill] sm:$0xff] %v5073_v37  ;;  %v1826_v31 = vmul.f32 %v4996_v5, %v1825_v13  ;;  %v1719_v7 = vmul.f32 %v5067_v63, %v4993_v15  ;;  %v1705_v61 = vsub.f32 1.0, %v1704_v9  ;;  %4086 = vrcp.f32 %v5073_v37 }
 0x581   :  { %v1957_v29 = vsub.f32 1.0, %v1941_v43  ;;  %v1883_v16 = vmul.f32 %v5038_v19, %v1611_v10  ;;  %v1789_v55 = vand.u32 2147483648, %v4959_v41  ;;  %v5102_v2 = vadd.f32 1.0, %v4954_v4 }
 0x582   :  { %v5105_v13 = vadd.f32 %v4990_v23, %v1781_v12  ;;  %v5112_v9 = vadd.f32 %v4996_v5, %v1826_v31  ;;  %vm1829_vm15 = vweird.f32 %v4996_v5  ;;  %vm1783_vm0 = vweird.f32 %v4959_v41 }
 0x583   :  { %v1973_v43 = vmul.f32 %v1957_v29, %v1806_v22  ;;  %v5088_v22 = vsel %vm1743_vm7, %v1745_v28, %v1741_v36  ;;  %6173 = vst [vmem:[#allocation45_spill] sm:$0xff] %v5102_v2  ;;  %v1834_v29 = vand.u32 2147483648, %v4966_v34  ;;  %v1915_v20 = vsub.f32 %v1883_v16, %v1899_v42  ;;  %vm5125_vm1 = vmor %vm1783_vm0, %vm1784_vm14 }
 0x584   :  { %6174 = vst [vmem:[#allocation46_spill] sm:$0xff] %v5105_v13  ;;  %v1720_v36 = vsub.f32 1.0, %v1719_v7  ;;  %v1706_v28 = vmul.f32 %v5031_v54, %v1705_v61  ;;  %v5121_v12 = vadd.f32 1.0, %v4938_v27  ;;  %v5129_v10 = vor.u32 1.1754944e-38, %v1789_v55  ;;  %vm5136_vm3 = vmor %vm1828_vm2, %vm1829_vm15 }
 0x585   :  { %v5083_v38 = vpop.xlane.xlu2 %1200  ;;  %v5085_v62 = vpop.xlane.xlu1 %1243  ;;  %1490 = vadd.xlane.f32.xlu1 %v1489_v35  ;;  %v5090_v17 = vmax.f32 %v1973_v43, 0.0  ;;  %v5109_v35 = vadd.f32 1.0, %v4979_v52  ;;  %6176 = vst [vmem:[#allocation48_spill] sm:$0xff] %v5112_v9  ;;  %v6177_v52 = vmov 0  ;;  %v1712_v31 = vand.u32 2147483647, %v4977_v25 }
 0x586   :  { %6171 = vst [vmem:[#allocation43_spill] sm:$0xff] %v5083_v38  ;;  %v5118_v43 = vpop.eup %4084  ;;  %v6178_v52 = vsel %vm5125_vm1, 4294967295, %v6177_v52  ;;  %v1714_v7 = vand.u32 2147483648, %v4977_v25  ;;  %v6181_v27 = vmov 0  ;;  %v5140_v61 = vor.u32 1.1754944e-38, %v1834_v29  ;;  %v5156_v58 = vpop.permute.xlu0 %1580 }
 0x587   :  { %6172 = vst [vmem:[#allocation44_spill] sm:$0xff] %v5085_v62  ;;  %4088 = vrsqrt.f32 %v5090_v17  ;;  %v6182_v27 = vsel %vm5136_vm3, 4294967295, %v6181_v27  ;;  %v5142_v16 = vpop.eup %4086  ;;  %v1931_v55 = vmul.f32 %v1915_v20, %v4927_v24  ;;  %v1659_v33 = vmul.f32 %v5118_v43, %v5049_v3 }
 0x588   :  { %6175 = vst [vmem:[#allocation47_spill] sm:$0xff] %v5109_v35  ;;  %4090 = vrcp.f32 %v5102_v2  ;;  %v1721_v20 = vmul.f32 %v5067_v63, %v1720_v36  ;;  %v1707_v24 = vadd.f32 %v5031_v54, %v1706_v28  ;;  %vm1709_vm4 = vweird.f32 %v5031_v54 }
 0x589   :  { %6179 = vst [vmem:[#allocation49_spill] sm:$0xff] %v6178_v52  ;;  %4092 = vrcp.f32 %v5109_v35  ;;  %v1669_v29 = vand.u32 2147483648, %v5049_v3  ;;  %v1749_v62 = vmul.f32 %v5142_v16, %v5073_v37  ;;  %vm5173_vm8 = vcmp.eq.f32.partialorder %v1712_v31, 8.507059e+37  ;;  %vm5182_vm13 = vmor %vm1708_vm5, %vm1709_vm4 }
 0x58a   :  { %6180 = vst [vmem:[#allocation50_spill] sm:$0xff] %v5129_v10  ;;  %4094 = vrcp.f32 %v5121_v12  ;;  %v1715_v28 = vor.u32 1.1754944e-38, %v1714_v7  ;;  %v5179_v0 = vmul.f32 %v5088_v22, %v4921_v21  ;;  %v1947_v1 = vsub.f32 1.0, %v1931_v55 }
 0x58b   :  { %6183 = vst [vmem:[#allocation51_spill] sm:$0xff] %v6182_v27  ;;  %v1660_v27 = vsub.f32 1.0, %v1659_v33  ;;  %v1722_v31 = vadd.f32 %v5067_v63, %v1721_v20  ;;  %vm1724_vm10 = vweird.f32 %v5067_v63  ;;  %v1711_v21 = vsel %vm5182_vm13, %v5031_v54, %v1707_v24 }
 0x58c   :  { %6184 = vst [vmem:[#allocation52_spill] sm:$0xff] %v5140_v61  ;;  %v1667_v55 = vand.u32 2147483647, %v5049_v3  ;;  %v5196_v38 = vor.u32 1.1754944e-38, %v1669_v29  ;;  %v1729_v10 = vand.u32 2147483648, %v4993_v15  ;;  %v1750_v33 = vsub.f32 1.0, %v1749_v62 }
 0x58d   :  { %v5146_v4 = vpop.xlane.xlu2 %1225  ;;  %v1452_v42 = vpop.xlane.xlu1 %1451  ;;  %6185 = vst [vmem:[#allocation53_spill] sm:$0xff] %v5156_v58  ;;  %vm1664_vm11 = vweird.f32 %v5118_v43  ;;  %vm1723_vm7 = vweird.f32 %v4993_v15  ;;  %v1727_v20 = vand.u32 2147483647, %v4993_v15  ;;  %v1963_v54 = vmul.f32 %v1947_v1, %v5038_v19 }
 0x58e   :  { %v4089_v44 = vpop.eup %4088  ;;  %vm5211_vm12 = vmor %vm1723_vm7, %vm1724_vm10  ;;  %v5217_v62 = vsel %vm5173_vm8, %v1715_v28, %v1711_v21  ;;  %v1661_v1 = vmul.f32 %v5118_v43, %v1660_v27  ;;  %vm1663_vm14 = vweird.f32 %v5049_v3  ;;  %v1613_v36 = vadd.f32 %v4894_v45, %v1452_v42 }
 0x58f   :  { %v2116_v11 = vmul.f32 %v4089_v44, %v5090_v17  ;;  %v5186_v5 = vpop.eup %4090  ;;  %v1726_v46 = vsel %vm5211_vm12, %v5067_v63, %v1722_v31  ;;  %v1730_v21 = vor.u32 1.1754944e-38, %v1729_v10  ;;  %v5236_v39 = vmul.f32 %v5142_v16, %v1750_v33  ;;  %vm5285_vm8 = vmor %vm1663_vm14, %vm1664_vm11 }
 0x590   :  { %v5193_v7 = vpop.eup %4092  ;;  %v1839_v52 = vmul.f32 %v5186_v5, %v5102_v2  ;;  %vm1728_vm15 = vcmp.eq.f32.partialorder %v1727_v20, 8.507059e+37  ;;  %v5240_v58 = vmul.f32 %v5217_v62, %v4907_v47  ;;  %vm2122_vm0 = vcmp.eq.f32.partialorder %v5090_v17, inf }
 0x591   :  { %v2117_v9 = vmul.f32 %v4089_v44, %v2116_v11  ;;  %v5203_v61 = vpop.eup %4094  ;;  %v1764_v19 = vmul.f32 %v5193_v7, %v5109_v35  ;;  %v5247_v63 = vsel %vm1728_vm15, %v1730_v21, %v1726_v46  ;;  %v2125_v10 = vand.u32 2147483648, %v5090_v17 }
 0x592   :  { %v1689_v27 = vmul.f32 %v5203_v61, %v5121_v12  ;;  %v1885_v42 = vmul.f32 %v5075_v26, %v1613_v36  ;;  %vm2124_vm2 = vcmp.eq.f32.partialorder %v5090_v17, 0.0  ;;  %v1662_v46 = vadd.f32 %v5118_v43, %v1661_v1 }
 0x593   :  { %v2118_v11 = vmul.f32 0.5, %v2117_v9  ;;  %v5242_v9 = vmax.f32 %v1963_v54, 0.0  ;;  %vm5258_vm4 = vcmp.eq.f32.partialorder %v1667_v55, 8.507059e+37  ;;  %vm1843_vm5 = vweird.f32 %v5102_v2 }
 0x594   :  { %v1690_v33 = vsub.f32 1.0, %v1689_v27  ;;  %v1847_v55 = vand.u32 2147483647, %v5102_v2  ;;  %v6194_v27 = vperm.slane %v4469_v30, 7  ;;  %v1666_v30 = vsel %vm5285_vm8, %v5118_v43, %v1662_v46 }
 0x595   :  { %v1235_v29 = vpop.xlane.xlu2 %1234  ;;  %v5207_v23 = vpop.xlane.xlu1 %1246  ;;  %v2119_v13 = vsub.f32 1.5, %v2118_v11  ;;  %4096 = vrsqrt.f32 %v5242_v9  ;;  %vm1694_vm13 = vweird.f32 %v5203_v61  ;;  %vm1844_vm10 = vweird.f32 %v5186_v5 }
 0x596   :  { %v5225_v24 = vpop.permute.xlu0 %1286  ;;  %vm1769_vm11 = vweird.f32 %v5193_v7  ;;  %v1774_v46 = vand.u32 2147483648, %v5109_v35  ;;  %vm1693_vm7 = vweird.f32 %v5121_v12  ;;  %vm1768_vm12 = vweird.f32 %v5109_v35 }
 0x597   :  { %v1390_v28 = vadd.f32 %v5225_v24, %v4883_v8  ;;  %v2120_v11 = vmul.f32 %v4089_v44, %v2119_v13  ;;  %v1840_v8 = vsub.f32 1.0, %v1839_v52  ;;  %v1765_v13 = vsub.f32 1.0, %v1764_v19  ;;  %vm5334_vm15 = vmor %vm1768_vm12, %vm1769_vm11 }
 0x598   :  { %v5264_v52 = vmul.f32 %v5247_v63, %v5165_v59  ;;  %vm5323_vm14 = vcmp.eq.f32.partialorder %v1847_v55, 8.507059e+37  ;;  %vm1754_vm11 = vweird.f32 %v5142_v16  ;;  %vm2004_vm12 = vcmp.eq.f32.partialorder %v5242_v9, 0.0 }
 0x599   :  { %v5245_v45 = vmul.f32 %v5075_v26, %v1390_v28  ;;  %v2121_v44 = vmul.f32 %v2120_v11, %v5090_v17  ;;  %v1766_v1 = vmul.f32 %v5193_v7, %v1765_v13 }
 0x59b   :  { %v1901_v47 = vmul.f32 %v5245_v45, %v5245_v45  ;;  %v2123_v31 = vsel %vm2122_vm0, %v5090_v17, %v2121_v44  ;;  %v1841_v44 = vmul.f32 %v5186_v5, %v1840_v8  ;;  %v1767_v43 = vadd.f32 %v5193_v7, %v1766_v1  ;;  %vm5347_vm0 = vmor %vm1843_vm5, %vm1844_vm10 }
 0x59c   :  { %v2126_v54 = vsel %vm2124_vm2, %v2125_v10, %v2123_v31  ;;  %v1849_v10 = vand.u32 2147483648, %v5102_v2  ;;  %v1772_v31 = vand.u32 2147483647, %v5109_v35  ;;  %v1691_v1 = vmul.f32 %v5203_v61, %v1690_v33  ;;  %vm5402_vm10 = vmor %vm1693_vm7, %vm1694_vm13 }
 0x59d   :  { %v1917_v19 = vsub.f32 %v1885_v42, %v1901_v47  ;;  %v1241_v36 = vpop.xlane.xlu2 %1240  ;;  %v1461_v28 = vpop.xlane.xlu1 %1460  ;;  %v5269_v17 = vsub.f32 %v4998_v60, %v2126_v54  ;;  %v1904_v42 = vmul.f32 %v5264_v52, %v5264_v52 }
 0x59e   :  { %v1394_v21 = vadd.f32 %v4827_v32, %v1241_v36  ;;  %v1616_v59 = vadd.f32 %v4792_v57, %v1461_v28  ;;  %v5275_v11 = vpop.permute.xlu0 %1299  ;;  %1593 = vperm.xlu1 %3996, %v6194_v27   ;;  %v5309_v36 = vpop.eup %4096  ;;  %v1842_v28 = vadd.f32 %v5186_v5, %v1841_v44  ;;  %v1850_v20 = vor.u32 1.1754944e-38, %v1849_v10 }
 0x59f   :  { %v1933_v13 = vmul.f32 %v1917_v19, %v4932_v40  ;;  %v1392_v57 = vadd.f32 %v5275_v11, %v1235_v29  ;;  %v1996_v55 = vmul.f32 %v5309_v36, %v5242_v9  ;;  %vm1773_vm2 = vcmp.eq.f32.partialorder %v1772_v31, 8.507059e+37  ;;  %v6227_v40 = vld [vmem:[#allocation52_spill] sm:$0xff] }
 0x5a0   :  { %v5295_v8 = vmul.f32 %v5088_v22, %v1394_v21  ;;  %v1888_v47 = vmul.f32 %v5247_v63, %v1616_v59  ;;  %v1389_v21 = vadd.f32 %v4819_v53, %v5146_v4  ;;  %v1692_v31 = vadd.f32 %v5203_v61, %v1691_v1 }
 0x5a1   :  { %v1949_v54 = vsub.f32 1.0, %v1933_v13  ;;  %v5304_v29 = vmul.f32 %v5217_v62, %v1392_v57  ;;  %v6206_v1 = vand.u32 2147483647, %v4966_v34 }
 0x5a2   :  { %v1920_v19 = vsub.f32 %v1888_v47, %v1904_v42  ;;  %v1905_v60 = vmul.f32 %v5295_v8, %v5295_v8 }
 0x5a3   :  { %v1965_v59 = vmul.f32 %v1949_v54, %v5075_v26  ;;  %v1903_v27 = vmul.f32 %v5304_v29, %v5304_v29  ;;  %v5330_v26 = vsel %vm5258_vm4, %v5196_v38, %v1666_v30  ;;  %v1771_v30 = vsel %vm5334_vm15, %v5193_v7, %v1767_v43 }
 0x5a4   :  { %v1936_v13 = vmul.f32 %v1920_v19, %v4993_v15  ;;  %v5358_v54 = vmul.f32 %v5330_v26, %v1389_v21  ;;  %v1775_v19 = vor.u32 1.1754944e-38, %v1774_v46  ;;  %v1997_v46 = vmul.f32 %v5309_v36, %v1996_v55 }
 0x5a5   :  { %v5338_v33 = vmax.f32 %v1965_v59, 0.0  ;;  %v1919_v44 = vsub.f32 %v5240_v58, %v1903_v27  ;;  %v1449_v42 = vpop.xlane.xlu2 %1448  ;;  %v1262_v47 = vpop.xlane.xlu1 %1261  ;;  %v1846_v58 = vsel %vm5347_vm0, %v5186_v5, %v1842_v28  ;;  %v1396_v59 = vadd.f32 %v4842_v56, %v5207_v23 }
 0x5a6   :  { %v1921_v27 = vsub.f32 %v5179_v0, %v1905_v60  ;;  %v1952_v10 = vsub.f32 1.0, %v1936_v13  ;;  %v1612_v7 = vadd.f32 %v4781_v48, %v1449_v42  ;;  %v5366_v43 = vsel %vm1773_vm2, %v1775_v19, %v1771_v30 }
 0x5a7   :  { %v1935_v15 = vmul.f32 %v1919_v44, %v4977_v25  ;;  %4098 = vrsqrt.f32 %v5338_v33  ;;  %v1401_v5 = vadd.f32 %v4768_v51, %v1262_v47  ;;  %vm1753_vm4 = vweird.f32 %v5073_v37 }
 0x5a8   :  { %v1968_v23 = vmul.f32 %v1952_v10, %v5247_v63  ;;  %v1884_v28 = vmul.f32 %v5330_v26, %v1612_v7  ;;  %v6203_v21 = vand.u32 2147483647, %v4959_v41  ;;  %vm5382_vm8 = vcmp.eq.f32.partialorder %v6206_v1, 8.507059e+37  ;;  %vm5452_vm7 = vmor %vm1753_vm4, %vm1754_vm11 }
 0x5a9   :  { %v1951_v0 = vsub.f32 1.0, %v1935_v15  ;;  %v5387_v13 = vadd.f32 1.0, %v5023_v14  ;;  %v5391_v15 = vsel %vm5323_vm14, %v1850_v20, %v1846_v58  ;;  %v1900_v63 = vmul.f32 %v5358_v54, %v5358_v54  ;;  %v6212_v58 = vld [vmem:[#allocation53_spill] sm:$0xff] }
 0x5aa   :  { %vm5376_vm5 = vcmp.eq.f32.partialorder %v6203_v21, 8.507059e+37  ;;  %v5396_v4 = vmul.f32 %v5366_v43, %v1396_v59  ;;  %v1937_v14 = vmul.f32 %v1921_v27, %v4942_v18  ;;  %v5407_v42 = vmax.f32 %v1968_v23, 0.0  ;;  %v6225_v18 = vld [vmem:[#allocation48_spill] sm:$0xff] }
 0x5ab   :  { %v1967_v57 = vmul.f32 %v1951_v0, %v5217_v62  ;;  %v5411_v55 = vmul.f32 %v5391_v15, %v1401_v5  ;;  %v1391_v38 = vadd.f32 %v4817_v49, %v5025_v50  ;;  %v1696_v20 = vsel %vm5402_vm10, %v5203_v61, %v1692_v31 }
 0x5ac   :  { %v6211_v30 = vand.u32 2147483648, %v5121_v12  ;;  %v1624_v19 = vadd.f32 %v6212_v58, %v5092_v6  ;;  %v1998_v27 = vmul.f32 0.5, %v1997_v46  ;;  %4100 = vrsqrt.f32 %v5407_v42  ;;  %v6220_v58 = vld [vmem:[#allocation46_spill] sm:$0xff] }
 0x5ad   :  { %v1455_v59 = vpop.xlane.xlu2 %1454  ;;  %v5423_v62 = vmax.f32 %v1967_v57, 0.0  ;;  %v1916_v10 = vsub.f32 %v1884_v28, %v1900_v63  ;;  %v5425_v7 = vpop.eup %4098  ;;  %v6213_v50 = vand.u32 2147483647, %v5121_v12  ;;  %v1752_v61 = vadd.f32 %v5142_v16, %v5236_v39  ;;  %v6214_v28 = vld [vmem:[#allocation34_spill] sm:$0xff] }
 0x5ae   :  { %v1700_v47 = vor.u32 1.1754944e-38, %v6211_v30  ;;  %v1907_v6 = vmul.f32 %v5396_v4, %v5396_v4  ;;  %4102 = vrcp.f32 %v5387_v13  ;;  %v1953_v5 = vsub.f32 1.0, %v1937_v14  ;;  %v6229_v14 = vld [vmem:[#allocation43_spill] sm:$0xff] }
 0x5af   :  { %vm1698_vm13 = vcmp.eq.f32.partialorder %v6213_v50, 8.507059e+37  ;;  %v1912_v46 = vmul.f32 %v5411_v55, %v5411_v55  ;;  %v1759_v0 = vand.u32 2147483648, %v5073_v37  ;;  %v1891_v39 = vmul.f32 %v5366_v43, %v6214_v28  ;;  %v6224_v28 = vld [vmem:[#allocation40_spill] sm:$0xff] }
 0x5b0   :  { %v5435_v31 = vsel %vm1698_vm13, %v1700_v47, %v1696_v20  ;;  %4104 = vrsqrt.f32 %v5423_v62  ;;  %v1999_v21 = vsub.f32 1.5, %v1998_v27  ;;  %v1896_v1 = vmul.f32 %v5391_v15, %v1624_v19  ;;  %v6219_v47 = vld [vmem:[#allocation38_spill] sm:$0xff] }
 0x5b1   :  { %v5440_v23 = vmul.f32 %v5435_v31, %v1391_v38  ;;  %v2020_v63 = vmul.f32 %v5425_v7, %v5338_v33  ;;  %v1932_v44 = vmul.f32 %v1916_v10, %v5049_v3  ;;  %v1923_v57 = vsub.f32 %v1891_v39, %v1907_v6  ;;  %v6217_v38 = vld [vmem:[#allocation30_spill] sm:$0xff]  ;;  %v6231_v10 = vld [vmem:[#allocation23_spill] sm:$0xff] }
 0x5b2   :  { %v1614_v20 = vadd.f32 %v6217_v38, %v1455_v59  ;;  %v6221_v27 = vsel %vm5125_vm1, %v6219_v47, %v6220_v58  ;;  %v6222_v19 = vld [vmem:[#allocation50_spill] sm:$0xff]  ;;  %v6226_v25 = vsel %vm5136_vm3, %v6224_v28, %v6225_v18  ;;  %v4101_v59 = vpop.eup %4100  ;;  %v1756_v39 = vsel %vm5452_vm7, %v5142_v16, %v1752_v61 }
 0x5b3   :  { %v5465_v50 = vsel %vm5376_vm5, %v6222_v19, %v6221_v27  ;;  %v5475_v6 = vsel %vm5382_vm8, %v6227_v40, %v6226_v25  ;;  %v1969_v38 = vmul.f32 %v1953_v5, %v5088_v22  ;;  %v1928_v48 = vsub.f32 %v1896_v1, %v1912_v46 }
 0x5b4   :  { %v1760_v30 = vor.u32 1.1754944e-38, %v1759_v0  ;;  %v2056_v47 = vmul.f32 %v4101_v59, %v5407_v42  ;;  %v1948_v58 = vsub.f32 1.0, %v1932_v44  ;;  %v1886_v27 = vmul.f32 %v5435_v31, %v1614_v20  ;;  %v5485_v25 = vpop.eup %4102 }
 0x5b5   :  { %v5483_v18 = vpop.xlane.xlu2 %1249  ;;  %v4282_v19 = vmov 0   ;;  %v2000_v40 = vmul.f32 %v5309_v36, %v1999_v21  ;;  %v1902_v16 = vmul.f32 %v5440_v23, %v5440_v23  ;;  %v6228_v22 = vand.u32 2147483647, %v5073_v37 }
 0x5b6   :  { %4009 = vset.pattern.permute.xlu0 %v4282_v19  ;;  %v2021_v60 = vmul.f32 %v5425_v7, %v2020_v63  ;;  %3997 = vset.pattern.permute.xlu2 %v4282_v19  ;;  %v4105_v61 = vpop.eup %4104  ;;  %vm2002_vm3 = vcmp.eq.f32.partialorder %v5242_v9, inf  ;;  %v1939_v46 = vmul.f32 %v1923_v57, %v5109_v35  ;;  %v2057_v0 = vmul.f32 %v4101_v59, %v2056_v47  ;;  %v6230_v63 = vld [vmem:[#allocation44_spill] sm:$0xff] }
 0x5b7   :  { %vm1758_vm1 = vcmp.eq.f32.partialorder %v6228_v22, 8.507059e+37  ;;  %4003 = vset.pattern.permute.xlu1 %v4282_v19  ;;  %v5497_v1 = vmax.f32 %v1969_v38, 0.0  ;;  %v2044_v36 = vmul.f32 %v4105_v61, %v5423_v62  ;;  %v1944_v21 = vmul.f32 %v1928_v48, %v5102_v2 }
 0x5b8   :  { %v5494_v5 = vsel %vm1758_vm1, %v1760_v30, %v1756_v39  ;;  %v1918_v44 = vsub.f32 %v1886_v27, %v1902_v16  ;;  %v5502_v20 = vadd.f32 1.0, %v6229_v14  ;;  %v1395_v28 = vadd.f32 %v6231_v10, %v6230_v63  ;;  %v5510_v27 = vpop.xlane.xlu1 %1264 }
 0x5b9   :  { %v2058_v22 = vmul.f32 0.5, %v2057_v0  ;;  %v1964_v39 = vmul.f32 %v1948_v58, %v5330_v26  ;;  %v2001_v57 = vmul.f32 %v2000_v40, %v5242_v9  ;;  %v2022_v30 = vmul.f32 0.5, %v2021_v60 }
 0x5ba   :  { %v2045_v47 = vmul.f32 %v4105_v61, %v2044_v36  ;;  %v1934_v38 = vmul.f32 %v1918_v44, %v5121_v12  ;;  %v1955_v19 = vsub.f32 1.0, %v1939_v46  ;;  %v1809_v16 = vmul.f32 %v5485_v25, %v5387_v13 }
 0x5bb   :  { %v2059_v48 = vsub.f32 1.5, %v2058_v22  ;;  %4106 = vrsqrt.f32 %v5497_v1  ;;  %v1960_v14 = vsub.f32 1.0, %v1944_v21  ;;  %v2005_v58 = vand.u32 2147483648, %v5242_v9 }
 0x5bc   :  { %v2046_v0 = vmul.f32 0.5, %v2045_v47  ;;  %v1950_v26 = vsub.f32 1.0, %v1934_v38  ;;  %4108 = vrcp.f32 %v5502_v20  ;;  %v5517_v60 = vmax.f32 %v1964_v39, 0.0 }
 0x5bd   :  { %v2060_v40 = vmul.f32 %v4101_v59, %v2059_v48  ;;  %v5519_v36 = vpop.xlane.xlu2 %1255  ;;  %v2003_v46 = vsel %vm2002_vm3, %v5242_v9, %v2001_v57  ;;  %v5525_v44 = vmul.f32 %v5494_v5, %v1395_v28  ;;  %v2023_v63 = vsub.f32 1.5, %v2022_v30 }
 0x5be   :  { %v2047_v22 = vsub.f32 1.5, %v2046_v0  ;;  %v1971_v21 = vmul.f32 %v1955_v19, %v5366_v43  ;;  %vm2062_vm14 = vcmp.eq.f32.partialorder %v5407_v42, inf  ;;  %v1810_v59 = vsub.f32 1.0, %v1809_v16 }
 0x5bf   :  { %v2061_v47 = vmul.f32 %v2060_v40, %v5407_v42  ;;  %v2065_v38 = vand.u32 2147483648, %v5407_v42  ;;  %v1976_v48 = vmul.f32 %v1960_v14, %v5391_v15  ;;  %v1966_v2 = vmul.f32 %v1950_v26, %v5435_v31 }
 0x5c0   :  { %v2048_v39 = vmul.f32 %v4105_v61, %v2047_v22  ;;  %v2006_v28 = vsel %vm2004_vm12, %v2005_v58, %v2003_v46  ;;  %vm2064_vm15 = vcmp.eq.f32.partialorder %v5407_v42, 0.0  ;;  %4110 = vrsqrt.f32 %v5517_v60  ;;  %v1482_v26 = vpop.xlane.xlu1 %1481  ;;  %v6235_v22 = vld [vmem:[#allocation20_spill] sm:$0xff] }
 0x5c1   :  { %v2063_v57 = vsel %vm2062_vm14, %v5407_v42, %v2061_v47  ;;  %v5538_v43 = vpop.eup %4106  ;;  %v2024_v30 = vmul.f32 %v5425_v7, %v2023_v63  ;;  %v5542_v16 = vmax.f32 %v1966_v2, 0.0  ;;  %v5546_v31 = vmax.f32 %v1971_v21, 0.0 }
 0x5c2   :  { %v2049_v61 = vmul.f32 %v2048_v39, %v5423_v62  ;;  %v2066_v19 = vsel %vm2064_vm15, %v2065_v38, %v2063_v57  ;;  %v5544_v15 = vpop.eup %4108  ;;  %vm2050_vm0 = vcmp.eq.f32.partialorder %v5423_v62, inf  ;;  %v2053_v9 = vand.u32 2147483648, %v5423_v62  ;;  %v6236_v39 = vld [vmem:[#allocation41_spill] sm:$0xff] }
 0x5c3   :  { %v5551_v42 = vsub.f32 %v5264_v52, %v2066_v19  ;;  %vm2052_vm2 = vcmp.eq.f32.partialorder %v5423_v62, 0.0  ;;  %v5555_v7 = vmax.f32 %v1976_v48, 0.0  ;;  %4112 = vrsqrt.f32 %v5542_v16 }
 0x5c4   :  { %v2051_v0 = vsel %vm2050_vm0, %v5423_v62, %v2049_v61  ;;  %v2068_v2 = vmul.f32 %v5538_v43, %v5497_v1  ;;  %v2025_v52 = vmul.f32 %v2024_v30, %v5338_v33  ;;  %v6234_v62 = vld [vmem:[#allocation18_spill] sm:$0xff]  ;;  %v5570_v38 = vsub.f32 %v6236_v39, %v2006_v28 }
 0x5c5   :  { %6232 = vst [vmem:[#allocation53_spill] sm:$0xff] %v5551_v42  ;;  %v2054_v14 = vsel %vm2052_vm2, %v2053_v9, %v2051_v0  ;;  %v1467_v46 = vpop.xlane.xlu2 %1466  ;;  %vm2208_vm4 = vcmp.le.f32.partialorder %v5551_v42, %v6234_v62  ;;  %v1906_v48 = vmul.f32 %v5525_v44, %v5525_v44  ;;  %4114 = vrsqrt.f32 %v5546_v31 }
 0x5c6   :  { %v5564_v63 = vsub.f32 %v5304_v29, %v2054_v14  ;;  %v1618_v21 = vadd.f32 %v6235_v22, %v1467_v46  ;;  %v4111_v47 = vpop.eup %4110  ;;  %v1811_v57 = vmul.f32 %v5485_v25, %v1810_v59  ;;  %4116 = vrsqrt.f32 %v5555_v7 }
 0x5c7   :  { %v2008_v30 = vmul.f32 %v4111_v47, %v5517_v60  ;;  %vm2026_vm8 = vcmp.eq.f32.partialorder %v5338_v33, inf  ;;  %v2069_v28 = vmul.f32 %v5538_v43, %v2068_v2  ;;  %v6237_v61 = vmov 0.0  }
 0x5c8   :  { %6233 = vst [vmem:[#allocation34_spill] sm:$0xff] %v5564_v63  ;;  %vm2207_vm5 = vcmp.le.f32.partialorder %v5564_v63, %v5275_v11  ;;  %v1890_v29 = vmul.f32 %v5494_v5, %v1618_v21  ;;  %v3591_v9 = vsel %vm2208_vm4, 1.0, %v6237_v61  ;;  %v2027_v59 = vsel %vm2026_vm8, %v5338_v33, %v2025_v52  ;;  %v6238_v52 = vld [vmem:[#allocation21_spill] sm:$0xff]  ;;  %v6239_v63 = vld [vmem:[#allocation26_spill] sm:$0xff] }
 0x5c9   :  { %v3590_v19 = vsel %vm2207_vm5, 1.0, %v6237_v61  ;;  %v4113_v0 = vpop.eup %4112  ;;  %v2009_v11 = vmul.f32 %v4111_v47, %v2008_v30  ;;  %v2029_v62 = vand.u32 2147483648, %v5338_v33  ;;  %v5589_v22 = vmul.f32 %v5544_v15, %v5502_v20 }
 0x5ca   :  { %v4010_v14 = vpack.i.bf16 %v3591_v9, %v3590_v19  ;;  %v1922_v46 = vsub.f32 %v1890_v29, %v1906_v48  ;;  %v2032_v2 = vmul.f32 %v4113_v0, %v5542_v16  ;;  %vm2028_vm10 = vcmp.eq.f32.partialorder %v5338_v33, 0.0 }
 0x5cb   :  { %v2010_v40 = vmul.f32 0.5, %v2009_v11  ;;  %vm2203_vm13 = vcmp.le.f32.partialorder %v5570_v38, %v6238_v52  ;;  %v5597_v48 = vpop.eup %4114  ;;  %v2030_v29 = vsel %vm2028_vm10, %v2029_v62, %v2027_v59  ;;  %v2070_v30 = vmul.f32 0.5, %v2069_v28  ;;  %v6240_v52 = vld [vmem:[#allocation25_spill] sm:$0xff] }
 0x5cc   :  { %v1938_v39 = vmul.f32 %v1922_v46, %v5073_v37  ;;  %4011 = vperm.xlu0 %4009, %v4010_v14   ;;  %v5600_v19 = vadd.f32 %v5485_v25, %v1811_v57  ;;  %v2033_v58 = vmul.f32 %v4113_v0, %v2032_v2  ;;  %v5602_v35 = vpop.eup %4116  ;;  %v1855_v37 = vsub.f32 1.0, %v5589_v22 }
 0x5cd   :  { %v1259_v9 = vpop.xlane.xlu2 %1258  ;;  %v1575_v21 = vpop.permute.xlu1 %1574  ;;  %v2011_v11 = vsub.f32 1.5, %v2010_v40  ;;  %v1397_v42 = vadd.f32 %v6240_v52, %v5483_v18  ;;  %v3586_v28 = vsel %vm2203_vm13, 1.0, %v6237_v61  ;;  %v5617_v40 = vsub.f32 %v5245_v45, %v2030_v29 }
 0x5ce   :  { %v1954_v33 = vsub.f32 1.0, %v1938_v39  ;;  %v1400_v46 = vadd.f32 %v6239_v63, %v1259_v9  ;;  %v1623_v14 = vadd.f32 %v1575_v21, %v1482_v26  ;;  %v2034_v59 = vmul.f32 0.5, %v2033_v58 }
 0x5cf   :  { %v2012_v39 = vmul.f32 %v4111_v47, %v2011_v11  ;;  %v2092_v26 = vmul.f32 %v5597_v48, %v5546_v31  ;;  %v2152_v18 = vmul.f32 %v5602_v35, %v5555_v7  ;;  %v2071_v21 = vsub.f32 1.5, %v2070_v30 }
 0x5d0   :  { %v1970_v57 = vmul.f32 %v1954_v33, %v5494_v5  ;;  %v5611_v62 = vmul.f32 %v5475_v6, %v1400_v46  ;;  %v1895_v2 = vmul.f32 %v5475_v6, %v1623_v14  ;;  %v2035_v22 = vsub.f32 1.5, %v2034_v59 }
 0x5d1   :  { %v2013_v9 = vmul.f32 %v2012_v39, %v5517_v60  ;;  %v5627_v47 = vmul.f32 %v5465_v50, %v1397_v42  ;;  %vm1814_vm11 = vweird.f32 %v5485_v25  ;;  %vm2014_vm7 = vcmp.eq.f32.partialorder %v5517_v60, inf }
 0x5d2   :  { %v5621_v58 = vmax.f32 %v1970_v57, 0.0  ;;  %v1911_v5 = vmul.f32 %v5611_v62, %v5611_v62  ;;  %v2017_v45 = vand.u32 2147483648, %v5517_v60  ;;  %v2036_v29 = vmul.f32 %v4113_v0, %v2035_v22  ;;  %v6241_v57 = vld [vmem:[#allocation22_spill] sm:$0xff] }
 0x5d3   :  { %v2015_v30 = vsel %vm2014_vm7, %v5517_v60, %v2013_v9  ;;  %vm2016_vm1 = vcmp.eq.f32.partialorder %v5517_v60, 0.0  ;;  %v2153_v46 = vmul.f32 %v5602_v35, %v2152_v18  ;;  %vm1813_vm3 = vweird.f32 %v5387_v13 }
 0x5d4   :  { %v1927_v33 = vsub.f32 %v1895_v2, %v1911_v5  ;;  %4118 = vrsqrt.f32 %v5621_v58  ;;  %v2018_v42 = vsel %vm2016_vm1, %v2017_v45, %v2015_v30  ;;  %v2037_v11 = vmul.f32 %v2036_v29, %v5542_v16  ;;  %vm5685_vm8 = vmor %vm1813_vm3, %vm1814_vm11 }
 0x5d5   :  { %v1473_v14 = vpop.xlane.xlu2 %1472  ;;  %vm2038_vm12 = vcmp.eq.f32.partialorder %v5542_v16, inf  ;;  %v5641_v0 = vsub.f32 %v5358_v54, %v2018_v42  ;;  %v2041_v60 = vand.u32 2147483648, %v5542_v16  ;;  %v2072_v39 = vmul.f32 %v5538_v43, %v2071_v21 }
 0x5d6   :  { %v1943_v59 = vmul.f32 %v1927_v33, %v4966_v34  ;;  %v1620_v2 = vadd.f32 %v6241_v57, %v1473_v14  ;;  %v1908_v18 = vmul.f32 %v5627_v47, %v5627_v47  ;;  %v2039_v22 = vsel %vm2038_vm12, %v5542_v16, %v2037_v11 }
 0x5d7   :  { %vm2040_vm14 = vcmp.eq.f32.partialorder %v5542_v16, 0.0  ;;  %vm2204_vm15 = vcmp.le.f32.partialorder %v5641_v0, %v4819_v53  ;;  %vm2205_vm0 = vcmp.le.f32.partialorder %v5617_v40, %v5225_v24  ;;  %v2154_v45 = vmul.f32 0.5, %v2153_v46 }
 0x5d8   :  { %v1959_v5 = vsub.f32 1.0, %v1943_v59  ;;  %v1892_v54 = vmul.f32 %v5465_v50, %v1620_v2  ;;  %v2042_v9 = vsel %vm2040_vm14, %v2041_v60, %v2039_v22  ;;  %v3587_v43 = vsel %vm2204_vm15, 1.0, %v6237_v61 }
 0x5d9   :  { %v5657_v21 = vsub.f32 %v5440_v23, %v2042_v9  ;;  %v2093_v33 = vmul.f32 %v5597_v48, %v2092_v26  ;;  %v6242_v16 = vand.u32 2147483647, %v5387_v13  ;;  %v3998_v42 = vpack.i.bf16 %v3587_v43, %v3586_v28  ;;  %v6247_v43 = vld [vmem:[#allocation19_spill] sm:$0xff] }
 0x5da   :  { %v4119_v29 = vpop.eup %4118  ;;  %v1975_v53 = vmul.f32 %v1959_v5, %v5475_v6  ;;  %v1924_v14 = vsub.f32 %v1892_v54, %v1908_v18  ;;  %v2073_v24 = vmul.f32 %v2072_v39, %v5497_v1  ;;  %v1856_v46 = vmul.f32 %v5544_v15, %v1855_v37 }
 0x5db   :  { %vm5662_vm2 = vcmp.eq.f32.partialorder %v6242_v16, 8.507059e+37  ;;  %vm2206_vm4 = vcmp.le.f32.partialorder %v5657_v21, %v4817_v49  ;;  %v2080_v23 = vmul.f32 %v4119_v29, %v5621_v58  ;;  %v3588_v26 = vsel %vm2205_vm0, 1.0, %v6237_v61  ;;  %3999 = vperm.xlu2 %3997, %v3998_v42  }
 0x5dc   :  { %v5673_v11 = vmax.f32 %v1975_v53, 0.0  ;;  %v1940_v59 = vmul.f32 %v1924_v14, %v4959_v41  ;;  %v3589_v6 = vsel %vm2206_vm4, 1.0, %v6237_v61  ;;  %v2155_v28 = vsub.f32 1.5, %v2154_v45 }
 0x5dd   :  { %v1864_v57 = vand.u32 2147483648, %v5502_v20  ;;  %v4004_v2 = vpack.i.bf16 %v3589_v6, %v3588_v26  ;;  %v5678_v60 = vpop.xlane.xlu2 %1267  ;;  %v2081_v37 = vmul.f32 %v4119_v29, %v2080_v23  ;;  %v2094_v39 = vmul.f32 0.5, %v2093_v33 }
 0x5de   :  { %vm2074_vm5 = vcmp.eq.f32.partialorder %v5497_v1, inf  ;;  %v1956_v18 = vsub.f32 1.0, %v1940_v59  ;;  %4120 = vrsqrt.f32 %v5673_v11  ;;  %vm1859_vm10 = vweird.f32 %v5544_v15 }
 0x5df   :  { %v2075_v22 = vsel %vm2074_vm5, %v5497_v1, %v2073_v24  ;;  %v1816_v5 = vsel %vm5685_vm8, %v5485_v25, %v5600_v19  ;;  %4005 = vperm.xlu1 %4003, %v4004_v2   ;;  %v2082_v54 = vmul.f32 0.5, %v2081_v37  ;;  %v2077_v9 = vand.u32 2147483648, %v5497_v1 }
 0x5e0   :  { %v1857_v45 = vadd.f32 %v5544_v15, %v1856_v46  ;;  %v1399_v33 = vadd.f32 %v6247_v43, %v5519_v36  ;;  %v1972_v16 = vmul.f32 %v1956_v18, %v5465_v50  ;;  %vm2076_vm13 = vcmp.eq.f32.partialorder %v5497_v1, 0.0  ;;  %v6249_v46 = vld [vmem:[#allocation29_spill] sm:$0xff] }
 0x5e1   :  { %v2156_v53 = vmul.f32 %v5602_v35, %v2155_v28  ;;  %v6248_v42 = vand.u32 2147483648, %v5387_v13  ;;  %v2083_v24 = vsub.f32 1.5, %v2082_v54  ;;  %v2095_v25 = vsub.f32 1.5, %v2094_v39 }
 0x5e2   :  { %v2078_v19 = vsel %vm2076_vm13, %v2077_v9, %v2075_v22  ;;  %vm1858_vm11 = vweird.f32 %v5502_v20  ;;  %v5706_v23 = vmax.f32 %v1972_v16, 0.0  ;;  %v5709_v26 = vadd.f32 1.0, %v6249_v46 }
 0x5e3   :  { %v1820_v14 = vor.u32 1.1754944e-38, %v6248_v42  ;;  %vm5713_vm7 = vmor %vm1858_vm11, %vm1859_vm10  ;;  %v6252_v35 = vand.u32 2147483647, %v5502_v20  ;;  %v2084_v59 = vmul.f32 %v4119_v29, %v2083_v24  ;;  %v1865_v2 = vor.u32 1.1754944e-38, %v1864_v57 }
 0x5e4   :  { %v4121_v6 = vpop.eup %4120  ;;  %v1861_v28 = vsel %vm5713_vm7, %v5544_v15, %v1857_v45  ;;  %4122 = vrsqrt.f32 %v5706_v23  ;;  %v5732_v39 = vsub.f32 %v5295_v8, %v2078_v19  ;;  %v2157_v49 = vmul.f32 %v2156_v53, %v5555_v7 }
 0x5e5   :  { %vm5719_vm1 = vcmp.eq.f32.partialorder %v6252_v35, 8.507059e+37  ;;  %v1821_v36 = vsel %vm5662_vm2, %v1820_v14, %v1816_v5  ;;  %v1479_v18 = vpop.xlane.xlu2 %1478  ;;  %v2085_v30 = vmul.f32 %v2084_v59, %v5621_v58  ;;  %v2140_v29 = vmul.f32 %v4121_v6, %v5673_v11  ;;  %v6255_v5 = vld [vmem:[#allocation31_spill] sm:$0xff] }
 0x5e6   :  { %v5728_v37 = vmul.f32 %v1821_v36, %v1399_v33  ;;  %v2096_v22 = vmul.f32 %v5597_v48, %v2095_v25  ;;  %v1622_v54 = vadd.f32 %v6255_v5, %v1479_v18  ;;  %vm2086_vm3 = vcmp.eq.f32.partialorder %v5621_v58, inf  ;;  %v6256_v25 = vld [vmem:[#allocation27_spill] sm:$0xff] }
 0x5e7   :  { %v2089_v15 = vand.u32 2147483648, %v5621_v58  ;;  %v5743_v57 = vsel %vm5719_vm1, %v1865_v2, %v1861_v28  ;;  %v2087_v8 = vsel %vm2086_vm3, %v5621_v58, %v2085_v30  ;;  %vm2088_vm12 = vcmp.eq.f32.partialorder %v5621_v58, 0.0  ;;  %v1588_v28 = vpop.permute.xlu0 %1587 }
 0x5e8   :  { %v2141_v9 = vmul.f32 %v4121_v6, %v2140_v29  ;;  %vm2158_vm14 = vcmp.eq.f32.partialorder %v5555_v7, inf  ;;  %v1910_v48 = vmul.f32 %v5728_v37, %v5728_v37  ;;  %v1894_v45 = vmul.f32 %v1821_v36, %v1622_v54 }
 0x5e9   :  { %v2090_v33 = vsel %vm2088_vm12, %v2089_v15, %v2087_v8  ;;  %v2159_v16 = vsel %vm2158_vm14, %v5555_v7, %v2157_v49  ;;  %vm2209_vm15 = vcmp.le.f32.partialorder %v5732_v39, %v4827_v32  ;;  %v2097_v58 = vmul.f32 %v2096_v22, %v5546_v31 }
 0x5ea   :  { %v5752_v53 = vsub.f32 %v5525_v44, %v2090_v33  ;;  %v2142_v42 = vmul.f32 0.5, %v2141_v9  ;;  %v4123_v14 = vpop.eup %4122  ;;  %v2161_v24 = vand.u32 2147483648, %v5555_v7  ;;  %v1402_v19 = vadd.f32 %v6256_v25, %v5510_v27 }
 0x5eb   :  { %v1926_v46 = vsub.f32 %v1894_v45, %v1910_v48  ;;  %vm2160_vm0 = vcmp.eq.f32.partialorder %v5555_v7, 0.0  ;;  %v2104_v50 = vmul.f32 %v4123_v14, %v5706_v23  ;;  %v3592_v1 = vsel %vm2209_vm15, 1.0, %v6237_v61 }
 0x5ec   :  { %vm2210_vm2 = vcmp.le.f32.partialorder %v5752_v53, %v6231_v10  ;;  %v2143_v44 = vsub.f32 1.5, %v2142_v42  ;;  %v2162_v35 = vsel %vm2160_vm0, %v2161_v24, %v2159_v16  ;;  %vm2098_vm4 = vcmp.eq.f32.partialorder %v5546_v31, inf }
 0x5ed   :  { %v1942_v32 = vmul.f32 %v1926_v46, %v5387_v13  ;;  %v3593_v59 = vsel %vm2210_vm2, 1.0, %v6237_v61  ;;  %v1488_v27 = vpop.xlane.xlu2 %1487  ;;  %v2105_v7 = vmul.f32 %v4123_v14, %v2104_v50  ;;  %vm2100_vm5 = vcmp.eq.f32.partialorder %v5546_v31, 0.0 }
 0x5ee   :  { %v4015_v2 = vpack.i.bf16 %v3593_v59, %v3592_v1  ;;  %v2144_v49 = vmul.f32 %v4121_v6, %v2143_v44  ;;  %v5770_v10 = vmul.f32 %v5743_v57, %v1402_v19  ;;  %v1625_v30 = vadd.f32 %v1588_v28, %v1488_v27 }
 0x5ef   :  { %v1958_v18 = vsub.f32 1.0, %v1942_v32  ;;  %v2099_v29 = vsel %vm2098_vm4, %v5546_v31, %v2097_v58  ;;  %v5774_v22 = vsub.f32 %v5411_v55, %v2162_v35  ;;  %v2106_v54 = vmul.f32 0.5, %v2105_v7 }
 0x5f0   :  { %4016 = vperm.xlu1 %4003, %v4015_v2   ;;  %v2145_v5 = vmul.f32 %v2144_v49, %v5673_v11  ;;  %v2101_v15 = vand.u32 2147483648, %v5546_v31  ;;  %vm2146_vm8 = vcmp.eq.f32.partialorder %v5673_v11, inf  ;;  %v2149_v8 = vand.u32 2147483648, %v5673_v11 }
 0x5f1   :  { %v1974_v6 = vmul.f32 %v1958_v18, %v1821_v36  ;;  %v1897_v9 = vmul.f32 %v5743_v57, %v1625_v30  ;;  %vm2148_vm10 = vcmp.eq.f32.partialorder %v5673_v11, 0.0  ;;  %v2107_v45 = vsub.f32 1.5, %v2106_v54 }
 0x5f2   :  { %v2147_v48 = vsel %vm2146_vm8, %v5673_v11, %v2145_v5  ;;  %4124 = vrcp.f32 %v5709_v26  ;;  %v2102_v55 = vsel %vm2100_vm5, %v2101_v15, %v2099_v29  ;;  %v1913_v36 = vmul.f32 %v5770_v10, %v5770_v10 }
 0x5f3   :  { %v1990_v33 = vmax.f32 %v1974_v6, 0.0  ;;  %v2150_v16 = vsel %vm2148_vm10, %v2149_v8, %v2147_v48  ;;  %vm2216_vm13 = vcmp.le.f32.partialorder %v5774_v22, %v4768_v51  ;;  %v2108_v58 = vmul.f32 %v4123_v14, %v2107_v45  ;;  %v6257_v45 = vld [vmem:[#allocation24_spill] sm:$0xff] }
 0x5f4   :  { %v5789_v42 = vsub.f32 %v5611_v62, %v2150_v16  ;;  %v5794_v11 = vsub.f32 %v5396_v4, %v2102_v55  ;;  %v1929_v24 = vsub.f32 %v1897_v9, %v1913_v36  ;;  %v3599_v46 = vsel %vm2216_vm13, 1.0, %v6237_v61  ;;  %v6258_v16 = vld [vmem:[#allocation28_spill] sm:$0xff] }
 0x5f5   :  { %4126 = vrsqrt.f32 %v1990_v33  ;;  %v2109_v31 = vmul.f32 %v2108_v58, %v5706_v23  ;;  %vm2110_vm7 = vcmp.eq.f32.partialorder %v5706_v23, inf  ;;  %v2113_v62 = vand.u32 2147483648, %v5706_v23 }
 0x5f6   :  { %vm2215_vm11 = vcmp.le.f32.partialorder %v5789_v42, %v6239_v63  ;;  %vm2112_vm1 = vcmp.eq.f32.partialorder %v5706_v23, 0.0  ;;  %v1945_v50 = vmul.f32 %v1929_v24, %v5502_v20  ;;  %vm2211_vm3 = vcmp.le.f32.partialorder %v5794_v11, %v4842_v56 }
 0x5f7   :  { %v3598_v19 = vsel %vm2215_vm11, 1.0, %v6237_v61  ;;  %v2111_v14 = vsel %vm2110_vm7, %v5706_v23, %v2109_v31  ;;  %v3594_v23 = vsel %vm2211_vm3, 1.0, %v6237_v61  ;;  %vm2134_vm14 = vcmp.eq.f32.partialorder %v1990_v33, inf }
 0x5f8   :  { %v4030_v51 = vpack.i.bf16 %v3599_v46, %v3598_v19  ;;  %v4125_v4 = vpop.eup %4124  ;;  %v2114_v44 = vsel %vm2112_vm1, %v2113_v62, %v2111_v14  ;;  %v1961_v28 = vsub.f32 1.0, %v1945_v50  ;;  %vm2136_vm0 = vcmp.eq.f32.partialorder %v1990_v33, 0.0  ;;  %v1491_v8 = vpop.xlane.xlu1 %1490 }
 0x5f9   :  { %v5807_v63 = vsub.f32 %v5627_v47, %v2114_v44  ;;  %v1869_v32 = vmul.f32 %v4125_v4, %v5709_v26  ;;  %vm1874_vm15 = vweird.f32 %v4125_v4  ;;  %vm1873_vm2 = vweird.f32 %v5709_v26 }
 0x5fa   :  { %4031 = vperm.xlu0 %4009, %v4030_v51   ;;  %v1977_v7 = vmul.f32 %v1961_v28, %v5743_v57  ;;  %v1879_v6 = vand.u32 2147483648, %v5709_v26  ;;  %v1877_v48 = vand.u32 2147483647, %v5709_v26  ;;  %vm2213_vm4 = vcmp.le.f32.partialorder %v5269_v17, %v6257_v45  ;;  %vm1875_vm5 = vmor %vm1873_vm2, %vm1874_vm15 }
 0x5fb   :  { %v4127_v35 = vpop.eup %4126  ;;  %vm2212_vm12 = vcmp.le.f32.partialorder %v5807_v63, %v6240_v52  ;;  %v1870_v49 = vsub.f32 1.0, %v1869_v32  ;;  %v2137_v52 = vand.u32 2147483648, %v1990_v33  ;;  %v3596_v58 = vsel %vm2213_vm4, 1.0, %v6237_v61 }
 0x5fc   :  { %v2128_v1 = vmul.f32 %v4127_v35, %v1990_v33  ;;  %v3595_v59 = vsel %vm2212_vm12, 1.0, %v6237_v61  ;;  %v1993_v29 = vmax.f32 %v1977_v7, 0.0  ;;  %v1880_v36 = vor.u32 1.1754944e-38, %v1879_v6 }
 0x5fd   :  { %v4020_v27 = vpack.i.bf16 %v3595_v59, %v3594_v23  ;;  %v1871_v18 = vmul.f32 %v4125_v4, %v1870_v49  ;;  %vm1878_vm10 = vcmp.eq.f32.partialorder %v1877_v48, 8.507059e+37  ;;  %vm2341_vm15 = vcmask 1041409  }
 0x5fe   :  { %v2129_v2 = vmul.f32 %v4127_v35, %v2128_v1  ;;  %4128 = vrsqrt.f32 %v1993_v29  ;;  %vm2170_vm13 = vcmp.eq.f32.partialorder %v1993_v29, inf  ;;  %vm2172_vm11 = vcmp.eq.f32.partialorder %v1993_v29, 0.0 }
 0x5ff   :  { %4021 = vperm.xlu1 %4003, %v4020_v27   ;;  %v1872_v54 = vadd.f32 %v4125_v4, %v1871_v18  ;;  %v2173_v18 = vand.u32 2147483648, %v1993_v29  ;;  %vm2345_vm2 = vcmask 1043459   ;;  %vm2347_vm4 = vcmask 1044484  }
 0x600   :  { %v2130_v47 = vmul.f32 0.5, %v2129_v2 }
 0x601   :  { %v1876_v55 = vsel %vm1875_vm5, %v4125_v4, %v1872_v54  ;;  %vm2349_vm5 = vcmask 1045509  }
 0x602   :  { %v2131_v56 = vsub.f32 1.5, %v2130_v47  ;;  %v1881_v31 = vsel %vm1878_vm10, %v1880_v36, %v1876_v55  ;;  %vm2353_vm10 = vcmask 1047559  }
 0x604   :  { %v2132_v30 = vmul.f32 %v4127_v35, %v2131_v56  ;;  %v4129_v19 = vpop.eup %4128 }
 0x605   :  { %v2164_v14 = vmul.f32 %v4129_v19, %v1993_v29 }
 0x606   :  { %v2133_v5 = vmul.f32 %v2132_v30, %v1990_v33 }
 0x607   :  { %v2165_v50 = vmul.f32 %v4129_v19, %v2164_v14 }
 0x608   :  { %v2135_v15 = vsel %vm2134_vm14, %v1990_v33, %v2133_v5  ;;  %v1403_v33 = vadd.f32 %v6258_v16, %v5678_v60  ;;  %vm2318_vm14 = vcmask 130112  }
 0x609   :  { %v2138_v9 = vsel %vm2136_vm0, %v2137_v52, %v2135_v15  ;;  %v2166_v32 = vmul.f32 0.5, %v2165_v50  ;;  %vm2343_vm0 = vcmask 1042434  }
 0x60a   :  { %v5821_v57 = vsub.f32 %v5728_v37, %v2138_v9  ;;  %v1882_v46 = vmul.f32 %v1881_v31, %v1403_v33 }
 0x60b   :  { %v2167_v59 = vsub.f32 1.5, %v2166_v32 }
 0x60c   :  { %vm2214_vm8 = vcmp.le.f32.partialorder %v5821_v57, %v6247_v43  ;;  %v1914_v4 = vmul.f32 %v1882_v46, %v1882_v46 }
 0x60d   :  { %v3597_v24 = vsel %vm2214_vm8, 1.0, %v6237_v61  ;;  %v2168_v28 = vmul.f32 %v4129_v19, %v2167_v59  ;;  %vm2351_vm8 = vcmask 1046534  }
 0x60e   :  { %v4025_v37 = vpack.i.bf16 %v3597_v24, %v3596_v58 }
 0x60f   :  { %v2169_v2 = vmul.f32 %v2168_v28, %v1993_v29 }
 0x610   :  { %4026 = vperm.xlu2 %3997, %v4025_v37   ;;  %v1594_v62 = vpop.permute.xlu1 %1593 }
 0x611   :  { %v1626_v51 = vadd.f32 %v1594_v62, %v1491_v8  ;;  %v2171_v7 = vsel %vm2170_vm13, %v1993_v29, %v2169_v2 }
 0x612   :  { %v2174_v5 = vsel %vm2172_vm11, %v2173_v18, %v2171_v7 }
 0x613   :  { %v1898_v44 = vmul.f32 %v1881_v31, %v1626_v51  ;;  %v5833_v15 = vsub.f32 %v5770_v10, %v2174_v5 }
 0x615   :  { %v1930_v60 = vsub.f32 %v1898_v44, %v1914_v4  ;;  %vm2217_vm3 = vcmp.le.f32.partialorder %v5833_v15, %v6256_v25 }
 0x616   :  { %v3600_v29 = vsel %vm2217_vm3, 1.0, %v6237_v61 }
 0x617   :  { %v1946_v43 = vmul.f32 %v1930_v60, %v5709_v26 }
 0x619   :  { %v1962_v35 = vsub.f32 1.0, %v1946_v43 }
 0x61b   :  { %v1978_v1 = vmul.f32 %v1962_v35, %v1881_v31  ;;  %v6259_v31 = vld [vmem:[#allocation17_spill] sm:$0xff] }
 0x61c   :  { %v5844_v19 = vadd.s32 4294967288, %v6259_v31 }
 0x61d   :  { %v1994_v23 = vmax.f32 %v1978_v1, 0.0 }
 0x61f   :  { %4130 = vrsqrt.f32 %v1994_v23  ;;  %vm2182_vm7 = vcmp.eq.f32.partialorder %v1994_v23, inf  ;;  %v2185_v6 = vand.u32 2147483648, %v1994_v23  ;;  %vm2184_vm1 = vcmp.eq.f32.partialorder %v1994_v23, 0.0 }
 0x625   :  { %v4131_v27 = vpop.eup %4130 }
 0x626   :  { %v2176_v49 = vmul.f32 %v4131_v27, %v1994_v23 }
 0x628   :  { %v2177_v47 = vmul.f32 %v4131_v27, %v2176_v49 }
 0x62a   :  { %v2178_v56 = vmul.f32 0.5, %v2177_v47 }
 0x62c   :  { %v2179_v30 = vsub.f32 1.5, %v2178_v56 }
 0x62e   :  { %v2180_v52 = vmul.f32 %v4131_v27, %v2179_v30 }
 0x630   :  { %v2181_v54 = vmul.f32 %v2180_v52, %v1994_v23 }
 0x632   :  { %v2183_v8 = vsel %vm2182_vm7, %v1994_v23, %v2181_v54 }
 0x633   :  { %v2186_v9 = vsel %vm2184_vm1, %v2185_v6, %v2183_v8 }
 0x634   :  { %v5835_v48 = vsub.f32 %v1882_v46, %v2186_v9 }
 0x635   :  { %v4000_v36 = vpop.permute.xlu2 %3999 }
 0x636   :  { %vm2218_vm12 = vcmp.le.f32.partialorder %v5835_v48, %v6258_v16  ;;  %v4002_v46 = vunpack.i.h.bf16 %v4000_v36  ;;  %v4001_v25 = vunpack.i.l.bf16 %v4000_v36 }
 0x637   :  { %v3601_v45 = vsel %vm2218_vm12, 1.0, %v6237_v61 }
 0x638   :  { %v4035_v55 = vpack.i.bf16 %v3601_v45, %v3600_v29  ;;  %v2317_v35 = vperm.slane %v4002_v46, %v5844_v19  ;;  %v2315_v32 = vperm.slane %v4001_v25, %v6259_v31 }
 0x63a   :  { %4036 = vperm.xlu1 %4003, %v4035_v55   ;;  %v2319_v7 = vsel %vm2318_vm14, %v2317_v35, %v2315_v32 }
 0x63e   :  { %v4012_v58 = vpop.permute.xlu0 %4011 }
 0x63f   :  { %v4014_v51 = vunpack.i.h.bf16 %v4012_v58  ;;  %v4013_v16 = vunpack.i.l.bf16 %v4012_v58 }
 0x641   :  { %v2324_v1 = vperm.slane %v4014_v51, %v5844_v19  ;;  %v2323_v59 = vperm.slane %v4013_v16, %v6259_v31 }
 0x643   :  { %v2325_v52 = vsel %vm2318_vm14, %v2324_v1, %v2323_v59  ;;  %v6260_v1 = vld [vmem:[#allocation36_spill] sm:$0xff] }
 0x651   :  { %v4006_v10 = vpop.permute.xlu1 %4005 }
 0x652   :  { %v4008_v24 = vunpack.i.h.bf16 %v4006_v10  ;;  %v4007_v37 = vunpack.i.l.bf16 %v4006_v10 }
 0x654   :  { %v2321_v14 = vperm.slane %v4008_v24, %v5844_v19  ;;  %v2320_v4 = vperm.slane %v4007_v37, %v6259_v31 }
 0x656   :  { %v2322_v28 = vsel %vm2318_vm14, %v2321_v14, %v2320_v4 }
 0x657   :  { %v2342_v5 = vsel %vm2341_vm15, %v2322_v28, %v2319_v7 }
 0x658   :  { %v2344_v55 = vsel %vm2343_vm0, %v2325_v52, %v2342_v5 }
 0x662   :  { %v4017_v33 = vpop.permute.xlu1 %4016 }
 0x663   :  { %v4019_v44 = vunpack.i.h.bf16 %v4017_v33  ;;  %v4018_v60 = vunpack.i.l.bf16 %v4017_v33 }
 0x665   :  { %v2327_v27 = vperm.slane %v4019_v44, %v5844_v19  ;;  %v2326_v2 = vperm.slane %v4018_v60, %v6259_v31 }
 0x667   :  { %v2328_v54 = vsel %vm2318_vm14, %v2327_v27, %v2326_v2 }
 0x668   :  { %v2346_v10 = vsel %vm2345_vm2, %v2328_v54, %v2344_v55 }
 0x66a   :  { %v4027_v23 = vpop.permute.xlu2 %4026 }
 0x66b   :  { %v4029_v56 = vunpack.i.h.bf16 %v4027_v23  ;;  %v4028_v18 = vunpack.i.l.bf16 %v4027_v23  ;;  %v6261_v23 = vld [vmem:[#allocation32_spill] sm:$0xff] }
 0x66c   :  { %v4032_v30 = vpop.permute.xlu0 %4031 }
 0x66d   :  { %v4034_v6 = vunpack.i.h.bf16 %v4032_v30  ;;  %v4033_v8 = vunpack.i.l.bf16 %v4032_v30  ;;  %v2333_v29 = vperm.slane %v4029_v56, %v5844_v19  ;;  %v2332_v45 = vperm.slane %v4028_v18, %v6259_v31 }
 0x66f   :  { %v2336_v36 = vperm.slane %v4034_v6, %v5844_v19  ;;  %v2335_v58 = vperm.slane %v4033_v8, %v6259_v31  ;;  %v2334_v25 = vsel %vm2318_vm14, %v2333_v29, %v2332_v45  ;;  %v6265_v6 = vld [vmem:[#allocation53_spill] sm:$0xff] }
 0x671   :  { %v4022_v62 = vpop.permute.xlu1 %4021  ;;  %v2337_v14 = vsel %vm2318_vm14, %v2336_v36, %v2335_v58  ;;  %v6269_v58 = vld [vmem:[#allocation47_spill] sm:$0xff] }
 0x672   :  { %v4024_v50 = vunpack.i.h.bf16 %v4022_v62  ;;  %v4023_v43 = vunpack.i.l.bf16 %v4022_v62 }
 0x674   :  { %v2330_v49 = vperm.slane %v4024_v50, %v5844_v19  ;;  %v2329_v47 = vperm.slane %v4023_v43, %v6259_v31 }
 0x676   :  { %v2331_v9 = vsel %vm2318_vm14, %v2330_v49, %v2329_v47 }
 0x677   :  { %v2348_v33 = vsel %vm2347_vm4, %v2331_v9, %v2346_v10  ;;  %v6266_v9 = vld [vmem:[#allocation34_spill] sm:$0xff] }
 0x678   :  { %v2350_v62 = vsel %vm2349_vm5, %v2334_v25, %v2348_v33 }
 0x679   :  { %v2352_v44 = vsel %vm2351_vm8, %v2337_v14, %v2350_v62 }
 0x6ac   :  { %v4037_v24 = vpop.permute.xlu1 %4036 }
 0x6ad   :  { %v4039_v37 = vunpack.i.h.bf16 %v4037_v24  ;;  %v4038_v46 = vunpack.i.l.bf16 %v4037_v24 }
 0x6af   :  { %v2339_v51 = vperm.slane %v4039_v37, %v5844_v19  ;;  %v2338_v16 = vperm.slane %v4038_v46, %v6259_v31 }
 0x6b1   :  { %v2340_v4 = vsel %vm2318_vm14, %v2339_v51, %v2338_v16 }
 0x6b2   :  { %v2354_v60 = vsel %vm2353_vm10, %v2340_v4, %v2352_v44 }
 0x6b3   :  { %v2356_v50 = vsel %vm915_vm6, %v2354_v60, 0.0 }
 0x6b4   :  { %2357 = vadd.xlane.f32.xlu2 %v2356_v50 }
 0x727   :  { %v5878_v43 = vpop.xlane.xlu2 %2357 }
 0x728   :  { %v2365_v35 = vperm.slane %v5878_v43, 5  ;;  %v2360_v32 = vperm.slane %v5878_v43, 0  ;;  %v2361_v59 = vperm.slane %v5878_v43, 1  ;;  %v2362_v30 = vperm.slane %v5878_v43, 2 }
 0x729   :  { %v2363_v54 = vperm.slane %v5878_v43, 3  ;;  %v2364_v10 = vperm.slane %v5878_v43, 4  ;;  %v2366_v46 = vperm.slane %v5878_v43, 6 }
 0x72a   :  { %vm2386_vm13 = vcmp.eq.f32.partialorder %v6260_v1, %v2365_v35  ;;  %vm2377_vm11 = vcmp.eq.f32.partialorder %v5049_v3, %v2360_v32  ;;  %vm2376_vm7 = vcmp.eq.f32.partialorder %v6261_v23, %v2360_v32  ;;  %vm2379_vm1 = vcmp.eq.f32.partialorder %v5121_v12, %v2361_v59  ;;  %v6262_v3 = vld [vmem:[#allocation33_spill] sm:$0xff]  ;;  %v3668_v1 = vld [vmem:[#allocation6 + $0x60] sm:$0xf]  ;;  %v3928_v23 = vld [vmem:[#allocation6 + $0x64] sm:$0xf0] }
 0x72b   :  { %v3612_v28 = vsel %vm2386_vm13, 1.0, %v6237_v61  ;;  %v3603_v27 = vsel %vm2377_vm11, 1.0, %v6237_v61  ;;  %v3602_v2 = vsel %vm2376_vm7, 1.0, %v6237_v61  ;;  %vm2378_vm3 = vcmp.eq.f32.partialorder %v6262_v3, %v2361_v59  ;;  %v3678_v32 = vld [vmem:[#allocation6 + $0x78] sm:$0xf0] }
 0x72c   :  { %v2434_v49 = vmul.f32 %v3612_v28, %v5269_v17  ;;  %v2425_v47 = vmul.f32 %v3603_v27, %v5641_v0  ;;  %v2424_v7 = vmul.f32 %v3602_v2, %v5570_v38  ;;  %v3605_v56 = vsel %vm2379_vm1, 1.0, %v6237_v61  ;;  %v6263_v0 = vld [vmem:[#allocation39_spill] sm:$0xff]  ;;  %v6264_v38 = vld [vmem:[#allocation37_spill] sm:$0xff]  ;;  %v3927_v27 = vld [vmem:[#allocation6 + $0x64] sm:$0xf] }
 0x72d   :  { %v3604_v18 = vsel %vm2378_vm3, 1.0, %v6237_v61  ;;  %v2427_v5 = vmul.f32 %v3605_v56, %v5657_v21  ;;  %vm2381_vm12 = vcmp.eq.f32.partialorder %v6263_v0, %v2362_v30  ;;  %vm2380_vm13 = vcmp.eq.f32.partialorder %v6264_v38, %v2362_v30  ;;  %v6267_v21 = vld [vmem:[#allocation42_spill] sm:$0xff]  ;;  %v3670_v2 = vld [vmem:[#allocation6 + $0x68] sm:$0xf0]  ;;  %v3660_v3 = vld [vmem:[#allocation6 + $0x50] sm:$0xf] }
 0x72e   :  { %2487 = vperm.xlu2 %3997, %v2434_v49   ;;  %2460 = vperm.xlu1 %4003, %v2425_v47   ;;  %v2426_v17 = vmul.f32 %v3604_v18, %v5617_v40  ;;  %v3607_v12 = vsel %vm2381_vm12, 1.0, %v6237_v61  ;;  %v3606_v52 = vsel %vm2380_vm13, 1.0, %v6237_v61  ;;  %vm2383_vm11 = vcmp.eq.f32.partialorder %v6267_v21, %v2363_v54  ;;  %v6268_v40 = vld [vmem:[#allocation35_spill] sm:$0xff]  ;;  %v3926_v56 = vld [vmem:[#allocation6 + $0x54] sm:$0xf0] }
 0x72f   :  { %2457 = vperm.xlu0 %4009, %v2424_v7   ;;  %v2429_v8 = vmul.f32 %v3607_v12, %v6265_v6  ;;  %v2428_v29 = vmul.f32 %v3606_v52, %v6266_v9  ;;  %vm2382_vm7 = vcmp.eq.f32.partialorder %v6268_v40, %v2363_v54  ;;  %v3609_v45 = vsel %vm2383_vm11, 1.0, %v6237_v61  ;;  %v3925_v18 = vld [vmem:[#allocation6 + $0x54] sm:$0xf]  ;;  %v3662_v30 = vld [vmem:[#allocation6 + $0x58] sm:$0xf0] }
 0x730   :  { %v3608_v55 = vsel %vm2382_vm7, 1.0, %v6237_v61  ;;  %v2431_v33 = vmul.f32 %v3609_v45, %v5752_v53  ;;  %vm2385_vm1 = vcmp.eq.f32.partialorder %v4959_v41, %v2364_v10  ;;  %vm2384_vm3 = vcmp.eq.f32.partialorder %v6269_v58, %v2364_v10  ;;  %v3652_v0 = vld [vmem:[#allocation6 + $0x40] sm:$0xf]  ;;  %v3924_v38 = vld [vmem:[#allocation6 + $0x44] sm:$0xf0] }
 0x731   :  { %v2430_v36 = vmul.f32 %v3608_v55, %v5732_v39  ;;  %v3611_v24 = vsel %vm2385_vm1, 1.0, %v6237_v61  ;;  %v3610_v37 = vsel %vm2384_vm3, 1.0, %v6237_v61  ;;  %vm2388_vm12 = vcmp.eq.f32.partialorder %v4966_v34, %v2366_v46  ;;  %v3923_v12 = vld [vmem:[#allocation6 + $0x44] sm:$0xf]  ;;  %v3654_v52 = vld [vmem:[#allocation6 + $0x48] sm:$0xf0] }
 0x732   :  { %v2433_v25 = vmul.f32 %v3611_v24, %v5807_v63  ;;  %v2432_v62 = vmul.f32 %v3610_v37, %v5794_v11  ;;  %vm2387_vm13 = vcmp.eq.f32.partialorder %v5387_v13, %v2365_v35  ;;  %v3614_v41 = vsel %vm2388_vm12, 1.0, %v6237_v61  ;;  %v6270_v11 = vld [vmem:[#allocation45_spill] sm:$0xff]  ;;  %v3644_v9 = vld [vmem:[#allocation6 + $0x30] sm:$0xf]  ;;  %v3921_v21 = vld [vmem:[#allocation6 + $0x34] sm:$0xf] }
 0x733   :  { %v3613_v39 = vsel %vm2387_vm13, 1.0, %v6237_v61  ;;  %v2367_v53 = vperm.slane %v5878_v43, 7  ;;  %v2436_v51 = vmul.f32 %v3614_v41, %v5789_v42  ;;  %vm2389_vm7 = vcmp.eq.f32.partialorder %v6270_v11, %v2366_v46  ;;  %v3930_v43 = vld [vmem:[#allocation6 + $0x74] sm:$0xf0]  ;;  %v3646_v40 = vld [vmem:[#allocation6 + $0x38] sm:$0xf0] }
 0x734   :  { %v2435_v16 = vmul.f32 %v3613_v39, %v5821_v57  ;;  %v3615_v13 = vsel %vm2389_vm7, 1.0, %v6237_v61  ;;  %v3669_v49 = vor.u32 %v3928_v23, %v3668_v1  ;;  %v3673_v7 = vor.u32 %v3927_v27, %v3670_v2  ;;  %v3919_v37 = vld [vmem:[#allocation6 + $0x24] sm:$0xf]  ;;  %v3638_v46 = vld [vmem:[#allocation6 + $0x28] sm:$0xf0] }
 0x735   :  { %vm2390_vm11 = vcmp.eq.f32.partialorder %v5502_v20, %v2367_v53  ;;  %v2437_v14 = vmul.f32 %v3615_v13, %v5774_v22  ;;  %vm2391_vm1 = vcmp.eq.f32.partialorder %v5709_v26, %v2367_v53  ;;  %v3653_v6 = vor.u32 %v3924_v38, %v3652_v0  ;;  %v3622_v38 = vld [vmem:[#allocation6 + $0x8] sm:$0xf0] }
 0x736   :  { %2466 = vperm.xlu1 %4003, %v2427_v5   ;;  %v3616_v34 = vsel %vm2390_vm11, 1.0, %v6237_v61  ;;  %v3617_v42 = vsel %vm2391_vm1, 1.0, %v6237_v61  ;;  %v3676_v61 = vld [vmem:[#allocation6 + $0x70] sm:$0xf]  ;;  %v3661_v5 = vor.u32 %v3926_v56, %v3660_v3  ;;  %v3649_v10 = vor.u32 %v3921_v21, %v3646_v40  ;;  %v3918_v56 = vld [vmem:[#allocation6 + $0x14] sm:$0xf0] }
 0x737   :  { %2463 = vperm.xlu0 %4009, %v2426_v17   ;;  %v2438_v63 = vmul.f32 %v3616_v34, %v5833_v15  ;;  %v2439_v57 = vmul.f32 %v3617_v42, %v5835_v48  ;;  %v3929_v48 = vld [vmem:[#allocation6 + $0x74] sm:$0xf]  ;;  %v3677_v35 = vor.u32 %v3930_v43, %v3676_v61  ;;  %v3665_v17 = vor.u32 %v3925_v18, %v3662_v30  ;;  %v3628_v3 = vld [vmem:[#allocation6 + $0x10] sm:$0xf]  ;;  %v6272_v40 = vld [vmem:[#allocation15_spill] sm:$0xff] }
 0x738   :  { %v3681_v28 = vor.u32 %v3929_v48, %v3678_v32  ;;  %v3917_v18 = vld [vmem:[#allocation6 + $0x14] sm:$0xf]  ;;  %v3629_v30 = vor.u32 %v3918_v56, %v3628_v3 }
 0x739   :  { %2658 = vmatpush.bf16.msrb.mxu3 %v3677_v35 }
 0x73a   :  { %2671 = vmatpush.bf16.msra.mxu0 %v3681_v28 }
 0x73d   :  { %2659 = vmatpush.bf16.msrb.mxu3 %v3669_v49 }
 0x73e   :  { %2472 = vperm.xlu1 %4003, %v2429_v8   ;;  %2672 = vmatpush.bf16.msra.mxu0 %v3673_v7  ;;  %v3657_v8 = vor.u32 %v3923_v12, %v3654_v52 }
 0x73f   :  { %2469 = vperm.xlu0 %4009, %v2428_v29   ;;  %v3922_v29 = vld [vmem:[#allocation6 + $0x34] sm:$0xf0] }
 0x740   :  { %v3645_v55 = vor.u32 %v3922_v29, %v3644_v9 }
 0x741   :  { %2660 = vmatpush.bf16.msrb.mxu3 %v3661_v5  ;;  %v3630_v5 = vld [vmem:[#allocation6 + $0x18] sm:$0xf0] }
 0x742   :  { %2673 = vmatpush.bf16.msra.mxu0 %v3665_v17  ;;  %v3620_v17 = vld [vmem:[#allocation6] sm:$0xf]  ;;  %v3633_v0 = vor.u32 %v3917_v18, %v3630_v5 }
 0x745   :  { %2661 = vmatpush.bf16.msrb.mxu3 %v3653_v6  ;;  %v6271_v6 = vld [vmem:[#allocation16_spill] sm:$0xff] }
 0x746   :  { %2478 = vperm.xlu1 %4003, %v2431_v33   ;;  %2674 = vmatpush.bf16.msra.mxu0 %v3657_v8  ;;  %v3636_v33 = vld [vmem:[#allocation6 + $0x20] sm:$0xf] }
 0x747   :  { %2475 = vperm.xlu0 %4009, %v2430_v36   ;;  %v3920_v36 = vld [vmem:[#allocation6 + $0x24] sm:$0xf0] }
 0x748   :  { %v3637_v11 = vor.u32 %v3920_v36, %v3636_v33 }
 0x749   :  { %2662 = vmatpush.bf16.msrb.mxu3 %v3645_v55 }
 0x74a   :  { %2675 = vmatpush.bf16.msra.mxu0 %v3649_v10 }
 0x74d   :  { %2663 = vmatpush.bf16.msrb.mxu3 %v3637_v11 }
 0x74e   :  { %2484 = vperm.xlu1 %4003, %v2433_v25  }
 0x74f   :  { %2481 = vperm.xlu0 %4009, %v2432_v62  }
 0x751   :  { %2664 = vmatpush.bf16.msrb.mxu3 %v3629_v30 }
 0x756   :  { %2493 = vperm.xlu1 %4003, %v2436_v51  }
 0x757   :  { %2490 = vperm.xlu0 %4009, %v2435_v16  }
 0x75e   :  { %2499 = vperm.xlu1 %4003, %v2438_v63  }
 0x75f   :  { %2496 = vperm.xlu0 %4009, %v2437_v14   ;;  %v3641_v14 = vor.u32 %v3919_v37, %v3638_v46 }
 0x761   :  { %2676 = vmatpush.bf16.msra.mxu0 %v3641_v14 }
 0x765   :  { %2677 = vmatpush.bf16.msra.mxu0 %v3633_v0 }
 0x767   :  { %2502 = vperm.xlu0 %4009, %v2439_v57  }
 0x788   :  { %v2488_v34 = vpop.permute.xlu2 %2487 }
 0x7a0   :  { %v5936_v20 = vpop.permute.xlu1 %2460 }
 0x7a1   :  { %v5938_v4 = vpop.permute.xlu0 %2457  ;;  %v2505_v25 = vperm.slane %v5936_v20, %v5844_v19 }
 0x7a2   :  { %v2504_v53 = vperm.slane %v5938_v4, %v6259_v31 }
 0x7a8   :  { %v5940_v44 = vpop.permute.xlu1 %2466 }
 0x7a9   :  { %v5942_v60 = vpop.permute.xlu0 %2463  ;;  %v2508_v58 = vperm.slane %v5940_v44, %v5844_v19  ;;  %v2519_v44 = vperm.slane %v2488_v34, %v6259_v31 }
 0x7aa   :  { %v2507_v24 = vperm.slane %v5942_v60, %v6259_v31  ;;  %v2506_v60 = vsel %vm2318_vm14, %v2505_v25, %v2504_v53 }
 0x7ac   :  { %v2509_v42 = vsel %vm2318_vm14, %v2508_v58, %v2507_v24 }
 0x7b0   :  { %v5944_v15 = vpop.permute.xlu1 %2472 }
 0x7b1   :  { %v5946_v22 = vpop.permute.xlu0 %2469  ;;  %v2511_v62 = vperm.slane %v5944_v15, %v5844_v19 }
 0x7b2   :  { %v2510_v41 = vperm.slane %v5946_v22, %v6259_v31  ;;  %v2528_v22 = vsel %vm2341_vm15, %v2509_v42, %v2506_v60 }
 0x7b4   :  { %v2512_v20 = vsel %vm2318_vm14, %v2511_v62, %v2510_v41 }
 0x7b5   :  { %v2529_v43 = vsel %vm2343_vm0, %v2512_v20, %v2528_v22 }
 0x7b8   :  { %v5948_v50 = vpop.permute.xlu1 %2478 }
 0x7b9   :  { %v5950_v26 = vpop.permute.xlu0 %2475  ;;  %v2514_v51 = vperm.slane %v5948_v50, %v5844_v19 }
 0x7ba   :  { %v2513_v16 = vperm.slane %v5950_v26, %v6259_v31 }
 0x7bc   :  { %v2515_v15 = vsel %vm2318_vm14, %v2514_v51, %v2513_v16 }
 0x7bd   :  { %v2530_v35 = vsel %vm2345_vm2, %v2515_v15, %v2529_v43 }
 0x7c0   :  { %v2485_v47 = vpop.permute.xlu1 %2484 }
 0x7c1   :  { %v5952_v59 = vpop.permute.xlu0 %2481  ;;  %v2517_v13 = vperm.slane %v2485_v47, %v5844_v19 }
 0x7c2   :  { %v2516_v63 = vperm.slane %v5952_v59, %v6259_v31 }
 0x7c4   :  { %v2518_v50 = vsel %vm2318_vm14, %v2517_v13, %v2516_v63 }
 0x7c5   :  { %v2531_v23 = vsel %vm2347_vm4, %v2518_v50, %v2530_v35 }
 0x7c8   :  { %v2494_v45 = vpop.permute.xlu1 %2493 }
 0x7c9   :  { %v2491_v54 = vpop.permute.xlu0 %2490  ;;  %v2522_v26 = vperm.slane %v2494_v45, %v6259_v31 }
 0x7ca   :  { %v2520_v57 = vperm.slane %v2491_v54, %v5844_v19 }
 0x7cc   :  { %v2521_v48 = vsel %vm2318_vm14, %v2520_v57, %v2519_v44 }
 0x7cd   :  { %v2532_v27 = vsel %vm2349_vm5, %v2521_v48, %v2531_v23 }
 0x7d0   :  { %v2500_v61 = vpop.permute.xlu1 %2499 }
 0x7d1   :  { %v2497_v39 = vpop.permute.xlu0 %2496  ;;  %v2525_v59 = vperm.slane %v2500_v61, %v6259_v31  ;;  %v3916_v31 = vld [vmem:[#allocation6 + $0x4] sm:$0xf0] }
 0x7d2   :  { %v2523_v4 = vperm.slane %v2497_v39, %v5844_v19  ;;  %v3621_v12 = vor.u32 %v3916_v31, %v3620_v17 }
 0x7d4   :  { %v2524_v32 = vsel %vm2318_vm14, %v2523_v4, %v2522_v26  ;;  %2665 = vmatpush.bf16.msrb.mxu3 %v3621_v12 }
 0x7d5   :  { %v2533_v49 = vsel %vm2351_vm8, %v2524_v32, %v2532_v27 }
 0x7d9   :  { %v2503_v1 = vpop.permute.xlu0 %2502 }
 0x7da   :  { %v2526_v28 = vperm.slane %v2503_v1, %v5844_v19  ;;  %v3915_v19 = vld [vmem:[#allocation6 + $0x4] sm:$0xf] }
 0x7db   :  { %v3625_v52 = vor.u32 %v3915_v19, %v3622_v38 }
 0x7dc   :  { %v2527_v2 = vsel %vm2318_vm14, %v2526_v28, %v2525_v59  ;;  %vm3682_vm14 = vmpackc.low %vm915_vm6, %vm915_vm6 }
 0x7dd   :  { %v2534_v47 = vsel %vm2353_vm10, %v2527_v2, %v2533_v49  ;;  %2678 = vmatpush.bf16.msra.mxu0 %v3625_v52 }
 0x7de   :  { %v2536_v7 = vsel %vm915_vm6, %v2534_v47, 0.0 }
 0x7df   :  { %2537 = vadd.xlane.f32.xlu1 %v2536_v7 }
 0x852   :  { %v2538_v54 = vpop.xlane.xlu1 %2537 }
 0x853   :  { %v2539_v8 = vsub.f32 %v6271_v6, %v2538_v54  ;;  %v2685_v6 = vld [vmem:[#allocation8 + $0x12] ss:$8 sm:$0x3] }
 0x855   :  { %v2540_v9 = vmax.f32 %v2539_v8, 0.0 }
 0x857   :  { %v2541_v29 = vmul.f32 %v2540_v9, %v2540_v9 }
 0x859   :  { %v2542_v21 = vadd.f32 1e-15, %v2541_v29  ;;  %v2559_v45 = vmul.f32 %v2541_v29, %v6272_v40  ;;  %v3701_v40 = vld [vmem:[#allocation6 + $0x198] sm:$0xf0] }
 0x85b   :  { %v3683_v55 = vpack.c.bf16 %v2559_v45, %v2559_v45  ;;  %4132 = vlog2.f32 %v2542_v21  ;;  %v2748_v45 = vperm.slane %v2685_v6, 1 }
 0x85d   :  { %3684 = vmatmul.msk.bf16.vlgmr.msrb.gmra.mxu3 %vm3682_vm14, %v3683_v55  ;;  %3687 = vmatmul.msk.bf16.vlgmr.msra.gmra.mxu0 %vm3682_vm14, %v3683_v55  ;;  %v3747_v55 = vld [vmem:[#allocation6 + $0x1f0] sm:$0xf] }
 0x861   :  { %v4133_v10 = vpop.eup %4132 }
 0x862   :  { %v2544_v33 = vmul.f32 0.6931472, %v4133_v10  ;;  %v3946_v10 = vld [vmem:[#allocation6 + $0x1f4] sm:$0xf0] }
 0x864   :  { %v2545_v36 = vmul.f32 %v2544_v33, %v2541_v29 }
 0x866   :  { %v2546_v58 = vsel %vm915_vm6, %v2545_v36, 0.0 }
 0x867   :  { %2547 = vadd.xlane.f32.xlu2 %v2546_v58  ;;  %v3748_v58 = vor.u32 %v3946_v10, %v3747_v55  ;;  %v3691_v10 = vld [vmem:[#allocation6 + $0x180] sm:$0xf] }
 0x869   :  { %2890 = vmatpush.bf16.msra.mxu1 %v3748_v58 }
 0x8da   :  { %v2548_v24 = vpop.xlane.xlu2 %2547  ;;  %v6000_v37 = vpop.f32.mrf.mxu0 }
 0x8db   :  { %v2549_v46 = vrot.slane %v2548_v24, 4  ;;  %v2694_v25 = vrot.slane %v6000_v37, 4  ;;  %v2701_v62 = vmul.f32 %v6000_v37, %v6000_v37 }
 0x8dd   :  { %v2550_v41 = vadd.f32 %v2549_v46, %v2548_v24  ;;  %v2695_v39 = vadd.f32 %v2694_v25, %v6000_v37  ;;  %v2708_v53 = vrot.slane %v2701_v62, 4  ;;  %v3945_v24 = vld [vmem:[#allocation6 + $0x1f4] sm:$0xf]  ;;  %v3749_v46 = vld [vmem:[#allocation6 + $0x1f8] sm:$0xf0] }
 0x8de   :  { %v3739_v25 = vld [vmem:[#allocation6 + $0x1e0] sm:$0xf] }
 0x8df   :  { %v2551_v51 = vrot.slane %v2550_v41, 2  ;;  %v2696_v16 = vrot.slane %v2695_v39, 2  ;;  %v2709_v11 = vadd.f32 %v2708_v53, %v2701_v62  ;;  %v3752_v62 = vor.u32 %v3945_v24, %v3749_v46  ;;  %v3741_v53 = vld [vmem:[#allocation6 + $0x1e8] sm:$0xf0] }
 0x8e0   :  { %v6006_v34 = vpop.f32.mrf.mxu3 }
 0x8e1   :  { %v2697_v13 = vadd.f32 %v2696_v16, %v2695_v39  ;;  %v2710_v63 = vrot.slane %v2709_v11, 2  ;;  %v2688_v14 = vrot.slane %v6006_v34, 4  ;;  %v2700_v42 = vmul.f32 %v6006_v34, %v6006_v34  ;;  %v3943_v39 = vld [vmem:[#allocation6 + $0x1e4] sm:$0xf]  ;;  %2903 = vmatpush.bf16.msra.mxu2 %v3752_v62 }
 0x8e2   :  { %v2682_v57 = vpop.f32.mrf.mxu0  ;;  %v2552_v20 = vadd.f32 %v2551_v51, %v2550_v41  ;;  %v3944_v41 = vld [vmem:[#allocation6 + $0x1e4] sm:$0xf0] }
 0x8e3   :  { %v2698_v4 = vrot.slane %v2697_v13, 1  ;;  %v2711_v44 = vadd.f32 %v2710_v63, %v2709_v11  ;;  %v2689_v60 = vadd.f32 %v2688_v14, %v6006_v34  ;;  %v2702_v15 = vrot.slane %v2700_v42, 4  ;;  %v3731_v14 = vld [vmem:[#allocation6 + $0x1d0] sm:$0xf] }
 0x8e4   :  { %v2553_v22 = vrot.slane %v2552_v20, 1  ;;  %v3740_v11 = vor.u32 %v3944_v41, %v3739_v25  ;;  %v3744_v63 = vor.u32 %v3943_v39, %v3741_v53 }
 0x8e5   :  { %v2699_v50 = vadd.f32 %v2698_v4, %v2697_v13  ;;  %v2712_v26 = vrot.slane %v2711_v44, 1  ;;  %v2690_v61 = vrot.slane %v2689_v60, 2  ;;  %v2703_v43 = vadd.f32 %v2702_v15, %v2700_v42  ;;  %v3942_v42 = vld [vmem:[#allocation6 + $0x1d4] sm:$0xf0]  ;;  %v3733_v4 = vld [vmem:[#allocation6 + $0x1d8] sm:$0xf0] }
 0x8e6   :  { %v2554_v48 = vadd.f32 %v2553_v22, %v2552_v20  ;;  %v3941_v20 = vld [vmem:[#allocation6 + $0x1d4] sm:$0xf]  ;;  %2891 = vmatpush.bf16.msra.mxu1 %v3740_v11  ;;  %v3732_v15 = vor.u32 %v3942_v42, %v3731_v14  ;;  %2904 = vmatpush.bf16.msra.mxu2 %v3744_v63 }
 0x8e7   :  { %v2713_v35 = vadd.f32 %v2712_v26, %v2711_v44  ;;  %v6012_v32 = vmul.f32 0.125, %v2699_v50  ;;  %v2691_v1 = vadd.f32 %v2690_v61, %v2689_v60  ;;  %v2704_v23 = vrot.slane %v2703_v43, 2  ;;  %v3723_v26 = vld [vmem:[#allocation6 + $0x1c0] sm:$0xf]  ;;  %v3940_v61 = vld [vmem:[#allocation6 + $0x1c4] sm:$0xf0] }
 0x8e8   :  { %3963 = vpush %v2554_v48  ;;  %v2669_v59 = vpop.f32.mrf.mxu3  ;;  %v2747_v44 = vperm.slane %v2685_v6, 0  ;;  %v3736_v50 = vor.u32 %v3941_v20, %v3733_v4  ;;  %v3939_v48 = vld [vmem:[#allocation6 + $0x1c4] sm:$0xf] }
 0x8e9   :  { %v2717_v28 = vmul.f32 0.125, %v2713_v35  ;;  %v2719_v27 = vmul.f32 %v6012_v32, %v6012_v32  ;;  %v2692_v2 = vrot.slane %v2691_v1, 1  ;;  %v2705_v49 = vadd.f32 %v2704_v23, %v2703_v43  ;;  %v3725_v35 = vld [vmem:[#allocation6 + $0x1c8] sm:$0xf0] }
 0x8ea   :  { %v2687_v23 = vld [vmem:[#allocation8 + $0x13] ss:$8 sm:$0x3]  ;;  %2892 = vmatpush.bf16.msra.mxu1 %v3732_v15  ;;  %v3724_v59 = vor.u32 %v3940_v61, %v3723_v26  ;;  %2905 = vmatpush.bf16.msra.mxu2 %v3736_v50 }
 0x8eb   :  { %v2721_v47 = vsub.f32 %v2717_v28, %v2719_v27  ;;  %v2693_v7 = vadd.f32 %v2692_v2, %v2691_v1  ;;  %v2706_v3 = vrot.slane %v2705_v49, 1  ;;  %v3728_v2 = vor.u32 %v3939_v48, %v3725_v35 }
 0x8ed   :  { %v2723_v56 = vmax.f32 %v2721_v47, 0.0  ;;  %v2707_v18 = vadd.f32 %v2706_v3, %v2705_v49  ;;  %v6016_v30 = vmul.f32 0.125, %v2693_v7  ;;  %v3938_v49 = vld [vmem:[#allocation6 + $0x1b4] sm:$0xf0]  ;;  %v3937_v7 = vld [vmem:[#allocation6 + $0x1b4] sm:$0xf] }
 0x8ee   :  { %v3717_v3 = vld [vmem:[#allocation6 + $0x1b8] sm:$0xf0]  ;;  %2893 = vmatpush.bf16.msra.mxu1 %v3724_v59  ;;  %2906 = vmatpush.bf16.msra.mxu2 %v3728_v2 }
 0x8ef   :  { %v2725_v5 = vadd.f32 1e-05, %v2723_v56  ;;  %v2716_v17 = vmul.f32 0.125, %v2707_v18  ;;  %v2718_v31 = vmul.f32 %v6016_v30, %v6016_v30 }
 0x8f1   :  { %4134 = vrsqrt.f32 %v2725_v5  ;;  %v2720_v0 = vsub.f32 %v2716_v17, %v2718_v31  ;;  %vm2742_vm15 = vweird.f32 %v2725_v5  ;;  %v3720_v17 = vor.u32 %v3937_v7, %v3717_v3  ;;  %v3707_v31 = vld [vmem:[#allocation6 + $0x1a0] sm:$0xf] }
 0x8f3   :  { %v2722_v19 = vmax.f32 %v2720_v0, 0.0  ;;  %v3936_v0 = vld [vmem:[#allocation6 + $0x1a4] sm:$0xf0]  ;;  %2907 = vmatpush.bf16.msra.mxu2 %v3720_v17 }
 0x8f5   :  { %v2724_v38 = vadd.f32 1e-05, %v2722_v19 }
 0x8f7   :  { %v4135_v12 = vpop.eup %4134  ;;  %4136 = vrsqrt.f32 %v2724_v38  ;;  %vm2732_vm4 = vweird.f32 %v2724_v38 }
 0x8f8   :  { %v2737_v52 = vmul.f32 %v4135_v12, %v2725_v5  ;;  %vm2743_vm6 = vweird.f32 %v4135_v12 }
 0x8f9   :  { %vm6020_vm0 = vmor %vm2742_vm15, %vm2743_vm6 }
 0x8fa   :  { %v2738_v54 = vmul.f32 %v4135_v12, %v2737_v52 }
 0x8fc   :  { %v2739_v8 = vmul.f32 0.5, %v2738_v54  ;;  %v3708_v54 = vor.u32 %v3936_v0, %v3707_v31 }
 0x8fd   :  { %v4137_v9 = vpop.eup %4136 }
 0x8fe   :  { %v2740_v29 = vsub.f32 1.5, %v2739_v8  ;;  %v2727_v21 = vmul.f32 %v4137_v9, %v2724_v38  ;;  %vm2733_vm2 = vweird.f32 %v4137_v9  ;;  %v3699_v8 = vld [vmem:[#allocation6 + $0x190] sm:$0xf] }
 0x8ff   :  { %vm2734_vm5 = vmor %vm2732_vm4, %vm2733_vm2 }
 0x900   :  { %v2741_v33 = vmul.f32 %v4135_v12, %v2740_v29  ;;  %v2728_v36 = vmul.f32 %v4137_v9, %v2727_v21  ;;  %v3933_v21 = vld [vmem:[#allocation6 + $0x194] sm:$0xf] }
 0x901   :  { %v3704_v55 = vor.u32 %v3933_v21, %v3701_v40 }
 0x902   :  { %v2745_v51 = vsel %vm6020_vm0, %v4135_v12, %v2741_v33  ;;  %v2729_v16 = vmul.f32 0.5, %v2728_v36  ;;  %v3709_v12 = vld [vmem:[#allocation6 + $0x1a8] sm:$0xf0]  ;;  %v3931_v33 = vld [vmem:[#allocation6 + $0x184] sm:$0xf] }
 0x903   :  { %v2752_v13 = vmul.f32 %v2748_v45, %v2745_v51  ;;  %v3693_v36 = vld [vmem:[#allocation6 + $0x188] sm:$0xf0] }
 0x904   :  { %v2730_v57 = vsub.f32 1.5, %v2729_v16  ;;  %v3696_v24 = vor.u32 %v3931_v33, %v3693_v36 }
 0x905   :  { %v2754_v22 = vmul.f32 %v2752_v13, %v6012_v32  ;;  %v3715_v32 = vld [vmem:[#allocation6 + $0x1b0] sm:$0xf]  ;;  %v2762_v47 = vperm.slane %v2752_v13, 0 }
 0x906   :  { %v2731_v60 = vmul.f32 %v4137_v9, %v2730_v57  ;;  %v3716_v5 = vor.u32 %v3938_v49, %v3715_v32 }
 0x907   :  { %v2757_v28 = vrot.slane %v2754_v22, 7  ;;  %v2764_v19 = vmul.f32 %v2762_v47, %v6000_v37  ;;  %v3932_v37 = vld [vmem:[#allocation6 + $0x184] sm:$0xf0] }
 0x908   :  { %v2735_v43 = vsel %vm2734_vm5, %v4137_v9, %v2731_v60  ;;  %2894 = vmatpush.bf16.msra.mxu1 %v3716_v5  ;;  %v3934_v9 = vld [vmem:[#allocation6 + $0x194] sm:$0xf0]  ;;  %v3692_v58 = vor.u32 %v3932_v37, %v3691_v10 }
 0x909   :  { %v6027_v1 = vmul.f32 %v2747_v44, %v2735_v43  ;;  %v3700_v45 = vor.u32 %v3934_v9, %v3699_v8 }
 0x90b   :  { %v2753_v27 = vmul.f32 %v6027_v1, %v6016_v30  ;;  %v3935_v30 = vld [vmem:[#allocation6 + $0x1a4] sm:$0xf]  ;;  %v2761_v39 = vperm.slane %v6027_v1, 0 }
 0x90c   :  { %v3712_v6 = vor.u32 %v3935_v30, %v3709_v12  ;;  %2895 = vmatpush.bf16.msra.mxu1 %v3708_v54 }
 0x90d   :  { %v2758_v56 = vsel %vm297_vm9, %v2753_v27, %v2757_v28  ;;  %v2763_v63 = vmul.f32 %v2761_v39, %v6006_v34  ;;  %v2917_v39 = vld [vmem:[#allocation8 + $0x14] ss:$8 sm:$0x3] }
 0x90e   :  { %v2760_v18 = vsub.f32 %v2687_v23, %v2758_v56  ;;  %2908 = vmatpush.bf16.msra.mxu2 %v3712_v6 }
 0x910   :  { %v2767_v38 = vperm.slane %v2760_v18, 1  ;;  %2896 = vmatpush.bf16.msra.mxu1 %v3700_v45  ;;  %v2766_v16 = vperm.slane %v2760_v18, 0 }
 0x912   :  { %v2771_v52 = vadd.f32 %v2767_v38, %v2764_v19  ;;  %2909 = vmatpush.bf16.msra.mxu2 %v3704_v55  ;;  %v2770_v57 = vadd.f32 %v2766_v16, %v2763_v63 }
 0x914   :  { %v3688_v29 = vmul.f32 -1.442695, %v2771_v52  ;;  %2897 = vmatpush.bf16.msra.mxu1 %v3692_v58 }
 0x916   :  { %4138 = vpow2.f32 %v3688_v29  ;;  %2910 = vmatpush.bf16.msra.mxu2 %v3696_v24 }
 0x919   :  { %s3964_s0 = spop %3963 }
 0x91a   :  { %s2556_s2 = smul.f32 0.125, %s3964_s0 }
 0x91c   :  { %v4139_v46 = vpop.eup %4138  ;;  %2558 = sst [smem:[#allocation10]] %s2556_s2 }
 0x91d   :  { %v2775_v25 = vadd.f32 1.0, %v4139_v46  ;;  %3329 = dma.smem_to_hbm %s4283_s10, 16, %s3327_s9, [#allocation5]  }
 0x91f   :  { %4140 = vrcp.f32 %v2775_v25  ;;  %v2787_v51 = vand.u32 2147483648, %v2775_v25  ;;  %v2785_v13 = vand.u32 2147483647, %v2775_v25  ;;  %vm2781_vm10 = vweird.f32 %v2775_v25 }
 0x921   :  { %v2788_v42 = vor.u32 1.1754944e-38, %v2787_v51  ;;  %vm2786_vm12 = vcmp.eq.f32.partialorder %v2785_v13, 8.507059e+37  ;;  %v2980_v13 = vperm.slane %v2917_v39, 1 }
 0x925   :  { %v4141_v62 = vpop.eup %4140 }
 0x926   :  { %v2777_v41 = vmul.f32 %v4141_v62, %v2775_v25  ;;  %vm2782_vm8 = vweird.f32 %v4141_v62 }
 0x927   :  { %vm2783_vm3 = vmor %vm2781_vm10, %vm2782_vm8 }
 0x928   :  { %v2778_v53 = vsub.f32 1.0, %v2777_v41 }
 0x92a   :  { %v2779_v11 = vmul.f32 %v4141_v62, %v2778_v53 }
 0x92c   :  { %v2780_v14 = vadd.f32 %v4141_v62, %v2779_v11  ;;  %v2979_v11 = vperm.slane %v2917_v39, 0 }
 0x92e   :  { %v2784_v20 = vsel %vm2783_vm3, %v4141_v62, %v2780_v14 }
 0x92f   :  { %v2789_v4 = vsel %vm2786_vm12, %v2788_v42, %v2784_v20  ;;  %v3962_v20 = vld [vmem:[#allocation6 + $0x274] sm:$0xf0] }
 0x930   :  { %v6035_v44 = vmul.f32 %v2789_v4, %v2770_v57  ;;  %v3812_v57 = vld [vmem:[#allocation6 + $0x270] sm:$0xf]  ;;  %v3961_v4 = vld [vmem:[#allocation6 + $0x274] sm:$0xf] }
 0x932   :  { %v2792_v60 = vpack.c.bf16 %v6035_v44, %v6035_v44 }
 0x934   :  { %2898 = vmatmul.bf16.vlgmr.msra.gmra.mxu1 %v2792_v60  ;;  %2911 = vmatmul.bf16.vlgmr.msra.gmra.mxu2 %v2792_v60 }
 0x9b1   :  { %v6039_v15 = vpop.f32.mrf.mxu1 }
 0x9b2   :  { %v2920_v22 = vrot.slane %v6039_v15, 4  ;;  %v2932_v34 = vmul.f32 %v6039_v15, %v6039_v15 }
 0x9b4   :  { %v2921_v50 = vadd.f32 %v2920_v22, %v6039_v15  ;;  %v2934_v26 = vrot.slane %v2932_v34, 4 }
 0x9b6   :  { %v2922_v61 = vrot.slane %v2921_v50, 2  ;;  %v2935_v43 = vadd.f32 %v2934_v26, %v2932_v34  ;;  %v3813_v34 = vor.u32 %v3962_v20, %v3812_v57 }
 0x9b7   :  { %v6045_v48 = vpop.f32.mrf.mxu2 }
 0x9b8   :  { %v2923_v35 = vadd.f32 %v2922_v61, %v2921_v50  ;;  %v2936_v1 = vrot.slane %v2935_v43, 2  ;;  %v2926_v23 = vrot.slane %v6045_v48, 4  ;;  %v2933_v59 = vmul.f32 %v6045_v48, %v6045_v48  ;;  %v3814_v50 = vld [vmem:[#allocation6 + $0x278] sm:$0xf0]  ;;  %v3804_v61 = vld [vmem:[#allocation6 + $0x260] sm:$0xf]  ;;  %3124 = vmatpush.bf16.msra.mxu3 %v3813_v34 }
 0x9b9   :  { %v2901_v28 = vpop.f32.mrf.mxu1  ;;  %v3817_v26 = vor.u32 %v3961_v4, %v3814_v50 }
 0x9ba   :  { %v2924_v27 = vrot.slane %v2923_v35, 1  ;;  %v2937_v2 = vadd.f32 %v2936_v1, %v2935_v43  ;;  %v2927_v32 = vadd.f32 %v2926_v23, %v6045_v48  ;;  %v2940_v49 = vrot.slane %v2933_v59, 4  ;;  %v3960_v43 = vld [vmem:[#allocation6 + $0x264] sm:$0xf0]  ;;  %v3806_v28 = vld [vmem:[#allocation6 + $0x268] sm:$0xf0] }
 0x9bb   :  { %v2919_v1 = vld [vmem:[#allocation8 + $0x15] ss:$8 sm:$0x3]  ;;  %3137 = vmatpush.bf16.msrb.mxu0 %v3817_v26 }
 0x9bc   :  { %v2925_v47 = vadd.f32 %v2924_v27, %v2923_v35  ;;  %v2938_v7 = vrot.slane %v2937_v2, 1  ;;  %v2928_v3 = vrot.slane %v2927_v32, 2  ;;  %v2941_v56 = vadd.f32 %v2940_v49, %v2933_v59  ;;  %v3959_v35 = vld [vmem:[#allocation6 + $0x264] sm:$0xf] }
 0x9bd   :  { %v3805_v59 = vor.u32 %v3960_v43, %v3804_v61  ;;  %v3809_v27 = vor.u32 %v3959_v35, %v3806_v28 }
 0x9be   :  { %v2939_v18 = vadd.f32 %v2938_v7, %v2937_v2  ;;  %v6051_v5 = vmul.f32 0.125, %v2925_v47  ;;  %v2929_v17 = vadd.f32 %v2928_v3, %v2927_v32  ;;  %v2942_v31 = vrot.slane %v2941_v56, 2  ;;  %v3796_v2 = vld [vmem:[#allocation6 + $0x250] sm:$0xf]  ;;  %v3958_v32 = vld [vmem:[#allocation6 + $0x254] sm:$0xf0] }
 0x9bf   :  { %v2914_v0 = vpop.f32.mrf.mxu2  ;;  %v3957_v7 = vld [vmem:[#allocation6 + $0x254] sm:$0xf]  ;;  %v3798_v3 = vld [vmem:[#allocation6 + $0x258] sm:$0xf0]  ;;  %3125 = vmatpush.bf16.msra.mxu3 %v3805_v59  ;;  %3138 = vmatpush.bf16.msrb.mxu0 %v3809_v27 }
 0x9c0   :  { %v2948_v19 = vmul.f32 0.125, %v2939_v18  ;;  %v2950_v38 = vmul.f32 %v6051_v5, %v6051_v5  ;;  %v2930_v30 = vrot.slane %v2929_v17, 1  ;;  %v2943_v12 = vadd.f32 %v2942_v31, %v2941_v56 }
 0x9c1   :  { %v3801_v0 = vor.u32 %v3957_v7, %v3798_v3 }
 0x9c2   :  { %v2952_v52 = vsub.f32 %v2948_v19, %v2950_v38  ;;  %v2931_v54 = vadd.f32 %v2930_v30, %v2929_v17  ;;  %v2944_v6 = vrot.slane %v2943_v12, 1  ;;  %v3797_v17 = vor.u32 %v3958_v32, %v3796_v2  ;;  %v3788_v19 = vld [vmem:[#allocation6 + $0x240] sm:$0xf]  ;;  %v3956_v38 = vld [vmem:[#allocation6 + $0x244] sm:$0xf0] }
 0x9c3   :  { %v3955_v30 = vld [vmem:[#allocation6 + $0x244] sm:$0xf]  ;;  %3139 = vmatpush.bf16.msrb.mxu0 %v3801_v0 }
 0x9c4   :  { %v2954_v8 = vmax.f32 %v2952_v52, 0.0  ;;  %v2945_v9 = vadd.f32 %v2944_v6, %v2943_v12  ;;  %v2947_v29 = vmul.f32 0.125, %v2931_v54  ;;  %v3790_v12 = vld [vmem:[#allocation6 + $0x248] sm:$0xf0]  ;;  %3126 = vmatpush.bf16.msra.mxu3 %v3797_v17  ;;  %v3789_v54 = vor.u32 %v3956_v38, %v3788_v19 }
 0x9c6   :  { %v2956_v21 = vadd.f32 1e-05, %v2954_v8  ;;  %v2949_v40 = vmul.f32 0.125, %v2945_v9  ;;  %v2951_v45 = vmul.f32 %v2947_v29, %v2947_v29  ;;  %v3793_v8 = vor.u32 %v3955_v30, %v3790_v12  ;;  %v3780_v9 = vld [vmem:[#allocation6 + $0x230] sm:$0xf] }
 0x9c8   :  { %4142 = vrsqrt.f32 %v2956_v21  ;;  %v2953_v55 = vsub.f32 %v2949_v40, %v2951_v45  ;;  %vm2964_vm11 = vweird.f32 %v2956_v21  ;;  %v3782_v40 = vld [vmem:[#allocation6 + $0x238] sm:$0xf0]  ;;  %3127 = vmatpush.bf16.msra.mxu3 %v3789_v54  ;;  %3140 = vmatpush.bf16.msrb.mxu0 %v3793_v8 }
 0x9ca   :  { %v2955_v10 = vmax.f32 %v2953_v55, 0.0 }
 0x9cc   :  { %v2957_v37 = vadd.f32 1e-05, %v2955_v10 }
 0x9ce   :  { %v4143_v33 = vpop.eup %4142  ;;  %4144 = vrsqrt.f32 %v2957_v37  ;;  %vm2974_vm14 = vweird.f32 %v2957_v37 }
 0x9cf   :  { %v2959_v36 = vmul.f32 %v4143_v33, %v2956_v21  ;;  %vm2965_vm13 = vweird.f32 %v4143_v33  ;;  %v3953_v21 = vld [vmem:[#allocation6 + $0x234] sm:$0xf] }
 0x9d0   :  { %vm2966_vm1 = vmor %vm2964_vm11, %vm2965_vm13  ;;  %v3785_v10 = vor.u32 %v3953_v21, %v3782_v40 }
 0x9d1   :  { %v2960_v58 = vmul.f32 %v4143_v33, %v2959_v36  ;;  %v3774_v36 = vld [vmem:[#allocation6 + $0x228] sm:$0xf0] }
 0x9d2   :  { %3141 = vmatpush.bf16.msrb.mxu0 %v3785_v10 }
 0x9d3   :  { %v2961_v24 = vmul.f32 0.5, %v2960_v58 }
 0x9d4   :  { %v4145_v46 = vpop.eup %4144 }
 0x9d5   :  { %v2962_v25 = vsub.f32 1.5, %v2961_v24  ;;  %v2969_v62 = vmul.f32 %v4145_v46, %v2957_v37  ;;  %vm2975_vm7 = vweird.f32 %v4145_v46  ;;  %v3772_v37 = vld [vmem:[#allocation6 + $0x220] sm:$0xf] }
 0x9d6   :  { %vm2976_vm6 = vmor %vm2974_vm14, %vm2975_vm7 }
 0x9d7   :  { %v2970_v41 = vmul.f32 %v4145_v46, %v2969_v62  ;;  %v2963_v53 = vmul.f32 %v4143_v33, %v2962_v25  ;;  %v3950_v25 = vld [vmem:[#allocation6 + $0x214] sm:$0xf0]  ;;  %v3949_v62 = vld [vmem:[#allocation6 + $0x214] sm:$0xf] }
 0x9d9   :  { %v2971_v51 = vmul.f32 0.5, %v2970_v41  ;;  %v2967_v63 = vsel %vm2966_vm1, %v4143_v33, %v2963_v53  ;;  %v3952_v33 = vld [vmem:[#allocation6 + $0x224] sm:$0xf0]  ;;  %v3766_v41 = vld [vmem:[#allocation6 + $0x218] sm:$0xf0] }
 0x9da   :  { %v6055_v60 = vmul.f32 %v2979_v11, %v2967_v63  ;;  %v3773_v58 = vor.u32 %v3952_v33, %v3772_v37  ;;  %v3756_v11 = vld [vmem:[#allocation6 + $0x200] sm:$0xf]  ;;  %v3947_v63 = vld [vmem:[#allocation6 + $0x204] sm:$0xf] }
 0x9db   :  { %v2972_v16 = vsub.f32 1.5, %v2971_v51 }
 0x9dc   :  { %v2985_v49 = vmul.f32 %v6055_v60, %v6051_v5 }
 0x9dd   :  { %v2973_v14 = vmul.f32 %v4145_v46, %v2972_v16  ;;  %v3769_v16 = vor.u32 %v3949_v62, %v3766_v41 }
 0x9df   :  { %v2977_v42 = vsel %vm2976_vm6, %v4145_v46, %v2973_v14  ;;  %v3764_v46 = vld [vmem:[#allocation6 + $0x210] sm:$0xf]  ;;  %v3758_v14 = vld [vmem:[#allocation6 + $0x208] sm:$0xf0] }
 0x9e0   :  { %v2984_v22 = vmul.f32 %v2980_v13, %v2977_v42  ;;  %v3765_v51 = vor.u32 %v3950_v25, %v3764_v46  ;;  %v3948_v13 = vld [vmem:[#allocation6 + $0x204] sm:$0xf0]  ;;  %v3761_v57 = vor.u32 %v3947_v63, %v3758_v14 }
 0x9e1   :  { %v3757_v42 = vor.u32 %v3948_v13, %v3756_v11 }
 0x9e2   :  { %v2986_v23 = vmul.f32 %v2984_v22, %v2947_v29  ;;  %v2994_v56 = vperm.slane %v2984_v22, 0  ;;  %v3954_v29 = vld [vmem:[#allocation6 + $0x234] sm:$0xf0]  ;;  %v2993_v22 = vperm.slane %v6055_v60, 0 }
 0x9e3   :  { %v3781_v55 = vor.u32 %v3954_v29, %v3780_v9 }
 0x9e4   :  { %v2989_v47 = vrot.slane %v2986_v23, 7  ;;  %v2996_v52 = vmul.f32 %v2994_v56, %v6045_v48  ;;  %v3951_v48 = vld [vmem:[#allocation6 + $0x224] sm:$0xf]  ;;  %v2995_v35 = vmul.f32 %v2993_v22, %v6039_v15 }
 0x9e5   :  { %3128 = vmatpush.bf16.msra.mxu3 %v3781_v55  ;;  %v3777_v24 = vor.u32 %v3951_v48, %v3774_v36 }
 0x9e6   :  { %v2990_v18 = vsel %vm297_vm9, %v2985_v49, %v2989_v47 }
 0x9e7   :  { %v6060_v31 = vsub.f32 %v2919_v1, %v2990_v18  ;;  %3142 = vmatpush.bf16.msrb.mxu0 %v3777_v24 }
 0x9e9   :  { %v2999_v5 = vperm.slane %v6060_v31, 1  ;;  %3129 = vmatpush.bf16.msra.mxu3 %v3773_v58  ;;  %v2998_v26 = vperm.slane %v6060_v31, 0 }
 0x9eb   :  { %v3003_v6 = vadd.f32 %v2999_v5, %v2996_v52  ;;  %3143 = vmatpush.bf16.msrb.mxu0 %v3769_v16  ;;  %v3002_v59 = vadd.f32 %v2998_v26, %v2995_v35 }
 0x9ed   :  { %v3753_v45 = vmul.f32 -1.442695, %v3003_v6  ;;  %3130 = vmatpush.bf16.msra.mxu3 %v3765_v51 }
 0x9ef   :  { %4146 = vpow2.f32 %v3753_v45  ;;  %3144 = vmatpush.bf16.msrb.mxu0 %v3761_v57  ;;  %v3151_v57 = vld [vmem:[#allocation8 + $0x16] ss:$8 sm:$0x3] }
 0x9f1   :  { %3131 = vmatpush.bf16.msra.mxu3 %v3757_v42 }
 0x9f5   :  { %v4147_v39 = vpop.eup %4146 }
 0x9f6   :  { %v3007_v53 = vadd.f32 1.0, %v4147_v39 }
 0x9f8   :  { %4148 = vrcp.f32 %v3007_v53  ;;  %v3019_v50 = vand.u32 2147483648, %v3007_v53  ;;  %v3017_v43 = vand.u32 2147483647, %v3007_v53  ;;  %vm3013_vm0 = vweird.f32 %v3007_v53 }
 0x9fa   :  { %v3020_v23 = vor.u32 1.1754944e-38, %v3019_v50  ;;  %vm3018_vm4 = vcmp.eq.f32.partialorder %v3017_v43, 8.507059e+37  ;;  %v3214_v50 = vperm.slane %v3151_v57, 1 }
 0x9fe   :  { %v4149_v20 = vpop.eup %4148 }
 0x9ff   :  { %v3009_v4 = vmul.f32 %v4149_v20, %v3007_v53  ;;  %vm3014_vm15 = vweird.f32 %v4149_v20 }
 0xa00   :  { %vm3015_vm2 = vmor %vm3013_vm0, %vm3014_vm15 }
 0xa01   :  { %v3010_v34 = vsub.f32 1.0, %v3009_v4 }
 0xa03   :  { %v3011_v61 = vmul.f32 %v4149_v20, %v3010_v34 }
 0xa05   :  { %v3012_v1 = vadd.f32 %v4149_v20, %v3011_v61 }
 0xa07   :  { %v3016_v28 = vsel %vm3015_vm2, %v4149_v20, %v3012_v1 }
 0xa08   :  { %v3021_v27 = vsel %vm3018_vm4, %v3020_v23, %v3016_v28 }
 0xa09   :  { %v3023_v2 = vmul.f32 %v3021_v27, %v3002_v59  ;;  %v3213_v59 = vperm.slane %v3151_v57, 0 }
 0xa0b   :  { %v3024_v60 = vadd.f32 %v3023_v2, %v6035_v44 }
 0xa0d   :  { %v6068_v32 = vmul.f32 0.70710677, %v3024_v60 }
 0xa0f   :  { %v3026_v49 = vpack.c.bf16 %v6068_v32, %v6068_v32 }
 0xa11   :  { %3132 = vmatmul.bf16.vlgmr.msra.gmra.mxu3 %v3026_v49  ;;  %3145 = vmatmul.bf16.vlgmr.msrb.gmra.mxu0 %v3026_v49  ;;  %v3913_v49 = vld [vmem:[#allocation6 + $0x2f4] sm:$0xf] }
 0xa8e   :  { %v6072_v47 = vpop.f32.mrf.mxu0 }
 0xa8f   :  { %v3160_v15 = vrot.slane %v6072_v47, 4  ;;  %v3167_v7 = vmul.f32 %v6072_v47, %v6072_v47 }
 0xa91   :  { %v3161_v3 = vadd.f32 %v3160_v15, %v6072_v47  ;;  %v3174_v56 = vrot.slane %v3167_v7, 4  ;;  %v3847_v15 = vld [vmem:[#allocation6 + $0x2f8] sm:$0xf0] }
 0xa93   :  { %v3162_v18 = vrot.slane %v3161_v3, 2  ;;  %v3175_v17 = vadd.f32 %v3174_v56, %v3167_v7  ;;  %v3850_v7 = vor.u32 %v3913_v49, %v3847_v15  ;;  %v3153_v56 = vld [vmem:[#allocation8 + $0x17] ss:$8 sm:$0x3] }
 0xa94   :  { %v6078_v44 = vpop.f32.mrf.mxu3 }
 0xa95   :  { %v3163_v31 = vadd.f32 %v3162_v18, %v3161_v3  ;;  %v3176_v0 = vrot.slane %v3175_v17, 2  ;;  %v3154_v19 = vrot.slane %v6078_v44, 4  ;;  %v3166_v38 = vmul.f32 %v6078_v44, %v6078_v44  ;;  %3296 = vmatpush.bf16.msrb.mxu1 %v3850_v7 }
 0xa96   :  { %v3148_v30 = vpop.f32.mrf.mxu0 }
 0xa97   :  { %v3164_v12 = vrot.slane %v3163_v31, 1  ;;  %v3177_v52 = vadd.f32 %v3176_v0, %v3175_v17  ;;  %v3155_v5 = vadd.f32 %v3154_v19, %v6078_v44  ;;  %v3168_v54 = vrot.slane %v3166_v38, 4  ;;  %v3911_v0 = vld [vmem:[#allocation6 + $0x2e4] sm:$0xf]  ;;  %v3843_v19 = vld [vmem:[#allocation6 + $0x2e8] sm:$0xf0] }
 0xa98   :  { %v3846_v30 = vor.u32 %v3911_v0, %v3843_v19 }
 0xa99   :  { %v3165_v6 = vadd.f32 %v3164_v12, %v3163_v31  ;;  %v3178_v8 = vrot.slane %v3177_v52, 1  ;;  %v3156_v9 = vrot.slane %v3155_v5, 2  ;;  %v3169_v29 = vadd.f32 %v3168_v54, %v3166_v38  ;;  %v3839_v54 = vld [vmem:[#allocation6 + $0x2d8] sm:$0xf0] }
 0xa9a   :  { %3297 = vmatpush.bf16.msrb.mxu1 %v3846_v30 }
 0xa9b   :  { %v3179_v21 = vadd.f32 %v3178_v8, %v3177_v52  ;;  %v3181_v40 = vmul.f32 0.125, %v3165_v6  ;;  %v3157_v45 = vadd.f32 %v3156_v9, %v3155_v5  ;;  %v3170_v55 = vrot.slane %v3169_v29, 2  ;;  %v3909_v5 = vld [vmem:[#allocation6 + $0x2d4] sm:$0xf]  ;;  %v3907_v9 = vld [vmem:[#allocation6 + $0x2c4] sm:$0xf] }
 0xa9c   :  { %v3135_v10 = vpop.f32.mrf.mxu3  ;;  %v3842_v8 = vor.u32 %v3909_v5, %v3839_v54 }
 0xa9d   :  { %v3183_v37 = vmul.f32 0.125, %v3179_v21  ;;  %v3185_v33 = vmul.f32 %v3181_v40, %v3181_v40  ;;  %v3158_v48 = vrot.slane %v3157_v45, 1  ;;  %v3171_v36 = vadd.f32 %v3170_v55, %v3169_v29  ;;  %v3835_v29 = vld [vmem:[#allocation6 + $0x2c8] sm:$0xf0]  ;;  %v3831_v55 = vld [vmem:[#allocation6 + $0x2b8] sm:$0xf0] }
 0xa9e   :  { %3298 = vmatpush.bf16.msrb.mxu1 %v3842_v8 }
 0xa9f   :  { %v3187_v58 = vsub.f32 %v3183_v37, %v3185_v33  ;;  %v3159_v24 = vadd.f32 %v3158_v48, %v3157_v45  ;;  %v3172_v46 = vrot.slane %v3171_v36, 1  ;;  %v3905_v45 = vld [vmem:[#allocation6 + $0x2b4] sm:$0xf]  ;;  %v3903_v37 = vld [vmem:[#allocation6 + $0x2a4] sm:$0xf] }
 0xaa0   :  { %v3834_v10 = vor.u32 %v3905_v45, %v3831_v55  ;;  %v3827_v33 = vld [vmem:[#allocation6 + $0x2a8] sm:$0xf0] }
 0xaa1   :  { %v3189_v25 = vmax.f32 %v3187_v58, 0.0  ;;  %v3173_v62 = vadd.f32 %v3172_v46, %v3171_v36  ;;  %v3180_v41 = vmul.f32 0.125, %v3159_v24  ;;  %v3901_v58 = vld [vmem:[#allocation6 + $0x294] sm:$0xf]  ;;  %v3823_v24 = vld [vmem:[#allocation6 + $0x298] sm:$0xf0] }
 0xaa2   :  { %v3826_v46 = vor.u32 %v3901_v58, %v3823_v24 }
 0xaa3   :  { %v3191_v39 = vadd.f32 1e-05, %v3189_v25  ;;  %v3182_v53 = vmul.f32 0.125, %v3173_v62  ;;  %v3184_v51 = vmul.f32 %v3180_v41, %v3180_v41  ;;  %v3899_v25 = vld [vmem:[#allocation6 + $0x284] sm:$0xf] }
 0xaa4   :  { %v3819_v62 = vld [vmem:[#allocation6 + $0x288] sm:$0xf0] }
 0xaa5   :  { %4150 = vrsqrt.f32 %v3191_v39  ;;  %v3186_v16 = vsub.f32 %v3182_v53, %v3184_v51  ;;  %vm3208_vm8 = vweird.f32 %v3191_v39 }
 0xaa7   :  { %v3188_v11 = vmax.f32 %v3186_v16, 0.0 }
 0xaa9   :  { %v3190_v13 = vadd.f32 1e-05, %v3188_v11 }
 0xaab   :  { %v4151_v63 = vpop.eup %4150  ;;  %4152 = vrsqrt.f32 %v3190_v13  ;;  %vm3198_vm12 = vweird.f32 %v3190_v13 }
 0xaac   :  { %v3203_v14 = vmul.f32 %v4151_v63, %v3191_v39  ;;  %vm3209_vm5 = vweird.f32 %v4151_v63 }
 0xaad   :  { %vm3210_vm10 = vmor %vm3208_vm8, %vm3209_vm5 }
 0xaae   :  { %v3204_v42 = vmul.f32 %v4151_v63, %v3203_v14 }
 0xab0   :  { %v3205_v20 = vmul.f32 0.5, %v3204_v42 }
 0xab1   :  { %v4153_v4 = vpop.eup %4152 }
 0xab2   :  { %v3206_v22 = vsub.f32 1.5, %v3205_v20  ;;  %v3193_v34 = vmul.f32 %v4153_v4, %v3190_v13  ;;  %vm3199_vm3 = vweird.f32 %v4153_v4 }
 0xab3   :  { %vm3200_vm13 = vmor %vm3198_vm12, %vm3199_vm3 }
 0xab4   :  { %v3207_v26 = vmul.f32 %v4151_v63, %v3206_v22  ;;  %v3194_v61 = vmul.f32 %v4153_v4, %v3193_v34 }
 0xab6   :  { %v3211_v43 = vsel %vm3210_vm10, %v4151_v63, %v3207_v26  ;;  %v3195_v35 = vmul.f32 0.5, %v3194_v61 }
 0xab7   :  { %v3218_v1 = vmul.f32 %v3214_v50, %v3211_v43 }
 0xab8   :  { %v3196_v23 = vsub.f32 1.5, %v3195_v35 }
 0xab9   :  { %v3220_v27 = vmul.f32 %v3218_v1, %v3181_v40  ;;  %v3228_v17 = vperm.slane %v3218_v1, 0  ;;  %v3838_v40 = vor.u32 %v3907_v9, %v3835_v29 }
 0xaba   :  { %v3197_v28 = vmul.f32 %v4153_v4, %v3196_v23 }
 0xabb   :  { %v3223_v3 = vrot.slane %v3220_v27, 7  ;;  %v3230_v12 = vmul.f32 %v3228_v17, %v6072_v47  ;;  %3299 = vmatpush.bf16.msrb.mxu1 %v3838_v40  ;;  %v3830_v47 = vor.u32 %v3903_v37, %v3827_v33 }
 0xabc   :  { %v3201_v2 = vsel %vm3200_vm13, %v4153_v4, %v3197_v28 }
 0xabd   :  { %v3217_v60 = vmul.f32 %v3213_v59, %v3201_v2 }
 0xabf   :  { %v3219_v18 = vmul.f32 %v3217_v60, %v3180_v41  ;;  %3300 = vmatpush.bf16.msrb.mxu1 %v3834_v10  ;;  %v3822_v41 = vor.u32 %v3899_v25, %v3819_v62  ;;  %v3227_v51 = vperm.slane %v3217_v60, 0 }
 0xac1   :  { %v3224_v31 = vsel %vm297_vm9, %v3219_v18, %v3223_v3  ;;  %v3229_v42 = vmul.f32 %v3227_v51, %v6078_v44 }
 0xac2   :  { %v3226_v38 = vsub.f32 %v3153_v56, %v3224_v31 }
 0xac3   :  { %3301 = vmatpush.bf16.msrb.mxu1 %v3830_v47 }
 0xac4   :  { %v3233_v52 = vperm.slane %v3226_v38, 1  ;;  %v3232_v13 = vperm.slane %v3226_v38, 0 }
 0xac6   :  { %v3237_v6 = vadd.f32 %v3233_v52, %v3230_v12  ;;  %v3236_v4 = vadd.f32 %v3232_v13, %v3229_v42 }
 0xac7   :  { %3302 = vmatpush.bf16.msrb.mxu1 %v3826_v46 }
 0xac8   :  { %v3818_v21 = vmul.f32 -1.442695, %v3237_v6 }
 0xaca   :  { %4154 = vpow2.f32 %v3818_v21 }
 0xacb   :  { %3303 = vmatpush.bf16.msrb.mxu1 %v3822_v41 }
 0xad0   :  { %v4155_v48 = vpop.eup %4154 }
 0xad1   :  { %v3241_v36 = vadd.f32 1.0, %v4155_v48 }
 0xad3   :  { %4156 = vrcp.f32 %v3241_v36  ;;  %v3253_v11 = vand.u32 2147483648, %v3241_v36  ;;  %v3251_v14 = vand.u32 2147483647, %v3241_v36  ;;  %vm3247_vm11 = vweird.f32 %v3241_v36 }
 0xad5   :  { %v3254_v20 = vor.u32 1.1754944e-38, %v3253_v11  ;;  %vm3252_vm1 = vcmp.eq.f32.partialorder %v3251_v14, 8.507059e+37 }
 0xad9   :  { %v4157_v39 = vpop.eup %4156 }
 0xada   :  { %v3243_v53 = vmul.f32 %v4157_v39, %v3241_v36  ;;  %vm3248_vm9 = vweird.f32 %v4157_v39 }
 0xadb   :  { %vm3249_vm7 = vmor %vm3247_vm11, %vm3248_vm9 }
 0xadc   :  { %v3244_v16 = vsub.f32 1.0, %v3243_v53 }
 0xade   :  { %v3245_v63 = vmul.f32 %v4157_v39, %v3244_v16 }
 0xae0   :  { %v3246_v57 = vadd.f32 %v4157_v39, %v3245_v63 }
 0xae2   :  { %v3250_v22 = vsel %vm3249_vm7, %v4157_v39, %v3246_v57 }
 0xae3   :  { %v3255_v34 = vsel %vm3252_vm1, %v3254_v20, %v3250_v22 }
 0xae4   :  { %v3257_v50 = vmul.f32 %v3255_v34, %v3236_v4 }
 0xae6   :  { %v3258_v26 = vadd.f32 %v3257_v50, %v6068_v32 }
 0xae8   :  { %v3259_v61 = vmul.f32 0.70710677, %v3258_v26 }
 0xaea   :  { %vm3260_vm14 = vcmp.gt.f32.partialorder %v3259_v61, 0.0  ;;  %v3261_v43 = vmul.f32 0.25, %v3259_v61 }
 0xaec   :  { %v3262_v35 = vsel %vm3260_vm14, %v3259_v61, %v3261_v43 }
 0xaed   :  { %v3263_v1 = vpack.c.bf16 %v3262_v35, %v3262_v35 }
 0xaef   :  { %3304 = vmatmul.bf16.vlgmr.msrb.gmra.mxu1 %v3263_v1 }
 0xb6c   :  { %v3305_v32 = vpop.f32.mrf.mxu1 }
 0xb6d   :  { %3309 = vst [vmem:[#allocation9] sm:$0xff] %v3305_v32 }
 0xb6e   :  { %3320 = dma.vmem_to_hbm [thread:$0]  %s3316_s12, 128, %s3318_s15, [#allocation4]  }
 0xb74   :  { %v3307_v44 = vpop.f32.mrf.mxu1 }
 0xb75   :  { %4270 = dma.done.wait [#allocation4], 128  }
 0xb76   :  { %4271 = vsyncadd [#allocation4], 4294967168 }
 0xb77   :  { %4272 = dma.done.wait [#allocation5], 16  }
 0xb78   :  { %4273 = vsyncadd [#allocation5], 4294967280 }
 0xb79   :  { %3338 = sfence }
 0xb7a   :  { %3339 = vsyncpa [#allocation3], 1 }
 0xb7b   :  { %3340 = vsyncpa [#allocation7], 1 }
 0xb7c   :  { %3341 = vsyncpa [#allocation4], 1 }
 0xb7d   :  { %3342 = vsyncpa [#allocation5], 1 }

</bundles_post_ra>
